<compile_context>
chip_gen: v6e
topology: v6e:2x2x1
jax: 0.10.0
libtpu: 0.0.40
codegen_flags: <defaults>
</compile_context>

<pallas_src>
import jax
import jax.numpy as jnp
from jax import lax
from jax.experimental import pallas as pl
from jax.experimental.pallas import tpu as pltpu

# ----------------------------- model hyper-parameters -----------------------------
B_IN, C_IN, H_IN, W_IN = 2, 4, 16, 16
C_OUT = 8                       # conv output channels == attention d_model
KH = KW = 3
STRIDE = (2, 2)                 # stride == pool_size for length==1 'cnn2d' Conv_Module
D_MODEL = C_OUT
N_HEAD = 2
HEAD_DIM = D_MODEL // N_HEAD
D_FF = 2 * D_MODEL              # dim_feedforward = 2 * d_model
N_CLASSES = 10
LN_EPS = 1e-5
BN_EPS = 1e-5

HO, WO = H_IN // STRIDE[0], W_IN // STRIDE[1]   # 8, 8
HW = HO * WO                                    # 64 tokens per image
SEQ = HW + 1                                    # 65: primer + tokens
K_PATCH = KH * KW * C_IN                        # 36 im2col columns

# ------------------------- packed-parameter slab layouts --------------------------
# (1, VEC_LEN) vector slab
OFF_BCONV = 0                            # folded conv+BN+residual bias      (8)
OFF_PRIM  = OFF_BCONV + C_OUT            # primer + pos_emb[0]               (8)
OFF_BQKV  = OFF_PRIM + D_MODEL           # fused q|k|v bias (q pre-scaled)   (24)
OFF_BO    = OFF_BQKV + 3 * D_MODEL       # attention out-proj bias           (8)
OFF_G1    = OFF_BO + D_MODEL             # LayerNorm1 gamma                  (8)
OFF_BE1   = OFF_G1 + D_MODEL             # LayerNorm1 beta                   (8)
OFF_G2    = OFF_BE1 + D_MODEL            # LayerNorm2 gamma                  (8)
OFF_BE2   = OFF_G2 + D_MODEL             # LayerNorm2 beta                   (8)
OFF_BF1   = OFF_BE2 + D_MODEL            # FFN linear1 bias                  (16)
OFF_BF2   = OFF_BF1 + D_FF               # FFN linear2 bias                  (8)
OFF_BFIN  = OFF_BF2 + D_MODEL            # classifier bias                   (10)
VEC_LEN   = OFF_BFIN + N_CLASSES         # 114

# (8, W8_LEN) weight slab (all matrices with 8 input rows)
W_QKV = 0                                # fused Wq|Wk|Wv (q pre-scaled)     (24)
W_WO  = W_QKV + 3 * D_MODEL              # attention out-proj                (8)
W_W1  = W_WO + D_MODEL                   # FFN linear1                       (16)
W_FIN = W_W1 + D_FF                      # classifier                        (10)
W8_LEN = W_FIN + N_CLASSES               # 58


# =================================================================================
# Single fused kernel: conv block -> tokens -> transformer layer -> classifier -> softmax
# =================================================================================
def _layernorm(x, g, b):
    mu = jnp.mean(x, axis=-1, keepdims=True)
    xc = x - mu
    var = jnp.mean(xc * xc, axis=-1, keepdims=True)
    return xc * lax.rsqrt(var + LN_EPS) * g + b


def abc_fused_kernel(patches_ref, wconv_ref, w8_ref, w2_ref, vec_ref, pos_ref,
                     out_ref, seq_ref):
    # ---- unpack packed parameter slabs (one-time static lane slices) ----
    vec = vec_ref[...]                                                  # (1, 114)
    b_conv = vec[:, OFF_BCONV:OFF_BCONV + C_OUT]
    prim0  = vec[:, OFF_PRIM:OFF_PRIM + D_MODEL]
    bqkv   = vec[:, OFF_BQKV:OFF_BQKV + 3 * D_MODEL]
    bo     = vec[:, OFF_BO:OFF_BO + D_MODEL]
    g1     = vec[:, OFF_G1:OFF_G1 + D_MODEL]
    be1    = vec[:, OFF_BE1:OFF_BE1 + D_MODEL]
    g2     = vec[:, OFF_G2:OFF_G2 + D_MODEL]
    be2    = vec[:, OFF_BE2:OFF_BE2 + D_MODEL]
    bf1    = vec[:, OFF_BF1:OFF_BF1 + D_FF]
    bf2    = vec[:, OFF_BF2:OFF_BF2 + D_MODEL]
    bfin   = vec[:, OFF_BFIN:OFF_BFIN + N_CLASSES]

    w8 = w8_ref[...]                                                    # (8, 58)
    wqkv = w8[:, W_QKV:W_QKV + 3 * D_MODEL]
    wo   = w8[:, W_WO:W_WO + D_MODEL]
    w1   = w8[:, W_W1:W_W1 + D_FF]
    wfin = w8[:, W_FIN:W_FIN + N_CLASSES]

    # ---- Conv_Module: conv + eval-BN + AvgPool(Linear_C(x)) residual + ReLU, all folded
    #      into a single (128,36)@(36,8) matmul (folding done wrapper-side on params) ----
    feat = jnp.maximum(
        jnp.dot(patches_ref[...], wconv_ref[...],
                preferred_element_type=jnp.float32) + b_conv, 0.0)      # (128, 8)

    # ---- Attention_Module token assembly: [primer | HW tokens] + positional embedding ----
    pos = pos_ref[...]                                                  # (64, 8) = pos_emb[1:65]
    for b in range(B_IN):
        seq_ref[b * SEQ:b * SEQ + 1, :] = prim0                          # primer + pos_emb[0]
        seq_ref[b * SEQ + 1:(b + 1) * SEQ, :] = feat[b * HW:(b + 1) * HW, :] + pos
    x = seq_ref[...]                                                    # (B*S, D) = (130, 8)

    # ---- TransformerEncoderLayer (norm_first, eval), batch-folded projections ----
    xn = _layernorm(x, g1, be1)
    qkv = jnp.dot(xn, wqkv, preferred_element_type=jnp.float32) + bqkv  # (130, 24)
    q = qkv[:, 0:D_MODEL]                # 1/sqrt(head_dim) already folded into Wq/bq
    k = qkv[:, D_MODEL:2 * D_MODEL]
    v = qkv[:, 2 * D_MODEL:3 * D_MODEL]

    lane = lax.broadcasted_iota(jnp.int32, (1, D_MODEL), 1)             # (1, 8) lane ids
    for b in range(B_IN):                                               # static loop of 2
        lo = b * SEQ
        qb = q[lo:lo + SEQ, :]                                          # (65, 8)
        kbT = k[lo:lo + SEQ, :].T                                       # transpose once per batch
        vb = v[lo:lo + SEQ, :]
        attn_b = None
        for h in range(N_HEAD):
            # head selection via lane mask -> no sub-width lane slicing, no per-head transpose
            mask = ((lane >= h * HEAD_DIM) &
                    (lane < (h + 1) * HEAD_DIM)).astype(jnp.float32)    # (1, 8)
            s = jnp.dot(qb * mask, kbT, preferred_element_type=jnp.float32)   # (65, 65)
            s = s - jnp.max(s, axis=-1, keepdims=True)
            e = jnp.exp(s)
            p = e * pl.reciprocal(jnp.sum(e, axis=-1, keepdims=True), approx=True)
            oh = jnp.dot(p, vb * mask, preferred_element_type=jnp.float32)    # head lanes only
            attn_b = oh if attn_b is None else attn_b + oh              # disjoint lanes -> concat
        seq_ref[lo:lo + SEQ, :] = attn_b                                # stash per-batch heads

    # single out-projection over the whole folded batch
    x = x + jnp.dot(seq_ref[...], wo, preferred_element_type=jnp.float32) + bo

    # ---- feed-forward sub-block (pre-LN, ReLU) ----
    xn2 = _layernorm(x, g2, be2)
    hmid = jnp.maximum(jnp.dot(xn2, w1, preferred_element_type=jnp.float32) + bf1, 0.0)
    x = x + jnp.dot(hmid, w2_ref[...], preferred_element_type=jnp.float32) + bf2

    # ---- primer token per batch -> Linear_Module(8, 10) -> Softmax(dim=1) ----
    t = jnp.concatenate([x[b * SEQ:b * SEQ + 1, :] for b in range(B_IN)], axis=0)  # (B, 8)
    logits = jnp.dot(t, wfin, preferred_element_type=jnp.float32) + bfin           # (B, 10)
    logits = logits - jnp.max(logits, axis=-1, keepdims=True)
    el = jnp.exp(logits)
    out_ref[...] = el / jnp.sum(el, axis=-1, keepdims=True)


# =================================================================================
# Wrapper: parameter folding / slab packing (param-only math) + im2col glue + one pallas_call
# =================================================================================
def abc_net_forward(x_nchw, params):
    cp, ap = params['conv'], params['attn']
    B = x_nchw.shape[0]
    sh, sw = STRIDE

    # im2col (pure data movement glue; patch order: kh outer, kw, channel inner)
    x = jnp.transpose(x_nchw, (0, 2, 3, 1))                         # NCHW -> NHWC
    xpad = jnp.pad(x, ((0, 0), (1, 1), (1, 1), (0, 0)))             # padding=1
    cols = [xpad[:, kh:kh + sh * HO:sh, kw:kw + sw * WO:sw, :]
            for kh in range(KH) for kw in range(KW)]
    patches = jnp.concatenate(cols, axis=-1).reshape(B * HW, K_PATCH)   # (128, 36)

    # fold conv + eval-BatchNorm + AvgPool(Linear_C(x)) residual into one (36,8) matmul
    scale = cp['bn_gamma'] / jnp.sqrt(cp['bn_var'] + BN_EPS)
    wc = cp['w_conv'].reshape(K_PATCH, C_OUT) * scale[None, :]
    b_all = cp['b_conv'] * scale + (cp['bn_beta'] - cp['bn_mean'] * scale) + cp['b_lin']
    # AvgPool2d(2,2)(Linear_C(x)) == mean of the 4 interior im2col taps @ w_lin
    w_res = jnp.zeros_like(wc)
    for kh, kw in ((1, 1), (1, 2), (2, 1), (2, 2)):
        i0 = (kh * KW + kw) * C_IN
        w_res = w_res.at[i0:i0 + C_IN, :].set(cp['w_lin'] * 0.25)
    w_conv_all = wc + w_res                                         # (36, 8)

    # pack transformer params into 3 slabs; fold 1/sqrt(head_dim) into Wq/bq
    inv_sqrt_hd = HEAD_DIM ** -0.5
    wqkv = jnp.concatenate([ap['wq'] * inv_sqrt_hd, ap['wk'], ap['wv']], axis=1)   # (8, 24)
    bqkv = jnp.concatenate([ap['bq'] * inv_sqrt_hd, ap['bk'], ap['bv']], axis=1)   # (1, 24)
    w8 = jnp.concatenate([wqkv, ap['wo'], ap['w1'], ap['w_fin']], axis=1)          # (8, 58)
    prim0 = ap['primer'].reshape(1, D_MODEL) + ap['pos_emb'][0:1, :]               # (1, 8)
    vecs = jnp.concatenate([
        b_all.reshape(1, C_OUT), prim0, bqkv, ap['bo'],
        ap['ln1_g'], ap['ln1_b'], ap['ln2_g'], ap['ln2_b'],
        ap['b1'], ap['b2'], ap['b_fin']], axis=1)                                  # (1, 114)
    pos_tok = ap['pos_emb'][1:SEQ, :]                                              # (64, 8)

    full = lambda shape: pl.BlockSpec(shape, lambda i: (0, 0))
    return pl.pallas_call(
        abc_fused_kernel,
        out_shape=jax.ShapeDtypeStruct((B, N_CLASSES), jnp.float32),
        grid=(1,),
        in_specs=[full(patches.shape), full(w_conv_all.shape), full(w8.shape),
                  full(ap['w2'].shape), full(vecs.shape), full(pos_tok.shape)],
        out_specs=full((B, N_CLASSES)),
        scratch_shapes=[pltpu.VMEM((B_IN * SEQ, D_MODEL), jnp.float32)],
        compiler_params=pltpu.CompilerParams(dimension_semantics=("arbitrary",)),
    )(patches, w_conv_all, w8, ap['w2'], vecs, pos_tok)


# =================================================================================
# Deterministic parameter init (shapes follow the PyTorch module __init__;
# weights are stored as (in, out), i.e. already transposed vs. nn.Linear.weight).
# =================================================================================
def init_params(key):
    keys = iter(jax.random.split(key, 40))
    u = lambda shape, s=0.2: jax.random.uniform(next(keys), shape, jnp.float32, -s, s)

    conv = dict(
        w_conv=u((KH, KW, C_IN, C_OUT)),
        b_conv=u((C_OUT,)),
        bn_gamma=1.0 + u((C_OUT,)),
        bn_beta=u((C_OUT,)),
        bn_mean=u((C_OUT,)),
        bn_var=1.0 + jnp.abs(u((C_OUT,))),
        w_lin=u((C_IN, C_OUT)),       # input_connect Linear(Cin, Cout)
        b_lin=u((C_OUT,)),
    )
    attn = dict(
        primer=u((1, 1, D_MODEL)),
        pos_emb=u((1000, D_MODEL)),   # nn.Embedding(1000, d_model)
        wq=u((D_MODEL, D_MODEL)), bq=u((1, D_MODEL)),
        wk=u((D_MODEL, D_MODEL)), bk=u((1, D_MODEL)),
        wv=u((D_MODEL, D_MODEL)), bv=u((1, D_MODEL)),
        wo=u((D_MODEL, D_MODEL)), bo=u((1, D_MODEL)),
        ln1_g=1.0 + u((1, D_MODEL)), ln1_b=u((1, D_MODEL)),
        ln2_g=1.0 + u((1, D_MODEL)), ln2_b=u((1, D_MODEL)),
        w1=u((D_MODEL, D_FF)), b1=u((1, D_FF)),
        w2=u((D_FF, D_MODEL)), b2=u((1, D_MODEL)),
        w_fin=u((D_MODEL, N_CLASSES)), b_fin=u((1, N_CLASSES)),
    )
    return dict(conv=conv, attn=attn)


# TODO(synk): ABC_2D_Specific / ABC_2D_Agnostic / ABC_2D_Large (hash-conditioned convs) are
# not defined in the reference source; this config uses the 'cnn2d' path, where `hash` only
# feeds the unused `new_hash` bookkeeping, so it is omitted.

if __name__ == "__main__":
    key = jax.random.PRNGKey(0)
    kx, kp = jax.random.split(key)
    x = jax.random.normal(kx, (B_IN, C_IN, H_IN, W_IN), jnp.float32)   # NCHW like PyTorch
    params = init_params(kp)

    fwd = jax.jit(abc_net_forward)
    y = fwd(x, params)
    jax.block_until_ready(y)

    assert y.shape == (B_IN, N_CLASSES), y.shape
    assert bool(jnp.all(jnp.isfinite(y)))
    print("KERNEL_OK")
</pallas_src>

<mosaic_0001>
module attributes {stable_mosaic.version = 11 : i64} {
  func.func @abc_fused_kernel(%arg0: i32, %arg1: memref<128x36xf32, #tpu.memory_space<vmem>>, %arg2: memref<36x8xf32, #tpu.memory_space<vmem>>, %arg3: memref<8x58xf32, #tpu.memory_space<vmem>>, %arg4: memref<16x8xf32, #tpu.memory_space<vmem>>, %arg5: memref<1x114xf32, #tpu.memory_space<vmem>>, %arg6: memref<64x8xf32, #tpu.memory_space<vmem>>, %arg7: memref<2x10xf32, #tpu.memory_space<vmem>>, %arg8: memref<130x8xf32, #tpu.memory_space<vmem>>) attributes {dimension_semantics = [#tpu.dimension_semantics<arbitrary>], iteration_bounds = array<i64: 1>, scalar_prefetch = 0 : i64, scratch_operands = 1 : i64, tpu.core_type = #tpu.core_type<tc>, window_params = [{pipeline_mode = #tpu.pipeline_mode<synchronous>, transform_indices = @transform_0, window_bounds = array<i64: 128, 36>}, {pipeline_mode = #tpu.pipeline_mode<synchronous>, transform_indices = @transform_1, window_bounds = array<i64: 36, 8>}, {pipeline_mode = #tpu.pipeline_mode<synchronous>, transform_indices = @transform_2, window_bounds = array<i64: 8, 58>}, {pipeline_mode = #tpu.pipeline_mode<synchronous>, transform_indices = @transform_3, window_bounds = array<i64: 16, 8>}, {pipeline_mode = #tpu.pipeline_mode<synchronous>, transform_indices = @transform_4, window_bounds = array<i64: 1, 114>}, {pipeline_mode = #tpu.pipeline_mode<synchronous>, transform_indices = @transform_5, window_bounds = array<i64: 64, 8>}, {pipeline_mode = #tpu.pipeline_mode<synchronous>, transform_indices = @transform_6, window_bounds = array<i64: 2, 10>}]} {
    %c0 = arith.constant 0 : index
    %c0_0 = arith.constant 0 : index
    %0 = vector.load %arg5[%c0, %c0_0] : memref<1x114xf32, #tpu.memory_space<vmem>>, vector<1x114xf32>
    %1 = vector.extract_strided_slice %0 {offsets = [0, 0], sizes = [1, 8], strides = [1, 1]} : vector<1x114xf32> to vector<1x8xf32>
    %2 = vector.extract_strided_slice %0 {offsets = [0, 8], sizes = [1, 8], strides = [1, 1]} : vector<1x114xf32> to vector<1x8xf32>
    %3 = vector.extract_strided_slice %0 {offsets = [0, 16], sizes = [1, 24], strides = [1, 1]} : vector<1x114xf32> to vector<1x24xf32>
    %4 = vector.extract_strided_slice %0 {offsets = [0, 40], sizes = [1, 8], strides = [1, 1]} : vector<1x114xf32> to vector<1x8xf32>
    %5 = vector.extract_strided_slice %0 {offsets = [0, 48], sizes = [1, 8], strides = [1, 1]} : vector<1x114xf32> to vector<1x8xf32>
    %6 = vector.extract_strided_slice %0 {offsets = [0, 56], sizes = [1, 8], strides = [1, 1]} : vector<1x114xf32> to vector<1x8xf32>
    %7 = vector.extract_strided_slice %0 {offsets = [0, 64], sizes = [1, 8], strides = [1, 1]} : vector<1x114xf32> to vector<1x8xf32>
    %8 = vector.extract_strided_slice %0 {offsets = [0, 72], sizes = [1, 8], strides = [1, 1]} : vector<1x114xf32> to vector<1x8xf32>
    %9 = vector.extract_strided_slice %0 {offsets = [0, 80], sizes = [1, 16], strides = [1, 1]} : vector<1x114xf32> to vector<1x16xf32>
    %10 = vector.extract_strided_slice %0 {offsets = [0, 96], sizes = [1, 8], strides = [1, 1]} : vector<1x114xf32> to vector<1x8xf32>
    %11 = vector.extract_strided_slice %0 {offsets = [0, 104], sizes = [1, 10], strides = [1, 1]} : vector<1x114xf32> to vector<1x10xf32>
    %c0_1 = arith.constant 0 : index
    %c0_2 = arith.constant 0 : index
    %12 = vector.load %arg3[%c0_1, %c0_2] : memref<8x58xf32, #tpu.memory_space<vmem>>, vector<8x58xf32>
    %13 = vector.extract_strided_slice %12 {offsets = [0, 0], sizes = [8, 24], strides = [1, 1]} : vector<8x58xf32> to vector<8x24xf32>
    %14 = vector.extract_strided_slice %12 {offsets = [0, 24], sizes = [8, 8], strides = [1, 1]} : vector<8x58xf32> to vector<8x8xf32>
    %15 = vector.extract_strided_slice %12 {offsets = [0, 32], sizes = [8, 16], strides = [1, 1]} : vector<8x58xf32> to vector<8x16xf32>
    %16 = vector.extract_strided_slice %12 {offsets = [0, 48], sizes = [8, 10], strides = [1, 1]} : vector<8x58xf32> to vector<8x10xf32>
    %c0_3 = arith.constant 0 : index
    %c0_4 = arith.constant 0 : index
    %17 = vector.load %arg1[%c0_3, %c0_4] : memref<128x36xf32, #tpu.memory_space<vmem>>, vector<128x36xf32>
    %c0_5 = arith.constant 0 : index
    %c0_6 = arith.constant 0 : index
    %18 = vector.load %arg2[%c0_5, %c0_6] : memref<36x8xf32, #tpu.memory_space<vmem>>, vector<36x8xf32>
    %cst = arith.constant dense<0.000000e+00> : vector<128x8xf32>
    %19 = tpu.matmul %17, %18, %cst {dimension_numbers = #tpu.dot_dimension_numbers<[1], [0], [0], [1], [0, 0, 1, 1], [], []>} : vector<128x36xf32>, vector<36x8xf32>, vector<128x8xf32> -> vector<128x8xf32>
    %20 = vector.broadcast %1 : vector<1x8xf32> to vector<128x8xf32>
    %21 = arith.addf %19, %20 : vector<128x8xf32>
    %cst_7 = arith.constant 0.000000e+00 : f32
    %22 = vector.broadcast %cst_7 : f32 to vector<128x8xf32>
    %23 = arith.maximumf %21, %22 : vector<128x8xf32>
    %c0_8 = arith.constant 0 : index
    %c0_9 = arith.constant 0 : index
    %24 = vector.load %arg6[%c0_8, %c0_9] : memref<64x8xf32, #tpu.memory_space<vmem>>, vector<64x8xf32>
    %c0_10 = arith.constant 0 : index
    %c0_11 = arith.constant 0 : index
    %25 = vector.load %arg8[%c0_10, %c0_11] : memref<130x8xf32, #tpu.memory_space<vmem>>, vector<1x8xf32>
    tpu.vector_store %arg8[%c0_10, %c0_11], %2 {strides = array<i32>} : memref<130x8xf32, #tpu.memory_space<vmem>>, vector<1x8xf32>,
    %26 = vector.extract_strided_slice %23 {offsets = [0, 0], sizes = [64, 8], strides = [1, 1]} : vector<128x8xf32> to vector<64x8xf32>
    %27 = arith.addf %26, %24 : vector<64x8xf32>
    %c1 = arith.constant 1 : index
    %c0_12 = arith.constant 0 : index
    %28 = vector.load %arg8[%c1, %c0_12] : memref<130x8xf32, #tpu.memory_space<vmem>>, vector<64x8xf32>
    tpu.vector_store %arg8[%c1, %c0_12], %27 {strides = array<i32>} : memref<130x8xf32, #tpu.memory_space<vmem>>, vector<64x8xf32>,
    %c65 = arith.constant 65 : index
    %c0_13 = arith.constant 0 : index
    %29 = vector.load %arg8[%c65, %c0_13] : memref<130x8xf32, #tpu.memory_space<vmem>>, vector<1x8xf32>
    tpu.vector_store %arg8[%c65, %c0_13], %2 {strides = array<i32>} : memref<130x8xf32, #tpu.memory_space<vmem>>, vector<1x8xf32>,
    %30 = vector.extract_strided_slice %23 {offsets = [64, 0], sizes = [64, 8], strides = [1, 1]} : vector<128x8xf32> to vector<64x8xf32>
    %31 = arith.addf %30, %24 : vector<64x8xf32>
    %c66 = arith.constant 66 : index
    %c0_14 = arith.constant 0 : index
    %32 = vector.load %arg8[%c66, %c0_14] : memref<130x8xf32, #tpu.memory_space<vmem>>, vector<64x8xf32>
    tpu.vector_store %arg8[%c66, %c0_14], %31 {strides = array<i32>} : memref<130x8xf32, #tpu.memory_space<vmem>>, vector<64x8xf32>,
    %c0_15 = arith.constant 0 : index
    %c0_16 = arith.constant 0 : index
    %33 = vector.load %arg8[%c0_15, %c0_16] : memref<130x8xf32, #tpu.memory_space<vmem>>, vector<130x8xf32>
    %cst_17 = arith.constant dense<0.000000e+00> : vector<130xf32>
    %34 = vector.multi_reduction <add>, %33, %cst_17 [1] : vector<130x8xf32> to vector<130xf32>
    %35 = vector.shape_cast %34 : vector<130xf32> to vector<130x1xf32>
    %cst_18 = arith.constant 8.000000e+00 : f32
    %36 = vector.broadcast %cst_18 : f32 to vector<130x1xf32>
    %37 = arith.divf %35, %36 : vector<130x1xf32>
    %38 = vector.broadcast %37 : vector<130x1xf32> to vector<130x8xf32>
    %39 = arith.subf %33, %38 : vector<130x8xf32>
    %40 = arith.mulf %39, %39 : vector<130x8xf32>
    %cst_19 = arith.constant dense<0.000000e+00> : vector<130xf32>
    %41 = vector.multi_reduction <add>, %40, %cst_19 [1] : vector<130x8xf32> to vector<130xf32>
    %42 = vector.shape_cast %41 : vector<130xf32> to vector<130x1xf32>
    %cst_20 = arith.constant 8.000000e+00 : f32
    %43 = vector.broadcast %cst_20 : f32 to vector<130x1xf32>
    %44 = arith.divf %42, %43 : vector<130x1xf32>
    %cst_21 = arith.constant 9.99999974E-6 : f32
    %45 = vector.broadcast %cst_21 : f32 to vector<130x1xf32>
    %46 = arith.addf %44, %45 : vector<130x1xf32>
    %47 = math.rsqrt %46 : vector<130x1xf32>
    %48 = vector.broadcast %47 : vector<130x1xf32> to vector<130x8xf32>
    %49 = arith.mulf %39, %48 : vector<130x8xf32>
    %50 = vector.broadcast %5 : vector<1x8xf32> to vector<130x8xf32>
    %51 = arith.mulf %49, %50 : vector<130x8xf32>
    %52 = vector.broadcast %6 : vector<1x8xf32> to vector<130x8xf32>
    %53 = arith.addf %51, %52 : vector<130x8xf32>
    %cst_22 = arith.constant dense<0.000000e+00> : vector<130x24xf32>
    %54 = tpu.matmul %53, %13, %cst_22 {dimension_numbers = #tpu.dot_dimension_numbers<[1], [0], [0], [1], [0, 0, 1, 1], [], []>} : vector<130x8xf32>, vector<8x24xf32>, vector<130x24xf32> -> vector<130x24xf32>
    %55 = vector.broadcast %3 : vector<1x24xf32> to vector<130x24xf32>
    %56 = arith.addf %54, %55 : vector<130x24xf32>
    %57 = vector.extract_strided_slice %56 {offsets = [0, 0], sizes = [130, 8], strides = [1, 1]} : vector<130x24xf32> to vector<130x8xf32>
    %58 = vector.extract_strided_slice %56 {offsets = [0, 8], sizes = [130, 8], strides = [1, 1]} : vector<130x24xf32> to vector<130x8xf32>
    %59 = vector.extract_strided_slice %56 {offsets = [0, 16], sizes = [130, 8], strides = [1, 1]} : vector<130x24xf32> to vector<130x8xf32>
    %60 = tpu.iota {dimensions = array<i32: 1>} : vector<1x8xi32>
    %61 = vector.extract_strided_slice %57 {offsets = [0, 0], sizes = [65, 8], strides = [1, 1]} : vector<130x8xf32> to vector<65x8xf32>
    %62 = vector.extract_strided_slice %58 {offsets = [0, 0], sizes = [65, 8], strides = [1, 1]} : vector<130x8xf32> to vector<65x8xf32>
    %63 = tpu.transpose %62, [1, 0] : vector<65x8xf32> -> vector<8x65xf32>
    %64 = vector.extract_strided_slice %59 {offsets = [0, 0], sizes = [65, 8], strides = [1, 1]} : vector<130x8xf32> to vector<65x8xf32>
    %c0_i32 = arith.constant 0 : i32
    %65 = vector.broadcast %c0_i32 : i32 to vector<1x8xi32>
    %66 = arith.cmpi sge, %60, %65 : vector<1x8xi32>
    %c4_i32 = arith.constant 4 : i32
    %67 = vector.broadcast %c4_i32 : i32 to vector<1x8xi32>
    %68 = arith.cmpi slt, %60, %67 : vector<1x8xi32>
    %69 = arith.andi %66, %68 : vector<1x8xi1>
    %70 = arith.extui %69 : vector<1x8xi1> to vector<1x8xi32>
    %71 = arith.sitofp %70 : vector<1x8xi32> to vector<1x8xf32>
    %72 = vector.broadcast %71 : vector<1x8xf32> to vector<65x8xf32>
    %73 = arith.mulf %61, %72 : vector<65x8xf32>
    %cst_23 = arith.constant dense<0.000000e+00> : vector<65x65xf32>
    %74 = tpu.matmul %73, %63, %cst_23 {dimension_numbers = #tpu.dot_dimension_numbers<[1], [0], [0], [1], [0, 0, 1, 1], [], []>} : vector<65x8xf32>, vector<8x65xf32>, vector<65x65xf32> -> vector<65x65xf32>
    %cst_24 = arith.constant dense<0xFF800000> : vector<65xf32>
    %75 = vector.multi_reduction <maximumf>, %74, %cst_24 [1] : vector<65x65xf32> to vector<65xf32>
    %76 = vector.shape_cast %75 : vector<65xf32> to vector<65x1xf32>
    %77 = vector.broadcast %76 : vector<65x1xf32> to vector<65x65xf32>
    %78 = arith.subf %74, %77 : vector<65x65xf32>
    %79 = math.exp %78 : vector<65x65xf32>
    %cst_25 = arith.constant dense<0.000000e+00> : vector<65xf32>
    %80 = vector.multi_reduction <add>, %79, %cst_25 [1] : vector<65x65xf32> to vector<65xf32>
    %81 = vector.shape_cast %80 : vector<65xf32> to vector<65x1xf32>
    %82 = tpu.reciprocal %81 {approx = true} : vector<65x1xf32> -> vector<65x1xf32>
    %83 = vector.broadcast %82 : vector<65x1xf32> to vector<65x65xf32>
    %84 = arith.mulf %79, %83 : vector<65x65xf32>
    %85 = vector.broadcast %71 : vector<1x8xf32> to vector<65x8xf32>
    %86 = arith.mulf %64, %85 : vector<65x8xf32>
    %cst_26 = arith.constant dense<0.000000e+00> : vector<65x8xf32>
    %87 = tpu.matmul %84, %86, %cst_26 {dimension_numbers = #tpu.dot_dimension_numbers<[1], [0], [0], [1], [0, 0, 1, 1], [], []>} : vector<65x65xf32>, vector<65x8xf32>, vector<65x8xf32> -> vector<65x8xf32>
    %c4_i32_27 = arith.constant 4 : i32
    %88 = vector.broadcast %c4_i32_27 : i32 to vector<1x8xi32>
    %89 = arith.cmpi sge, %60, %88 : vector<1x8xi32>
    %c8_i32 = arith.constant 8 : i32
    %90 = vector.broadcast %c8_i32 : i32 to vector<1x8xi32>
    %91 = arith.cmpi slt, %60, %90 : vector<1x8xi32>
    %92 = arith.andi %89, %91 : vector<1x8xi1>
    %93 = arith.extui %92 : vector<1x8xi1> to vector<1x8xi32>
    %94 = arith.sitofp %93 : vector<1x8xi32> to vector<1x8xf32>
    %95 = vector.broadcast %94 : vector<1x8xf32> to vector<65x8xf32>
    %96 = arith.mulf %61, %95 : vector<65x8xf32>
    %cst_28 = arith.constant dense<0.000000e+00> : vector<65x65xf32>
    %97 = tpu.matmul %96, %63, %cst_28 {dimension_numbers = #tpu.dot_dimension_numbers<[1], [0], [0], [1], [0, 0, 1, 1], [], []>} : vector<65x8xf32>, vector<8x65xf32>, vector<65x65xf32> -> vector<65x65xf32>
    %cst_29 = arith.constant dense<0xFF800000> : vector<65xf32>
    %98 = vector.multi_reduction <maximumf>, %97, %cst_29 [1] : vector<65x65xf32> to vector<65xf32>
    %99 = vector.shape_cast %98 : vector<65xf32> to vector<65x1xf32>
    %100 = vector.broadcast %99 : vector<65x1xf32> to vector<65x65xf32>
    %101 = arith.subf %97, %100 : vector<65x65xf32>
    %102 = math.exp %101 : vector<65x65xf32>
    %cst_30 = arith.constant dense<0.000000e+00> : vector<65xf32>
    %103 = vector.multi_reduction <add>, %102, %cst_30 [1] : vector<65x65xf32> to vector<65xf32>
    %104 = vector.shape_cast %103 : vector<65xf32> to vector<65x1xf32>
    %105 = tpu.reciprocal %104 {approx = true} : vector<65x1xf32> -> vector<65x1xf32>
    %106 = vector.broadcast %105 : vector<65x1xf32> to vector<65x65xf32>
    %107 = arith.mulf %102, %106 : vector<65x65xf32>
    %108 = vector.broadcast %94 : vector<1x8xf32> to vector<65x8xf32>
    %109 = arith.mulf %64, %108 : vector<65x8xf32>
    %cst_31 = arith.constant dense<0.000000e+00> : vector<65x8xf32>
    %110 = tpu.matmul %107, %109, %cst_31 {dimension_numbers = #tpu.dot_dimension_numbers<[1], [0], [0], [1], [0, 0, 1, 1], [], []>} : vector<65x65xf32>, vector<65x8xf32>, vector<65x8xf32> -> vector<65x8xf32>
    %111 = arith.addf %87, %110 : vector<65x8xf32>
    %c0_32 = arith.constant 0 : index
    %c0_33 = arith.constant 0 : index
    %112 = vector.load %arg8[%c0_32, %c0_33] : memref<130x8xf32, #tpu.memory_space<vmem>>, vector<65x8xf32>
    tpu.vector_store %arg8[%c0_32, %c0_33], %111 {strides = array<i32>} : memref<130x8xf32, #tpu.memory_space<vmem>>, vector<65x8xf32>,
    %113 = vector.extract_strided_slice %57 {offsets = [65, 0], sizes = [65, 8], strides = [1, 1]} : vector<130x8xf32> to vector<65x8xf32>
    %114 = vector.extract_strided_slice %58 {offsets = [65, 0], sizes = [65, 8], strides = [1, 1]} : vector<130x8xf32> to vector<65x8xf32>
    %115 = tpu.transpose %114, [1, 0] : vector<65x8xf32> -> vector<8x65xf32>
    %116 = vector.extract_strided_slice %59 {offsets = [65, 0], sizes = [65, 8], strides = [1, 1]} : vector<130x8xf32> to vector<65x8xf32>
    %c0_i32_34 = arith.constant 0 : i32
    %117 = vector.broadcast %c0_i32_34 : i32 to vector<1x8xi32>
    %118 = arith.cmpi sge, %60, %117 : vector<1x8xi32>
    %c4_i32_35 = arith.constant 4 : i32
    %119 = vector.broadcast %c4_i32_35 : i32 to vector<1x8xi32>
    %120 = arith.cmpi slt, %60, %119 : vector<1x8xi32>
    %121 = arith.andi %118, %120 : vector<1x8xi1>
    %122 = arith.extui %121 : vector<1x8xi1> to vector<1x8xi32>
    %123 = arith.sitofp %122 : vector<1x8xi32> to vector<1x8xf32>
    %124 = vector.broadcast %123 : vector<1x8xf32> to vector<65x8xf32>
    %125 = arith.mulf %113, %124 : vector<65x8xf32>
    %cst_36 = arith.constant dense<0.000000e+00> : vector<65x65xf32>
    %126 = tpu.matmul %125, %115, %cst_36 {dimension_numbers = #tpu.dot_dimension_numbers<[1], [0], [0], [1], [0, 0, 1, 1], [], []>} : vector<65x8xf32>, vector<8x65xf32>, vector<65x65xf32> -> vector<65x65xf32>
    %cst_37 = arith.constant dense<0xFF800000> : vector<65xf32>
    %127 = vector.multi_reduction <maximumf>, %126, %cst_37 [1] : vector<65x65xf32> to vector<65xf32>
    %128 = vector.shape_cast %127 : vector<65xf32> to vector<65x1xf32>
    %129 = vector.broadcast %128 : vector<65x1xf32> to vector<65x65xf32>
    %130 = arith.subf %126, %129 : vector<65x65xf32>
    %131 = math.exp %130 : vector<65x65xf32>
    %cst_38 = arith.constant dense<0.000000e+00> : vector<65xf32>
    %132 = vector.multi_reduction <add>, %131, %cst_38 [1] : vector<65x65xf32> to vector<65xf32>
    %133 = vector.shape_cast %132 : vector<65xf32> to vector<65x1xf32>
    %134 = tpu.reciprocal %133 {approx = true} : vector<65x1xf32> -> vector<65x1xf32>
    %135 = vector.broadcast %134 : vector<65x1xf32> to vector<65x65xf32>
    %136 = arith.mulf %131, %135 : vector<65x65xf32>
    %137 = vector.broadcast %123 : vector<1x8xf32> to vector<65x8xf32>
    %138 = arith.mulf %116, %137 : vector<65x8xf32>
    %cst_39 = arith.constant dense<0.000000e+00> : vector<65x8xf32>
    %139 = tpu.matmul %136, %138, %cst_39 {dimension_numbers = #tpu.dot_dimension_numbers<[1], [0], [0], [1], [0, 0, 1, 1], [], []>} : vector<65x65xf32>, vector<65x8xf32>, vector<65x8xf32> -> vector<65x8xf32>
    %c4_i32_40 = arith.constant 4 : i32
    %140 = vector.broadcast %c4_i32_40 : i32 to vector<1x8xi32>
    %141 = arith.cmpi sge, %60, %140 : vector<1x8xi32>
    %c8_i32_41 = arith.constant 8 : i32
    %142 = vector.broadcast %c8_i32_41 : i32 to vector<1x8xi32>
    %143 = arith.cmpi slt, %60, %142 : vector<1x8xi32>
    %144 = arith.andi %141, %143 : vector<1x8xi1>
    %145 = arith.extui %144 : vector<1x8xi1> to vector<1x8xi32>
    %146 = arith.sitofp %145 : vector<1x8xi32> to vector<1x8xf32>
    %147 = vector.broadcast %146 : vector<1x8xf32> to vector<65x8xf32>
    %148 = arith.mulf %113, %147 : vector<65x8xf32>
    %cst_42 = arith.constant dense<0.000000e+00> : vector<65x65xf32>
    %149 = tpu.matmul %148, %115, %cst_42 {dimension_numbers = #tpu.dot_dimension_numbers<[1], [0], [0], [1], [0, 0, 1, 1], [], []>} : vector<65x8xf32>, vector<8x65xf32>, vector<65x65xf32> -> vector<65x65xf32>
    %cst_43 = arith.constant dense<0xFF800000> : vector<65xf32>
    %150 = vector.multi_reduction <maximumf>, %149, %cst_43 [1] : vector<65x65xf32> to vector<65xf32>
    %151 = vector.shape_cast %150 : vector<65xf32> to vector<65x1xf32>
    %152 = vector.broadcast %151 : vector<65x1xf32> to vector<65x65xf32>
    %153 = arith.subf %149, %152 : vector<65x65xf32>
    %154 = math.exp %153 : vector<65x65xf32>
    %cst_44 = arith.constant dense<0.000000e+00> : vector<65xf32>
    %155 = vector.multi_reduction <add>, %154, %cst_44 [1] : vector<65x65xf32> to vector<65xf32>
    %156 = vector.shape_cast %155 : vector<65xf32> to vector<65x1xf32>
    %157 = tpu.reciprocal %156 {approx = true} : vector<65x1xf32> -> vector<65x1xf32>
    %158 = vector.broadcast %157 : vector<65x1xf32> to vector<65x65xf32>
    %159 = arith.mulf %154, %158 : vector<65x65xf32>
    %160 = vector.broadcast %146 : vector<1x8xf32> to vector<65x8xf32>
    %161 = arith.mulf %116, %160 : vector<65x8xf32>
    %cst_45 = arith.constant dense<0.000000e+00> : vector<65x8xf32>
    %162 = tpu.matmul %159, %161, %cst_45 {dimension_numbers = #tpu.dot_dimension_numbers<[1], [0], [0], [1], [0, 0, 1, 1], [], []>} : vector<65x65xf32>, vector<65x8xf32>, vector<65x8xf32> -> vector<65x8xf32>
    %163 = arith.addf %139, %162 : vector<65x8xf32>
    %c65_46 = arith.constant 65 : index
    %c0_47 = arith.constant 0 : index
    %164 = vector.load %arg8[%c65_46, %c0_47] : memref<130x8xf32, #tpu.memory_space<vmem>>, vector<65x8xf32>
    tpu.vector_store %arg8[%c65_46, %c0_47], %163 {strides = array<i32>} : memref<130x8xf32, #tpu.memory_space<vmem>>, vector<65x8xf32>,
    %c0_48 = arith.constant 0 : index
    %c0_49 = arith.constant 0 : index
    %165 = vector.load %arg8[%c0_48, %c0_49] : memref<130x8xf32, #tpu.memory_space<vmem>>, vector<130x8xf32>
    %cst_50 = arith.constant dense<0.000000e+00> : vector<130x8xf32>
    %166 = tpu.matmul %165, %14, %cst_50 {dimension_numbers = #tpu.dot_dimension_numbers<[1], [0], [0], [1], [0, 0, 1, 1], [], []>} : vector<130x8xf32>, vector<8x8xf32>, vector<130x8xf32> -> vector<130x8xf32>
    %167 = arith.addf %33, %166 : vector<130x8xf32>
    %168 = vector.broadcast %4 : vector<1x8xf32> to vector<130x8xf32>
    %169 = arith.addf %167, %168 : vector<130x8xf32>
    %cst_51 = arith.constant dense<0.000000e+00> : vector<130xf32>
    %170 = vector.multi_reduction <add>, %169, %cst_51 [1] : vector<130x8xf32> to vector<130xf32>
    %171 = vector.shape_cast %170 : vector<130xf32> to vector<130x1xf32>
    %cst_52 = arith.constant 8.000000e+00 : f32
    %172 = vector.broadcast %cst_52 : f32 to vector<130x1xf32>
    %173 = arith.divf %171, %172 : vector<130x1xf32>
    %174 = vector.broadcast %173 : vector<130x1xf32> to vector<130x8xf32>
    %175 = arith.subf %169, %174 : vector<130x8xf32>
    %176 = arith.mulf %175, %175 : vector<130x8xf32>
    %cst_53 = arith.constant dense<0.000000e+00> : vector<130xf32>
    %177 = vector.multi_reduction <add>, %176, %cst_53 [1] : vector<130x8xf32> to vector<130xf32>
    %178 = vector.shape_cast %177 : vector<130xf32> to vector<130x1xf32>
    %cst_54 = arith.constant 8.000000e+00 : f32
    %179 = vector.broadcast %cst_54 : f32 to vector<130x1xf32>
    %180 = arith.divf %178, %179 : vector<130x1xf32>
    %cst_55 = arith.constant 9.99999974E-6 : f32
    %181 = vector.broadcast %cst_55 : f32 to vector<130x1xf32>
    %182 = arith.addf %180, %181 : vector<130x1xf32>
    %183 = math.rsqrt %182 : vector<130x1xf32>
    %184 = vector.broadcast %183 : vector<130x1xf32> to vector<130x8xf32>
    %185 = arith.mulf %175, %184 : vector<130x8xf32>
    %186 = vector.broadcast %7 : vector<1x8xf32> to vector<130x8xf32>
    %187 = arith.mulf %185, %186 : vector<130x8xf32>
    %188 = vector.broadcast %8 : vector<1x8xf32> to vector<130x8xf32>
    %189 = arith.addf %187, %188 : vector<130x8xf32>
    %cst_56 = arith.constant dense<0.000000e+00> : vector<130x16xf32>
    %190 = tpu.matmul %189, %15, %cst_56 {dimension_numbers = #tpu.dot_dimension_numbers<[1], [0], [0], [1], [0, 0, 1, 1], [], []>} : vector<130x8xf32>, vector<8x16xf32>, vector<130x16xf32> -> vector<130x16xf32>
    %191 = vector.broadcast %9 : vector<1x16xf32> to vector<130x16xf32>
    %192 = arith.addf %190, %191 : vector<130x16xf32>
    %cst_57 = arith.constant 0.000000e+00 : f32
    %193 = vector.broadcast %cst_57 : f32 to vector<130x16xf32>
    %194 = arith.maximumf %192, %193 : vector<130x16xf32>
    %c0_58 = arith.constant 0 : index
    %c0_59 = arith.constant 0 : index
    %195 = vector.load %arg4[%c0_58, %c0_59] : memref<16x8xf32, #tpu.memory_space<vmem>>, vector<16x8xf32>
    %cst_60 = arith.constant dense<0.000000e+00> : vector<130x8xf32>
    %196 = tpu.matmul %194, %195, %cst_60 {dimension_numbers = #tpu.dot_dimension_numbers<[1], [0], [0], [1], [0, 0, 1, 1], [], []>} : vector<130x16xf32>, vector<16x8xf32>, vector<130x8xf32> -> vector<130x8xf32>
    %197 = arith.addf %169, %196 : vector<130x8xf32>
    %198 = vector.broadcast %10 : vector<1x8xf32> to vector<130x8xf32>
    %199 = arith.addf %197, %198 : vector<130x8xf32>
    %200 = vector.extract_strided_slice %199 {offsets = [0, 0], sizes = [1, 8], strides = [1, 1]} : vector<130x8xf32> to vector<1x8xf32>
    %201 = vector.extract_strided_slice %199 {offsets = [65, 0], sizes = [1, 8], strides = [1, 1]} : vector<130x8xf32> to vector<1x8xf32>
    %202 = tpu.concatenate %200, %201 in 0 : vector<1x8xf32>, vector<1x8xf32> -> vector<2x8xf32>
    %cst_61 = arith.constant dense<0.000000e+00> : vector<2x10xf32>
    %203 = tpu.matmul %202, %16, %cst_61 {dimension_numbers = #tpu.dot_dimension_numbers<[1], [0], [0], [1], [0, 0, 1, 1], [], []>} : vector<2x8xf32>, vector<8x10xf32>, vector<2x10xf32> -> vector<2x10xf32>
    %204 = vector.broadcast %11 : vector<1x10xf32> to vector<2x10xf32>
    %205 = arith.addf %203, %204 : vector<2x10xf32>
    %cst_62 = arith.constant dense<0xFF800000> : vector<2xf32>
    %206 = vector.multi_reduction <maximumf>, %205, %cst_62 [1] : vector<2x10xf32> to vector<2xf32>
    %207 = vector.shape_cast %206 : vector<2xf32> to vector<2x1xf32>
    %208 = vector.broadcast %207 : vector<2x1xf32> to vector<2x10xf32>
    %209 = arith.subf %205, %208 : vector<2x10xf32>
    %210 = math.exp %209 : vector<2x10xf32>
    %cst_63 = arith.constant dense<0.000000e+00> : vector<2xf32>
    %211 = vector.multi_reduction <add>, %210, %cst_63 [1] : vector<2x10xf32> to vector<2xf32>
    %212 = vector.shape_cast %211 : vector<2xf32> to vector<2x1xf32>
    %213 = vector.broadcast %212 : vector<2x1xf32> to vector<2x10xf32>
    %214 = arith.divf %210, %213 : vector<2x10xf32>
    %c0_64 = arith.constant 0 : index
    %c0_65 = arith.constant 0 : index
    %215 = vector.load %arg7[%c0_64, %c0_65] : memref<2x10xf32, #tpu.memory_space<vmem>>, vector<2x10xf32>
    tpu.vector_store %arg7[%c0_64, %c0_65], %214 {strides = array<i32>} : memref<2x10xf32, #tpu.memory_space<vmem>>, vector<2x10xf32>,
    return
  }
  func.func @transform_0(%arg0: i32) -> (i32, i32) {
    %c0_i32 = arith.constant 0 : i32
    %c0_i32_0 = arith.constant 0 : i32
    %c0_i32_1 = arith.constant 0 : i32
    return %c0_i32, %c0_i32_0 : i32, i32
  }
  func.func @transform_1(%arg0: i32) -> (i32, i32) {
    %c0_i32 = arith.constant 0 : i32
    %c0_i32_0 = arith.constant 0 : i32
    %c0_i32_1 = arith.constant 0 : i32
    return %c0_i32, %c0_i32_0 : i32, i32
  }
  func.func @transform_2(%arg0: i32) -> (i32, i32) {
    %c0_i32 = arith.constant 0 : i32
    %c0_i32_0 = arith.constant 0 : i32
    %c0_i32_1 = arith.constant 0 : i32
    return %c0_i32, %c0_i32_0 : i32, i32
  }
  func.func @transform_3(%arg0: i32) -> (i32, i32) {
    %c0_i32 = arith.constant 0 : i32
    %c0_i32_0 = arith.constant 0 : i32
    %c0_i32_1 = arith.constant 0 : i32
    return %c0_i32, %c0_i32_0 : i32, i32
  }
  func.func @transform_4(%arg0: i32) -> (i32, i32) {
    %c0_i32 = arith.constant 0 : i32
    %c0_i32_0 = arith.constant 0 : i32
    %c0_i32_1 = arith.constant 0 : i32
    return %c0_i32, %c0_i32_0 : i32, i32
  }
  func.func @transform_5(%arg0: i32) -> (i32, i32) {
    %c0_i32 = arith.constant 0 : i32
    %c0_i32_0 = arith.constant 0 : i32
    %c0_i32_1 = arith.constant 0 : i32
    return %c0_i32, %c0_i32_0 : i32, i32
  }
  func.func @transform_6(%arg0: i32) -> (i32, i32) {
    %c0_i32 = arith.constant 0 : i32
    %c0_i32_0 = arith.constant 0 : i32
    %c0_i32_1 = arith.constant 0 : i32
    return %c0_i32, %c0_i32_0 : i32, i32
  }
}

</mosaic_0001>

<bundles_post_ra>
// kernel: abc_net_forward.1
= control target key start
LH: loop header
LB: loop body
LE: loop exit
PB: predicated region body
PF: predicated region fallthrough
CT: control target
= control target key end

     0   :  { %vm102_vm0 = vcmask 1043456   ;;  %vm53_vm1 = vcmask 293888   ;;  %s5099_s11 = smov 120   ;;  %s7267_s0 = inlined_call_operand.vmem [shape: f32[128,36], index: 0, kind: input, shape index: {}]   ;;  %s7268_s1 = inlined_call_operand.vmem [shape: f32[36,8], index: 1, kind: input, shape index: {}]   ;;  %s7269_s2 = inlined_call_operand.vmem [shape: f32[8,58], index: 2, kind: input, shape index: {}]   ;;  %s7270_s3 = inlined_call_operand.vmem [shape: f32[16,8], index: 3, kind: input, shape index: {}]   ;;  %s7271_s4 = inlined_call_operand.vmem [shape: f32[1,114], index: 4, kind: input, shape index: {}]   ;;  %s7272_s5 = inlined_call_operand.vmem [shape: f32[64,8], index: 5, kind: input, shape index: {}]   ;;  %s7273_s6 = inlined_call_operand.hbm [shape: f32[2,10], index: 6, kind: output, shape index: {}]  }
   0x1   :  { %v46_v0 = vld [vmem:[%s7268_s1 + $0x20] sm:$0xf]  ;;  %v45_v1 = vld [vmem:[%s7268_s1 + $0x18] sm:$0xff]  ;;  %v44_v3 = vld [vmem:[%s7268_s1 + $0x10] sm:$0xff] }
   0x2   :  { %4206 = vmatprep.subr.msk.mxu0 %vm102_vm0, %v46_v0  ;;  %v26_v2 = vld [vmem:[%s7267_s0] sm:$0xff]  ;;  %v43_v4 = vld [vmem:[%s7268_s1 + $0x8] sm:$0xff] }
   0x3   :  { %4207 = vmatpush3.msk.msra.mxu0 %vm102_vm0, %v46_v0  ;;  %4216 = vmatprep.mubr.msk.f32.mxu0 %vm53_vm1, %v26_v2  ;;  %v5169_v5 = vld [vmem:[%s7271_s4] ss:$0 sm:$0xff] }
   0x4   :  { %4208 = vmatprep.subr.mxu0 %v45_v1  ;;  %v42_v6 = vld [vmem:[%s7268_s1] sm:$0xff]  ;;  %275 = vrot.lane.b32.xlu0 %v5169_v5, %s5099_s11 }
   0x5   :  { %4209 = vmatpush3.msra.mxu0 %v45_v1 }
   0x6   :  { %4210 = vmatprep.subr.mxu0 %v44_v3 }
   0x7   :  { %4211 = vmatpush3.msra.mxu0 %v44_v3 }
   0x8   :  { %11 = vsyncpa [#allocation4], 0  ;;  %4212 = vmatprep.subr.mxu0 %v43_v4  ;;  %v27_v7 = vld [vmem:[%s7267_s0 + $0x8] sm:$0xff]  ;;  %v28_v8 = vld [vmem:[%s7267_s0 + $0x10] sm:$0xff]  ;;  %vm278_vm2 = vcmask 57344   ;;  %vm288_vm3 = vcmask 64512  }
   0x9   :  { %4213 = vmatpush3.msra.mxu0 %v43_v4  ;;  %v29_v9 = vld [vmem:[%s7267_s0 + $0x18] sm:$0xff]  ;;  %v30_v10 = vld [vmem:[%s7267_s0 + $0x20] sm:$0xff]  ;;  %v31_v11 = vld [vmem:[%s7267_s0 + $0x28] sm:$0xff]  ;;  %vm5101_vm4 = vmmov 0   ;;  %s5102_s9 = smov 72   ;;  %s5103_s10 = smov 80  }
   0xa   :  { %4214 = vmatprep.subr.mxu0 %v42_v6  ;;  %v32_v12 = vld [vmem:[%s7267_s0 + $0x30] sm:$0xff]  ;;  %v33_v13 = vld [vmem:[%s7267_s0 + $0x38] sm:$0xff]  ;;  %v34_v14 = vld [vmem:[%s7267_s0 + $0x40] sm:$0xff]  ;;  %vm379_vm5 = vcmask 58368   ;;  %s5104_s12 = smov 112   ;;  %s5105_s13 = smov 16  }
   0xb   :  { %4215 = vmatpush3.msra.mxu0 %v42_v6  ;;  %v35_v15 = vld [vmem:[%s7267_s0 + $0x48] sm:$0xff]  ;;  %v36_v16 = vld [vmem:[%s7267_s0 + $0x50] sm:$0xff]  ;;  %v37_v17 = vld [vmem:[%s7267_s0 + $0x58] sm:$0xff]  ;;  %vm1747_vm10 = vcmask 1046528   ;;  %vm1435_vm11 = vcmask 1040384   ;;  %vm996_vm12 = vcmask 531456  }
   0xc   :  { %4217 = vmatmul.mubr.msk.f32.vlgmr.msra.gmra.mxu0 %vm53_vm1, %v27_v7  ;;  %v38_v18 = vld [vmem:[%s7267_s0 + $0x60] sm:$0xff]  ;;  %v39_v19 = vld [vmem:[%s7267_s0 + $0x68] sm:$0xff]  ;;  %v40_v21 = vld [vmem:[%s7267_s0 + $0x70] sm:$0xff]  ;;  %vm1021_vm13 = vcmask 524288   ;;  %s5106_s15 = smov 104   ;;  %s5107_s17 = smov 88  }
   0xd   :  { %4219 = vmatprep.mubr.msk.f32.mxu0 %vm53_vm1, %v28_v8  ;;  %v41_v22 = vld [vmem:[%s7267_s0 + $0x78] sm:$0xff]  ;;  %v268_v25 = vld [vmem:[%s7272_s5 + $0x8] sm:$0xff]  ;;  %v5246_v29 = vld [vmem:[%s7272_s5] sm:$0xff]  ;;  %s5109_s18 = smov 96   ;;  %s5110_s19 = smov 56   ;;  %vm3464_vm14 = vcmask 130048  }
   0xe   :  { %v270_v34 = vld [vmem:[%s7272_s5 + $0x18] sm:$0xff]  ;;  %v269_v39 = vld [vmem:[%s7272_s5 + $0x10] sm:$0xff]  ;;  %v5263_v44 = vld [vmem:[%s7272_s5 + $0x28] sm:$0xff]  ;;  %s5111_s20 = smov 48   ;;  %s5113_s26 = smov 24   ;;  %vm3738_vm15 = vcmask 74752  }
   0xf   :  { %v5270_v49 = vld [vmem:[%s7272_s5 + $0x20] sm:$0xff]  ;;  %v5278_v54 = vld [vmem:[%s7272_s5 + $0x38] sm:$0xff]  ;;  %v5286_v59 = vld [vmem:[%s7272_s5 + $0x30] sm:$0xff] }
  0x10   :  { %4220 = vmatmul.mubr.msk.f32.gmra.mxu0 %vm53_vm1, %v29_v9 }
  0x11   :  { %4222 = vmatprep.mubr.msk.f32.mxu0 %vm53_vm1, %v30_v10 }
  0x14   :  { %4223 = vmatmul.mubr.msk.f32.gmra.mxu0 %vm53_vm1, %v31_v11 }
  0x15   :  { %4225 = vmatprep.mubr.msk.f32.mxu0 %vm53_vm1, %v32_v12 }
  0x18   :  { %4226 = vmatmul.mubr.msk.f32.gmra.mxu0 %vm53_vm1, %v33_v13 }
  0x19   :  { %4228 = vmatprep.mubr.msk.f32.mxu0 %vm53_vm1, %v34_v14 }
  0x1c   :  { %4229 = vmatmul.mubr.msk.f32.gmra.mxu0 %vm53_vm1, %v35_v15 }
  0x1d   :  { %4231 = vmatprep.mubr.msk.f32.mxu0 %vm53_vm1, %v36_v16 }
  0x20   :  { %4232 = vmatmul.mubr.msk.f32.gmra.mxu0 %vm53_vm1, %v37_v17 }
  0x21   :  { %4234 = vmatprep.mubr.msk.f32.mxu0 %vm53_vm1, %v38_v18 }
  0x24   :  { %4235 = vmatmul.mubr.msk.f32.gmra.mxu0 %vm53_vm1, %v39_v19 }
  0x25   :  { %4237 = vmatprep.mubr.msk.f32.mxu0 %vm53_vm1, %v40_v21 }
  0x28   :  { %4238 = vmatmul.mubr.msk.f32.gmra.mxu0 %vm53_vm1, %v41_v22 }
  0x76   :  { %v276_v20 = vpop.permute.xlu0 %275 }
  0x77   :  { %279 = vst.msk [vmem:[#allocation2] sm:$0x1] %vm278_vm2, %v276_v20  ;;  %297 = vst.msk [vmem:[#allocation2 + $0x41] sm:$0x1] %vm278_vm2, %v276_v20 }
  0xcc   :  { %v4218_v23 = vpop.f32.mrf.mxu0 }
  0xcd   :  { %v178_v24 = vadd.f32 %v4218_v23, %v5169_v5 }
  0xce   :  { %v172_v26 = vpop.f32.mrf.mxu0 }
  0xcf   :  { %v252_v27 = vmax.f32 %v178_v24, 0.0  ;;  %v173_v28 = vadd.f32 %v5169_v5, %v172_v26 }
  0xd0   :  { %v4221_v30 = vpop.f32.mrf.mxu0 }
  0xd1   :  { %v281_v31 = vadd.f32 %v268_v25, %v252_v27  ;;  %v251_v32 = vmax.f32 %v173_v28, 0.0  ;;  %v188_v33 = vadd.f32 %v4221_v30, %v5169_v5 }
  0xd2   :  { %v182_v35 = vpop.f32.mrf.mxu0 }
  0xd3   :  { %290 = vst.msk [vmem:[#allocation2 + $0x9] sm:$0xff] %vm288_vm3, %v281_v31  ;;  %v280_v36 = vadd.f32 %v5246_v29, %v251_v32  ;;  %v254_v37 = vmax.f32 %v188_v33, 0.0  ;;  %v183_v38 = vadd.f32 %v5169_v5, %v182_v35 }
  0xd4   :  { %v4224_v40 = vpop.f32.mrf.mxu0 }
  0xd5   :  { %289 = vst.msk [vmem:[#allocation2 + $0x1] sm:$0xff] %vm288_vm3, %v280_v36  ;;  %v283_v41 = vadd.f32 %v270_v34, %v254_v37  ;;  %v253_v42 = vmax.f32 %v183_v38, 0.0  ;;  %v198_v43 = vadd.f32 %v4224_v40, %v5169_v5 }
  0xd6   :  { %v192_v45 = vpop.f32.mrf.mxu0 }
  0xd7   :  { %292 = vst.msk [vmem:[#allocation2 + $0x19] sm:$0xff] %vm288_vm3, %v283_v41  ;;  %v282_v46 = vadd.f32 %v269_v39, %v253_v42  ;;  %v256_v47 = vmax.f32 %v198_v43, 0.0  ;;  %v193_v48 = vadd.f32 %v5169_v5, %v192_v45 }
  0xd8   :  { %v4227_v50 = vpop.f32.mrf.mxu0 }
  0xd9   :  { %291 = vst.msk [vmem:[#allocation2 + $0x11] sm:$0xff] %vm288_vm3, %v282_v46  ;;  %v285_v51 = vadd.f32 %v5263_v44, %v256_v47  ;;  %v255_v52 = vmax.f32 %v193_v48, 0.0  ;;  %v208_v53 = vadd.f32 %v4227_v50, %v5169_v5 }
  0xda   :  { %v202_v55 = vpop.f32.mrf.mxu0 }
  0xdb   :  { %294 = vst.msk [vmem:[#allocation2 + $0x29] sm:$0xff] %vm288_vm3, %v285_v51  ;;  %v284_v56 = vadd.f32 %v5270_v49, %v255_v52  ;;  %v258_v57 = vmax.f32 %v208_v53, 0.0  ;;  %v203_v58 = vadd.f32 %v5169_v5, %v202_v55 }
  0xdc   :  { %v4230_v60 = vpop.f32.mrf.mxu0  ;;  %v5288_v61 = vld [vmem:[#allocation2 + $0x8] sm:$0xff]  ;;  %v5290_v62 = vld [vmem:[#allocation2] sm:$0xff] }
  0xdd   :  { %7308 = vst [vmem:[#allocation6_spill] sm:$0xff] %v5288_v61  ;;  %7309 = vst [vmem:[#allocation7_spill] sm:$0xff] %v5290_v62  ;;  %v287_v63 = vadd.f32 %v5278_v54, %v258_v57  ;;  %v257_v0 = vmax.f32 %v203_v58, 0.0  ;;  %v218_v1 = vadd.f32 %v4230_v60, %v5169_v5  ;;  %v334_v2 = vsel %vm288_vm3, %v5288_v61, 0.0 }
  0xde   :  { %293 = vst.msk [vmem:[#allocation2 + $0x21] sm:$0xff] %vm288_vm3, %v284_v56  ;;  %v212_v3 = vpop.f32.mrf.mxu0  ;;  %335 = vadd.xlane.f32.xlu1 %v334_v2  ;;  %v331_v4 = vsel %vm288_vm3, %v5290_v62, 0.0 }
  0xdf   :  { %296 = vst.msk [vmem:[#allocation2 + $0x39] sm:$0xff] %vm288_vm3, %v287_v63  ;;  %v286_v6 = vadd.f32 %v5286_v59, %v257_v0  ;;  %v260_v7 = vmax.f32 %v218_v1, 0.0  ;;  %v213_v8 = vadd.f32 %v5169_v5, %v212_v3  ;;  %332 = vadd.xlane.f32.xlu0 %v331_v4 }
  0xe0   :  { %v5302_v9 = vld [vmem:[#allocation2 + $0x10] sm:$0xff]  ;;  %v4233_v10 = vpop.f32.mrf.mxu0  ;;  %v5308_v15 = vld [vmem:[#allocation2 + $0x18] sm:$0xff] }
  0xe1   :  { %7310 = vst [vmem:[#allocation8_spill] sm:$0xff] %v5302_v9  ;;  %295 = vst.msk [vmem:[#allocation2 + $0x31] sm:$0xff] %vm288_vm3, %v286_v6  ;;  %v299_v11 = vadd.f32 %v268_v25, %v260_v7  ;;  %v259_v12 = vmax.f32 %v213_v8, 0.0  ;;  %v337_v13 = vsel %vm288_vm3, %v5302_v9, 0.0  ;;  %v228_v14 = vadd.f32 %v4233_v10, %v5169_v5 }
  0xe2   :  { %338 = vadd.xlane.f32.xlu1 %v337_v13  ;;  %7311 = vst [vmem:[#allocation9_spill] sm:$0xff] %v5308_v15  ;;  %v222_v16 = vpop.f32.mrf.mxu0  ;;  %v340_v21 = vsel %vm288_vm3, %v5308_v15, 0.0 }
  0xe3   :  { %307 = vst.msk [vmem:[#allocation2 + $0x4a] sm:$0xff] %vm288_vm3, %v299_v11  ;;  %v298_v17 = vadd.f32 %v5246_v29, %v259_v12  ;;  %v262_v18 = vmax.f32 %v228_v14, 0.0  ;;  %v223_v19 = vadd.f32 %v5169_v5, %v222_v16 }
  0xe5   :  { %306 = vst.msk [vmem:[#allocation2 + $0x42] sm:$0xff] %vm288_vm3, %v298_v17  ;;  %v301_v20 = vadd.f32 %v270_v34, %v262_v18  ;;  %v261_v22 = vmax.f32 %v223_v19, 0.0  ;;  %v5316_v23 = vld [vmem:[#allocation2 + $0x20] sm:$0xff]  ;;  %v5322_v26 = vld [vmem:[#allocation2 + $0x28] sm:$0xff]  ;;  %v4236_v34 = vpop.f32.mrf.mxu0 }
  0xe6   :  { %341 = vadd.xlane.f32.xlu1 %v340_v21  ;;  %7312 = vst [vmem:[#allocation10_spill] sm:$0xff] %v5316_v23  ;;  %v343_v25 = vsel %vm288_vm3, %v5316_v23, 0.0  ;;  %7313 = vst [vmem:[#allocation11_spill] sm:$0xff] %v5322_v26  ;;  %v346_v27 = vsel %vm288_vm3, %v5322_v26, 0.0  ;;  %v238_v35 = vadd.f32 %v4236_v34, %v5169_v5 }
  0xe7   :  { %309 = vst.msk [vmem:[#allocation2 + $0x5a] sm:$0xff] %vm288_vm3, %v301_v20  ;;  %v300_v24 = vadd.f32 %v269_v39, %v261_v22  ;;  %v232_v36 = vpop.f32.mrf.mxu0 }
  0xe8   :  { %v5326_v28 = vld [vmem:[#allocation2 + $0x30] sm:$0xff]  ;;  %v5330_v30 = vld [vmem:[#allocation2 + $0x38] sm:$0xff]  ;;  %v264_v37 = vmax.f32 %v238_v35, 0.0  ;;  %v233_v38 = vadd.f32 %v5169_v5, %v232_v36 }
  0xe9   :  { %308 = vst.msk [vmem:[#allocation2 + $0x52] sm:$0xff] %vm288_vm3, %v300_v24  ;;  %7314 = vst [vmem:[#allocation12_spill] sm:$0xff] %v5326_v28  ;;  %v349_v29 = vsel %vm288_vm3, %v5326_v28, 0.0  ;;  %v352_v31 = vsel %vm288_vm3, %v5330_v30, 0.0  ;;  %v4239_v42 = vpop.f32.mrf.mxu0 }
  0xea   :  { %344 = vadd.xlane.f32.xlu1 %v343_v25  ;;  %7315 = vst [vmem:[#allocation13_spill] sm:$0xff] %v5330_v30  ;;  %v303_v39 = vadd.f32 %v5263_v44, %v264_v37  ;;  %v263_v40 = vmax.f32 %v233_v38, 0.0  ;;  %v248_v43 = vadd.f32 %v4239_v42, %v5169_v5  ;;  %v7278_v42 = vmov 0.0  }
  0xeb   :  { %v242_v45 = vpop.f32.mrf.mxu0  ;;  %4240 = vmatprep.subr.mxu1 %v7278_v42  ;;  %4242 = vmatprep.mubr.msk.f32.mxu1 %vm5101_vm4, %v7278_v42 }
  0xec   :  { %v5334_v32 = vld [vmem:[#allocation2 + $0x40] sm:$0xff]  ;;  %311 = vst.msk [vmem:[#allocation2 + $0x6a] sm:$0xff] %vm288_vm3, %v303_v39  ;;  %v302_v41 = vadd.f32 %v5270_v49, %v263_v40  ;;  %v266_v46 = vmax.f32 %v248_v43, 0.0  ;;  %v243_v47 = vadd.f32 %v5169_v5, %v242_v45  ;;  %4293 = vmatprep.subr.mxu0 %v7278_v42  ;;  %4311 = vmatprep.mubr.msk.f32.mxu0 %vm5101_vm4, %v7278_v42 }
  0xed   :  { %7316 = vst [vmem:[#allocation14_spill] sm:$0xff] %v5334_v32  ;;  %v355_v33 = vsel %vm288_vm3, %v5334_v32, 0.0 }
  0xee   :  { %347 = vadd.xlane.f32.xlu1 %v346_v27  ;;  %310 = vst.msk [vmem:[#allocation2 + $0x62] sm:$0xff] %vm288_vm3, %v302_v41  ;;  %v305_v48 = vadd.f32 %v5278_v54, %v266_v46  ;;  %v265_v50 = vmax.f32 %v243_v47, 0.0  ;;  %v25_v41 = vld [vmem:[%s7269_s2] sm:$0xff]  ;;  %v5423_v47 = vld [vmem:[#allocation2 + $0x48] sm:$0xff] }
  0xef   :  { %4241 = vmatpush3.msra.mxu1 %v25_v41  ;;  %7319 = vst [vmem:[#allocation17_spill] sm:$0xff] %v5423_v47 }
  0xf0   :  { %313 = vst.msk [vmem:[#allocation2 + $0x7a] sm:$0xff] %vm288_vm3, %v305_v48  ;;  %v304_v44 = vadd.f32 %v5286_v59, %v265_v50  ;;  %4338 = vmatprep.subr.mxu1 %v7278_v42  ;;  %v5417_v43 = vld [vmem:[#allocation2 + $0x50] sm:$0xff]  ;;  %v5419_v45 = vld [vmem:[#allocation2 + $0x58] sm:$0xff] }
  0xf1   :  { %7317 = vst [vmem:[#allocation15_spill] sm:$0xff] %v5417_v43  ;;  %7318 = vst [vmem:[#allocation16_spill] sm:$0xff] %v5419_v45  ;;  %v361_v46 = vsel %vm288_vm3, %v5417_v43, 0.0  ;;  %v364_v48 = vsel %vm288_vm3, %v5419_v45, 0.0 }
  0xf2   :  { %350 = vadd.xlane.f32.xlu1 %v349_v29  ;;  %312 = vst.msk [vmem:[#allocation2 + $0x72] sm:$0xff] %vm288_vm3, %v304_v44  ;;  %v358_v44 = vsel %vm288_vm3, %v5423_v47, 0.0 }
  0xf5   :  { %v5427_v50 = vld [vmem:[#allocation2 + $0x60] sm:$0xff] }
  0xf6   :  { %353 = vadd.xlane.f32.xlu1 %v352_v31  ;;  %7320 = vst [vmem:[#allocation18_spill] sm:$0xff] %v5427_v50 }
  0xfa   :  { %356 = vadd.xlane.f32.xlu1 %v355_v33 }
 0x167   :  { %v336_v51 = vpop.xlane.xlu1 %335 }
 0x168   :  { %v385_v49 = vmul.f32 0.125, %v336_v51  ;;  %v333_v52 = vpop.xlane.xlu0 %332  ;;  %v367_v51 = vsel %vm288_vm3, %v5427_v50, 0.0 }
 0x169   :  { %v384_v53 = vmul.f32 0.125, %v333_v52 }
 0x16a   :  { %v5351_v55 = vsub.f32 %v5288_v61, %v385_v49  ;;  %v5433_v49 = vld [vmem:[#allocation2 + $0x68] sm:$0xff] }
 0x16b   :  { %v5354_v56 = vsub.f32 %v5290_v62, %v384_v53  ;;  %v339_v57 = vpop.xlane.xlu1 %338  ;;  %7321 = vst [vmem:[#allocation19_spill] sm:$0xff] %v5433_v49  ;;  %v370_v52 = vsel %vm288_vm3, %v5433_v49, 0.0  ;;  %v5437_v53 = vld [vmem:[#allocation2 + $0x70] sm:$0xff] }
 0x16c   :  { %v386_v58 = vmul.f32 0.125, %v339_v57  ;;  %v419_v54 = vmul.f32 %v5351_v55, %v5351_v55  ;;  %7322 = vst [vmem:[#allocation20_spill] sm:$0xff] %v5437_v53  ;;  %v373_v57 = vsel %vm288_vm3, %v5437_v53, 0.0 }
 0x16d   :  { %v418_v59 = vmul.f32 %v5354_v56, %v5354_v56 }
 0x16e   :  { %v5361_v60 = vsub.f32 %v5302_v9, %v386_v58  ;;  %v438_v63 = vsel %vm288_vm3, %v419_v54, 0.0  ;;  %v5441_v58 = vld [vmem:[#allocation2 + $0x78] sm:$0xff] }
 0x16f   :  { %v342_v0 = vpop.xlane.xlu1 %341  ;;  %439 = vadd.xlane.f32.xlu0 %v438_v63  ;;  %v435_v1 = vsel %vm288_vm3, %v418_v59, 0.0  ;;  %7323 = vst [vmem:[#allocation21_spill] sm:$0xff] %v5441_v58  ;;  %v376_v54 = vsel %vm288_vm3, %v5441_v58, 0.0  ;;  %v5445_v59 = vld [vmem:[#allocation2 + $0x80] sm:$0x3] }
 0x170   :  { %v387_v2 = vmul.f32 0.125, %v342_v0  ;;  %436 = vadd.xlane.f32.xlu1 %v435_v1  ;;  %v420_v3 = vmul.f32 %v5361_v60, %v5361_v60  ;;  %7324 = vst [vmem:[#allocation22_spill] sm:$0xff] %v5445_v59  ;;  %v380_v63 = vsel %vm379_vm5, %v5445_v59, 0.0 }
 0x172   :  { %v5368_v4 = vsub.f32 %v5308_v15, %v387_v2  ;;  %v441_v6 = vsel %vm288_vm3, %v420_v3, 0.0 }
 0x173   :  { %v345_v7 = vpop.xlane.xlu1 %344 }
 0x174   :  { %v388_v8 = vmul.f32 0.125, %v345_v7  ;;  %442 = vadd.xlane.f32.xlu1 %v441_v6  ;;  %v421_v10 = vmul.f32 %v5368_v4, %v5368_v4 }
 0x176   :  { %v5374_v11 = vsub.f32 %v5316_v23, %v388_v8  ;;  %v444_v12 = vsel %vm288_vm3, %v421_v10, 0.0 }
 0x177   :  { %v348_v13 = vpop.xlane.xlu1 %347  ;;  %445 = vadd.xlane.f32.xlu0 %v444_v12 }
 0x178   :  { %v389_v14 = vmul.f32 0.125, %v348_v13  ;;  %v422_v16 = vmul.f32 %v5374_v11, %v5374_v11 }
 0x17a   :  { %v5380_v17 = vsub.f32 %v5322_v26, %v389_v14  ;;  %v447_v18 = vsel %vm288_vm3, %v422_v16, 0.0 }
 0x17b   :  { %v351_v19 = vpop.xlane.xlu1 %350  ;;  %448 = vadd.xlane.f32.xlu1 %v447_v18 }
 0x17c   :  { %v390_v20 = vmul.f32 0.125, %v351_v19  ;;  %v423_v21 = vmul.f32 %v5380_v17, %v5380_v17 }
 0x17e   :  { %v5386_v22 = vsub.f32 %v5326_v28, %v390_v20  ;;  %v450_v24 = vsel %vm288_vm3, %v423_v21, 0.0 }
 0x17f   :  { %v354_v25 = vpop.xlane.xlu1 %353  ;;  %451 = vadd.xlane.f32.xlu0 %v450_v24 }
 0x180   :  { %v391_v27 = vmul.f32 0.125, %v354_v25  ;;  %v424_v29 = vmul.f32 %v5386_v22, %v5386_v22 }
 0x182   :  { %v5392_v31 = vsub.f32 %v5330_v30, %v391_v27  ;;  %v453_v33 = vsel %vm288_vm3, %v424_v29, 0.0 }
 0x183   :  { %v357_v34 = vpop.xlane.xlu1 %356  ;;  %454 = vadd.xlane.f32.xlu1 %v453_v33 }
 0x184   :  { %v392_v35 = vmul.f32 0.125, %v357_v34  ;;  %v425_v36 = vmul.f32 %v5392_v31, %v5392_v31 }
 0x186   :  { %v5398_v37 = vsub.f32 %v5334_v32, %v392_v35  ;;  %v456_v38 = vsel %vm288_vm3, %v425_v36, 0.0 }
 0x187   :  { %457 = vadd.xlane.f32.xlu0 %v456_v38 }
 0x188   :  { %v426_v39 = vmul.f32 %v5398_v37, %v5398_v37 }
 0x18a   :  { %v459_v40 = vsel %vm288_vm3, %v426_v39, 0.0 }
 0x18b   :  { %460 = vadd.xlane.f32.xlu1 %v459_v40 }
 0x19c   :  { %574 = vrot.lane.b32.xlu1 %v5169_v5, %s5102_s9 }
 0x19d   :  { %554 = vrot.lane.b32.xlu0 %v5169_v5, %s5103_s10 }
 0x1bc   :  { %362 = vadd.xlane.f32.xlu0 %v361_v46 }
 0x1c0   :  { %365 = vadd.xlane.f32.xlu0 %v364_v48  ;;  %359 = vadd.xlane.f32.xlu1 %v358_v44 }
 0x1c4   :  { %368 = vadd.xlane.f32.xlu1 %v367_v51 }
 0x1c8   :  { %371 = vadd.xlane.f32.xlu1 %v370_v52 }
 0x1cc   :  { %374 = vadd.xlane.f32.xlu1 %v373_v57 }
 0x1d0   :  { %377 = vadd.xlane.f32.xlu1 %v376_v54 }
 0x1d4   :  { %381 = vadd.xlane.f32.xlu1 %v380_v63 }
 0x1d6   :  { %594 = vrot.lane.b32.xlu0 %v5169_v5, %s5104_s12 }
 0x1f8   :  { %v440_v2 = vpop.xlane.xlu0 %439 }
 0x1f9   :  { %v437_v0 = vpop.xlane.xlu1 %436  ;;  %v487_v3 = vmul.f32 0.125, %v440_v2 }
 0x1fa   :  { %v486_v1 = vmul.f32 0.125, %v437_v0 }
 0x1fb   :  { %v504_v8 = vadd.f32 1e-05, %v487_v3 }
 0x1fc   :  { %v503_v6 = vadd.f32 1e-05, %v486_v1 }
 0x1fd   :  { %v443_v7 = vpop.xlane.xlu1 %442 }
 0x1fe   :  { %4858 = vrsqrt.f32 %v503_v6  ;;  %v488_v12 = vmul.f32 0.125, %v443_v7 }
 0x1ff   :  { %4860 = vrsqrt.f32 %v504_v8 }
 0x200   :  { %v446_v10 = vpop.xlane.xlu0 %445  ;;  %v505_v16 = vadd.f32 1e-05, %v488_v12 }
 0x201   :  { %v489_v14 = vmul.f32 0.125, %v446_v10 }
 0x202   :  { %4862 = vrsqrt.f32 %v505_v16 }
 0x203   :  { %v506_v20 = vadd.f32 1e-05, %v489_v14 }
 0x204   :  { %v449_v13 = vpop.xlane.xlu1 %448 }
 0x205   :  { %v490_v18 = vmul.f32 0.125, %v449_v13  ;;  %4864 = vrsqrt.f32 %v506_v20 }
 0x207   :  { %v507_v21 = vadd.f32 1e-05, %v490_v18 }
 0x208   :  { %v452_v19 = vpop.xlane.xlu0 %451 }
 0x209   :  { %v491_v5 = vmul.f32 0.125, %v452_v19  ;;  %4866 = vrsqrt.f32 %v507_v21 }
 0x20b   :  { %v508_v27 = vadd.f32 1e-05, %v491_v5  ;;  %v4859_v33 = vpop.eup %4858 }
 0x20c   :  { %v455_v24 = vpop.xlane.xlu1 %454  ;;  %v4861_v36 = vpop.eup %4860  ;;  %v537_v40 = vmul.f32 %v4859_v33, %v5354_v56 }
 0x20d   :  { %v492_v29 = vmul.f32 0.125, %v455_v24  ;;  %4868 = vrsqrt.f32 %v508_v27  ;;  %v538_v48 = vmul.f32 %v4861_v36, %v5351_v55 }
 0x20f   :  { %v509_v38 = vadd.f32 1e-05, %v492_v29  ;;  %v4863_v57 = vpop.eup %4862 }
 0x210   :  { %v458_v25 = vpop.xlane.xlu0 %457  ;;  %v539_v55 = vmul.f32 %v4863_v57, %v5361_v60 }
 0x211   :  { %v493_v39 = vmul.f32 0.125, %v458_v25  ;;  %4870 = vrsqrt.f32 %v509_v38 }
 0x212   :  { %v4865_v63 = vpop.eup %4864 }
 0x213   :  { %v510_v44 = vadd.f32 1e-05, %v493_v39  ;;  %v540_v3 = vmul.f32 %v4865_v63, %v5368_v4 }
 0x214   :  { %v461_v34 = vpop.xlane.xlu1 %460  ;;  %v5451_v35 = vpop.permute.xlu0 %554 }
 0x215   :  { %v557_v41 = vmul.f32 %v5451_v35, %v537_v40  ;;  %v494_v51 = vmul.f32 0.125, %v461_v34  ;;  %v558_v54 = vmul.f32 %v5451_v35, %v538_v48  ;;  %4872 = vrsqrt.f32 %v510_v44 }
 0x216   :  { %v4867_v1 = vpop.eup %4866  ;;  %v559_v2 = vmul.f32 %v5451_v35, %v539_v55  ;;  %v560_v60 = vmul.f32 %v5451_v35, %v540_v3 }
 0x217   :  { %v511_v56 = vadd.f32 1e-05, %v494_v51  ;;  %v541_v7 = vmul.f32 %v4867_v1, %v5374_v11 }
 0x218   :  { %v5455_v46 = vpop.permute.xlu1 %574 }
 0x219   :  { %v577_v52 = vadd.f32 %v5455_v46, %v557_v41  ;;  %v578_v0 = vadd.f32 %v5455_v46, %v558_v54  ;;  %4874 = vrsqrt.f32 %v511_v56  ;;  %v579_v6 = vadd.f32 %v5455_v46, %v559_v2 }
 0x21a   :  { %v4869_v8 = vpop.eup %4868  ;;  %v580_v10 = vadd.f32 %v5455_v46, %v560_v60  ;;  %v561_v4 = vmul.f32 %v5451_v35, %v541_v7 }
 0x21b   :  { %4243 = vmatmul.mubr.msk.f32.vlgmr.msra.gmra.mxu1 %vm288_vm3, %v577_v52  ;;  %v542_v12 = vmul.f32 %v4869_v8, %v5380_v17 }
 0x21c   :  { %4245 = vmatprep.mubr.msk.f32.mxu1 %vm5101_vm4, %v7278_v42  ;;  %v581_v11 = vadd.f32 %v5455_v46, %v561_v4 }
 0x21d   :  { %v562_v14 = vmul.f32 %v5451_v35, %v542_v12 }
 0x21e   :  { %v4871_v13 = vpop.eup %4870 }
 0x21f   :  { %4246 = vmatmul.mubr.msk.f32.gmra.mxu1 %vm288_vm3, %v578_v0  ;;  %v543_v16 = vmul.f32 %v4871_v13, %v5386_v22  ;;  %v582_v17 = vadd.f32 %v5455_v46, %v562_v14 }
 0x220   :  { %4248 = vmatprep.mubr.msk.f32.mxu1 %vm5101_vm4, %v7278_v42 }
 0x221   :  { %v563_v19 = vmul.f32 %v5451_v35, %v543_v16 }
 0x222   :  { %v4873_v18 = vpop.eup %4872 }
 0x223   :  { %4249 = vmatmul.mubr.msk.f32.gmra.mxu1 %vm288_vm3, %v579_v6  ;;  %v544_v20 = vmul.f32 %v4873_v18, %v5392_v31  ;;  %v583_v22 = vadd.f32 %v5455_v46, %v563_v19 }
 0x224   :  { %4251 = vmatprep.mubr.msk.f32.mxu1 %vm5101_vm4, %v7278_v42 }
 0x225   :  { %v564_v5 = vmul.f32 %v5451_v35, %v544_v20 }
 0x226   :  { %v4875_v21 = vpop.eup %4874 }
 0x227   :  { %4252 = vmatmul.mubr.msk.f32.gmra.mxu1 %vm288_vm3, %v580_v10  ;;  %v545_v24 = vmul.f32 %v4875_v21, %v5398_v37  ;;  %v584_v25 = vadd.f32 %v5455_v46, %v564_v5 }
 0x228   :  { %4254 = vmatprep.mubr.msk.f32.mxu1 %vm5101_vm4, %v7278_v42 }
 0x229   :  { %v565_v31 = vmul.f32 %v5451_v35, %v545_v24 }
 0x22b   :  { %4255 = vmatmul.mubr.msk.f32.gmra.mxu1 %vm288_vm3, %v581_v11  ;;  %v585_v27 = vadd.f32 %v5455_v46, %v565_v31 }
 0x22c   :  { %4257 = vmatprep.mubr.msk.f32.mxu1 %vm5101_vm4, %v7278_v42 }
 0x22f   :  { %4258 = vmatmul.mubr.msk.f32.gmra.mxu1 %vm288_vm3, %v582_v17 }
 0x230   :  { %4260 = vmatprep.mubr.msk.f32.mxu1 %vm5101_vm4, %v7278_v42 }
 0x233   :  { %4261 = vmatmul.mubr.msk.f32.gmra.mxu1 %vm288_vm3, %v583_v22 }
 0x234   :  { %4263 = vmatprep.mubr.msk.f32.mxu1 %vm5101_vm4, %v7278_v42 }
 0x237   :  { %4264 = vmatmul.mubr.msk.f32.gmra.mxu1 %vm288_vm3, %v584_v25 }
 0x238   :  { %4266 = vmatprep.mubr.msk.f32.mxu1 %vm5101_vm4, %v7278_v42 }
 0x23b   :  { %4267 = vmatmul.mubr.msk.f32.gmra.mxu1 %vm288_vm3, %v585_v27 }
 0x23c   :  { %4269 = vmatprep.mubr.msk.f32.mxu1 %vm5101_vm4, %v7278_v42 }
 0x245   :  { %v363_v37 = vpop.xlane.xlu0 %362 }
 0x246   :  { %v394_v29 = vmul.f32 0.125, %v363_v37 }
 0x248   :  { %v411_v33 = vsub.f32 %v5417_v43, %v394_v29 }
 0x249   :  { %v360_v34 = vpop.xlane.xlu1 %359  ;;  %v366_v36 = vpop.xlane.xlu0 %365 }
 0x24a   :  { %v393_v38 = vmul.f32 0.125, %v360_v34  ;;  %v395_v39 = vmul.f32 0.125, %v366_v36  ;;  %v428_v40 = vmul.f32 %v411_v33, %v411_v33 }
 0x24c   :  { %v410_v41 = vsub.f32 %v5423_v47, %v393_v38  ;;  %v412_v48 = vsub.f32 %v5419_v45, %v395_v39  ;;  %v465_v44 = vsel %vm288_vm3, %v428_v40, 0.0 }
 0x24d   :  { %466 = vadd.xlane.f32.xlu1 %v465_v44  ;;  %v5515_v63 = vpop.xlane.xlu1 %368  ;;  %v5525_v2 = vpop.permute.xlu0 %594 }
 0x24e   :  { %v427_v51 = vmul.f32 %v410_v41, %v410_v41  ;;  %v429_v52 = vmul.f32 %v412_v48, %v412_v48 }
 0x250   :  { %v462_v57 = vsel %vm288_vm3, %v427_v51, 0.0  ;;  %v468_v54 = vsel %vm288_vm3, %v429_v52, 0.0 }
 0x251   :  { %463 = vadd.xlane.f32.xlu0 %v462_v57  ;;  %469 = vadd.xlane.f32.xlu1 %v468_v54  ;;  %v5517_v56 = vpop.xlane.xlu1 %371 }
 0x255   :  { %v5519_v0 = vpop.xlane.xlu1 %374 }
 0x259   :  { %v5521_v55 = vpop.xlane.xlu1 %377 }
 0x25d   :  { %v5523_v1 = vpop.xlane.xlu1 %381 }
 0x2d6   :  { %v467_v3 = vpop.xlane.xlu1 %466 }
 0x2d7   :  { %v496_v6 = vmul.f32 0.125, %v467_v3 }
 0x2d9   :  { %v513_v7 = vadd.f32 1e-05, %v496_v6 }
 0x2da   :  { %v470_v8 = vpop.xlane.xlu1 %469  ;;  %v464_v60 = vpop.xlane.xlu0 %463 }
 0x2db   :  { %v497_v10 = vmul.f32 0.125, %v470_v8  ;;  %v495_v4 = vmul.f32 0.125, %v464_v60  ;;  %v714_v12 = vpop.f32.mrf.mxu1  ;;  %4876 = vrsqrt.f32 %v513_v7 }
 0x2dd   :  { %v512_v13 = vadd.f32 1e-05, %v495_v4  ;;  %v4244_v11 = vpop.f32.mrf.mxu1  ;;  %v514_v14 = vadd.f32 1e-05, %v497_v10 }
 0x2df   :  { %v719_v16 = vpop.f32.mrf.mxu1  ;;  %4878 = vrsqrt.f32 %v512_v13 }
 0x2e0   :  { %4880 = vrsqrt.f32 %v514_v14  ;;  %v5578_v11 = vadd.f32 %v719_v16, %v5525_v2  ;;  %v5583_v14 = vadd.f32 %v714_v12, %v5525_v2  ;;  %v398_v16 = vmul.f32 0.125, %v5519_v0 }
 0x2e1   :  { %v4247_v18 = vpop.f32.mrf.mxu1 }
 0x2e2   :  { %v396_v18 = vmul.f32 0.125, %v5515_v63  ;;  %v5599_v12 = vsub.f32 %v5437_v53, %v398_v16 }
 0x2e3   :  { %v724_v17 = vpop.f32.mrf.mxu1 }
 0x2e4   :  { %v5573_v13 = vadd.f32 %v724_v17, %v5525_v2  ;;  %v5589_v17 = vsub.f32 %v5427_v50, %v396_v18 }
 0x2e5   :  { %v4250_v19 = vpop.f32.mrf.mxu1 }
 0x2e6   :  { %v397_v19 = vmul.f32 0.125, %v5517_v56 }
 0x2e7   :  { %v729_v20 = vpop.f32.mrf.mxu1 }
 0x2e8   :  { %v4877_v22 = vpop.eup %4876  ;;  %v5568_v4 = vadd.f32 %v729_v20, %v5525_v2  ;;  %v5593_v20 = vsub.f32 %v5433_v49, %v397_v19 }
 0x2e9   :  { %v4253_v21 = vpop.f32.mrf.mxu1  ;;  %v547_v27 = vmul.f32 %v4877_v22, %v411_v33  ;;  %v399_v22 = vmul.f32 0.125, %v5521_v55 }
 0x2ea   :  { %v430_v21 = vmul.f32 %v5589_v17, %v5589_v17 }
 0x2eb   :  { %v734_v5 = vpop.f32.mrf.mxu1  ;;  %v567_v39 = vmul.f32 %v5451_v35, %v547_v27  ;;  %v5606_v56 = vsub.f32 %v5441_v58, %v399_v22  ;;  %v7325_v58 = vmov 0.0  }
 0x2ec   :  { %v4879_v24 = vpop.eup %4878  ;;  %v5555_v8 = vadd.f32 %v734_v5, %v5525_v2  ;;  %v471_v63 = vsel %vm288_vm3, %v430_v21, 0.0  ;;  %v431_v5 = vmul.f32 %v5593_v20, %v5593_v20 }
 0x2ed   :  { %v4256_v25 = vpop.f32.mrf.mxu1  ;;  %v546_v31 = vmul.f32 %v4879_v24, %v410_v41  ;;  %v4881_v37 = vpop.eup %4880  ;;  %v587_v33 = vadd.f32 %v5455_v46, %v567_v39  ;;  %v400_v24 = vmul.f32 0.125, %v5523_v1  ;;  %v433_v27 = vmul.f32 %v5606_v56, %v5606_v56 }
 0x2ee   :  { %v548_v40 = vmul.f32 %v4881_v37, %v412_v48  ;;  %v474_v0 = vsel %vm288_vm3, %v431_v5, 0.0  ;;  %v432_v25 = vmul.f32 %v5599_v12, %v5599_v12 }
 0x2ef   :  { %v739_v29 = vpop.f32.mrf.mxu1  ;;  %v566_v34 = vmul.f32 %v5451_v35, %v546_v31  ;;  %v5613_v31 = vsub.f32 %v5445_v59, %v400_v24  ;;  %v480_v37 = vsel %vm288_vm3, %v433_v27, 0.0 }
 0x2f0   :  { %v568_v41 = vmul.f32 %v5451_v35, %v548_v40  ;;  %v5541_v48 = vadd.f32 %v739_v29, %v5525_v2  ;;  %v477_v55 = vsel %vm288_vm3, %v432_v25, 0.0  ;;  %v798_v29 = vlaneseq }
 0x2f1   :  { %v4259_v36 = vpop.f32.mrf.mxu1  ;;  %v586_v38 = vadd.f32 %v5455_v46, %v566_v34  ;;  %v434_v1 = vmul.f32 %v5613_v31, %v5613_v31 }
 0x2f2   :  { %v588_v6 = vadd.f32 %v5455_v46, %v568_v41  ;;  %v799_v36 = vand.u32 127, %v798_v29 }
 0x2f3   :  { %v744_v44 = vpop.f32.mrf.mxu1  ;;  %4270 = vmatmul.mubr.msk.f32.gmra.mxu1 %vm288_vm3, %v586_v38  ;;  %v483_v34 = vsel %vm379_vm5, %v434_v1, 0.0 }
 0x2f4   :  { %v5531_v51 = vadd.f32 %v744_v44, %v5525_v2  ;;  %4272 = vmatprep.mubr.msk.f32.mxu1 %vm5101_vm4, %v7278_v42  ;;  %vm1110_vm6 = vcmp.ge.s32.totalorder %v799_v36, 4  ;;  %vm1111_vm7 = vcmp.lt.s32.totalorder %v799_v36, 8  ;;  %vm801_vm8 = vcmp.lt.s32.totalorder %v799_v36, 4 }
 0x2f5   :  { %v4262_v52 = vpop.f32.mrf.mxu1  ;;  %vm1112_vm9 = vmand %vm1110_vm6, %vm1111_vm7  ;;  %v5623_v38 = vsel %vm801_vm8, 1.0, %v7278_v42 }
 0x2f6   :  { %835 = vrot.lane.b32.xlu0 %v5531_v51, %s5099_s11  ;;  %v5626_v39 = vsel %vm1112_vm9, 1.0, %v7278_v42  ;;  %v805_v18 = vmul.f32 %v5623_v38, %v5583_v14  ;;  %v806_v19 = vmul.f32 %v5623_v38, %v5578_v11  ;;  %v807_v16 = vmul.f32 %v5623_v38, %v5573_v13 }
 0x2f7   :  { %v749_v57 = vpop.f32.mrf.mxu1  ;;  %4273 = vmatmul.mubr.msk.f32.gmra.mxu1 %vm288_vm3, %v587_v33  ;;  %v4853_v40 = vpack.i.bf16 %v5626_v39, %v5623_v38  ;;  %v808_v21 = vmul.f32 %v5623_v38, %v5568_v4  ;;  %v809_v22 = vmul.f32 %v5623_v38, %v5555_v8  ;;  %v811_v5 = vmul.f32 %v5623_v38, %v5531_v51 }
 0x2f8   :  { %v5544_v54 = vadd.f32 %v749_v57, %v5525_v2  ;;  %4275 = vmatprep.mubr.msk.f32.mxu1 %vm5101_vm4, %v7278_v42 }
 0x2f9   :  { %v4265_v3 = vpop.f32.mrf.mxu1 }
 0x2fa   :  { %833 = vrot.lane.b32.xlu0 %v5541_v48, %s5099_s11  ;;  %837 = vrot.lane.b32.xlu1 %v5544_v54, %s5099_s11 }
 0x2fb   :  { %v754_v7 = vpop.f32.mrf.mxu1  ;;  %4276 = vmatmul.mubr.msk.f32.gmra.mxu1 %vm288_vm3, %v588_v6 }
 0x2fc   :  { %v5558_v60 = vadd.f32 %v754_v7, %v5525_v2  ;;  %4278 = vmatprep.mubr.msk.f32.mxu1 %vm5101_vm4, %v7278_v42 }
 0x2fd   :  { %v4268_v10 = vpop.f32.mrf.mxu1 }
 0x2fe   :  { %831 = vrot.lane.b32.xlu0 %v5555_v8, %s5099_s11  ;;  %839 = vrot.lane.b32.xlu1 %v5558_v60, %s5099_s11  ;;  %v5708_v29 = vmul.f32 %v5623_v38, %v5558_v60 }
 0x302   :  { %829 = vrot.lane.b32.xlu0 %v5568_v4, %s5099_s11 }
 0x306   :  { %827 = vrot.lane.b32.xlu0 %v5573_v13, %s5099_s11 }
 0x30a   :  { %825 = vrot.lane.b32.xlu0 %v5578_v11, %s5099_s11 }
 0x30e   :  { %823 = vrot.lane.b32.xlu0 %v5583_v14, %s5099_s11 }
 0x322   :  { %472 = vadd.xlane.f32.xlu1 %v471_v63  ;;  %v810_v63 = vmul.f32 %v5623_v38, %v5541_v48 }
 0x326   :  { %475 = vadd.xlane.f32.xlu1 %v474_v0 }
 0x32a   :  { %478 = vadd.xlane.f32.xlu1 %v477_v55  ;;  %v812_v55 = vmul.f32 %v5623_v38, %v5544_v54 }
 0x32e   :  { %481 = vadd.xlane.f32.xlu1 %v480_v37 }
 0x332   :  { %484 = vadd.xlane.f32.xlu1 %v483_v34 }
 0x343   :  { %4854 = vrot.lane.b32.xlu1 %v4853_v40, %s5105_s13 }
 0x368   :  { %v836_v44 = vpop.permute.xlu0 %835 }
 0x36c   :  { %v838_v52 = vpop.permute.xlu1 %837  ;;  %v834_v41 = vpop.permute.xlu0 %833 }
 0x370   :  { %v840_v33 = vpop.permute.xlu1 %839  ;;  %v832_v57 = vpop.permute.xlu0 %831 }
 0x371   :  { %4294 = vmatpush3.xpose.msk.msra.mxu0 %vm288_vm3, %v840_v33  ;;  %4339 = vmatpush3.xpose.msk.msra.mxu1 %vm288_vm3, %v840_v33 }
 0x372   :  { %4295 = vmatprep.subr.mxu0 %v7278_v42  ;;  %4340 = vmatprep.subr.mxu1 %v7278_v42 }
 0x374   :  { %v830_v3 = vpop.permute.xlu0 %829 }
 0x375   :  { %4296 = vmatpush3.xpose.msk.msra.mxu0 %vm288_vm3, %v838_v52  ;;  %4341 = vmatpush3.xpose.msk.msra.mxu1 %vm288_vm3, %v838_v52 }
 0x376   :  { %4297 = vmatprep.subr.mxu0 %v7278_v42  ;;  %4342 = vmatprep.subr.mxu1 %v7278_v42 }
 0x378   :  { %v828_v6 = vpop.permute.xlu0 %827 }
 0x379   :  { %4298 = vmatpush3.xpose.msk.msra.mxu0 %vm288_vm3, %v836_v44  ;;  %4343 = vmatpush3.xpose.msk.msra.mxu1 %vm288_vm3, %v836_v44 }
 0x37a   :  { %4299 = vmatprep.subr.mxu0 %v7278_v42  ;;  %4344 = vmatprep.subr.mxu1 %v7278_v42 }
 0x37c   :  { %v826_v7 = vpop.permute.xlu0 %825 }
 0x37d   :  { %4300 = vmatpush3.xpose.msk.msra.mxu0 %vm288_vm3, %v834_v41  ;;  %4345 = vmatpush3.xpose.msk.msra.mxu1 %vm288_vm3, %v834_v41 }
 0x37e   :  { %4301 = vmatprep.subr.mxu0 %v7278_v42  ;;  %4346 = vmatprep.subr.mxu1 %v7278_v42 }
 0x380   :  { %v824_v10 = vpop.permute.xlu0 %823 }
 0x381   :  { %4302 = vmatpush3.xpose.msk.msra.mxu0 %vm288_vm3, %v832_v57  ;;  %4347 = vmatpush3.xpose.msk.msra.mxu1 %vm288_vm3, %v832_v57 }
 0x382   :  { %4303 = vmatprep.subr.mxu0 %v7278_v42  ;;  %4348 = vmatprep.subr.mxu1 %v7278_v42 }
 0x385   :  { %4304 = vmatpush3.xpose.msk.msra.mxu0 %vm288_vm3, %v830_v3  ;;  %4349 = vmatpush3.xpose.msk.msra.mxu1 %vm288_vm3, %v830_v3 }
 0x386   :  { %4305 = vmatprep.subr.mxu0 %v7278_v42  ;;  %4350 = vmatprep.subr.mxu1 %v7278_v42 }
 0x389   :  { %4306 = vmatpush3.xpose.msk.msra.mxu0 %vm288_vm3, %v828_v6  ;;  %4351 = vmatpush3.xpose.msk.msra.mxu1 %vm288_vm3, %v828_v6 }
 0x38a   :  { %4307 = vmatprep.subr.mxu0 %v7278_v42  ;;  %4352 = vmatprep.subr.mxu1 %v7278_v42 }
 0x38d   :  { %4308 = vmatpush3.xpose.msk.msra.mxu0 %vm288_vm3, %v826_v7  ;;  %4353 = vmatpush3.xpose.msk.msra.mxu1 %vm288_vm3, %v826_v7 }
 0x38e   :  { %4309 = vmatprep.subr.mxu0 %v7278_v42  ;;  %4354 = vmatprep.subr.mxu1 %v7278_v42 }
 0x391   :  { %4310 = vmatpush3.xpose.msk.msra.mxu0 %vm288_vm3, %v824_v10  ;;  %4355 = vmatpush3.xpose.msk.msra.mxu1 %vm288_vm3, %v824_v10 }
 0x392   :  { %4428 = vmatprep.subr.mxu1 %v7278_v42  ;;  %4383 = vmatprep.subr.mxu0 %v7278_v42 }
 0x394   :  { %4312 = vmatmul.mubr.msk.f32.vlgmr.msra.gmra.mxu0 %vm288_vm3, %v805_v18 }
 0x395   :  { %4314 = vmatprep.mubr.msk.f32.mxu0 %vm5101_vm4, %v7278_v42 }
 0x398   :  { %4315 = vmatmul.mubr.msk.f32.gmra.mxu0 %vm288_vm3, %v806_v19 }
 0x399   :  { %4317 = vmatprep.mubr.msk.f32.mxu0 %vm5101_vm4, %v7278_v42 }
 0x39c   :  { %4318 = vmatmul.mubr.msk.f32.gmra.mxu0 %vm288_vm3, %v807_v16 }
 0x39d   :  { %4320 = vmatprep.mubr.msk.f32.mxu0 %vm5101_vm4, %v7278_v42 }
 0x3a0   :  { %4321 = vmatmul.mubr.msk.f32.gmra.mxu0 %vm288_vm3, %v808_v21 }
 0x3a1   :  { %4323 = vmatprep.mubr.msk.f32.mxu0 %vm5101_vm4, %v7278_v42 }
 0x3a4   :  { %4324 = vmatmul.mubr.msk.f32.gmra.mxu0 %vm288_vm3, %v809_v22 }
 0x3a5   :  { %4326 = vmatprep.mubr.msk.f32.mxu0 %vm5101_vm4, %v7278_v42 }
 0x3a8   :  { %4327 = vmatmul.mubr.msk.f32.gmra.mxu0 %vm288_vm3, %v810_v63 }
 0x3a9   :  { %4329 = vmatprep.mubr.msk.f32.mxu0 %vm5101_vm4, %v7278_v42 }
 0x3ab   :  { %v473_v24 = vpop.xlane.xlu1 %472 }
 0x3ac   :  { %v498_v0 = vmul.f32 0.125, %v473_v24  ;;  %4330 = vmatmul.mubr.msk.f32.gmra.mxu0 %vm288_vm3, %v811_v5 }
 0x3ad   :  { %4332 = vmatprep.mubr.msk.f32.mxu0 %vm5101_vm4, %v7278_v42 }
 0x3ae   :  { %v515_v25 = vadd.f32 1e-05, %v498_v0 }
 0x3af   :  { %v476_v27 = vpop.xlane.xlu1 %475 }
 0x3b0   :  { %4882 = vrsqrt.f32 %v515_v25  ;;  %v499_v37 = vmul.f32 0.125, %v476_v27  ;;  %4333 = vmatmul.mubr.msk.f32.gmra.mxu0 %vm288_vm3, %v812_v55 }
 0x3b1   :  { %4335 = vmatprep.mubr.msk.f32.mxu0 %vm5101_vm4, %v7278_v42 }
 0x3b2   :  { %v516_v1 = vadd.f32 1e-05, %v499_v37 }
 0x3b3   :  { %v479_v34 = vpop.xlane.xlu1 %478  ;;  %v759_v40 = vpop.f32.mrf.mxu1 }
 0x3b4   :  { %4884 = vrsqrt.f32 %v516_v1  ;;  %v500_v36 = vmul.f32 0.125, %v479_v34  ;;  %4336 = vmatmul.mubr.msk.f32.gmra.mxu0 %vm288_vm3, %v5708_v29  ;;  %v5713_v44 = vadd.f32 %v759_v40, %v5525_v2 }
 0x3b5   :  { %4401 = vmatprep.mubr.msk.f32.mxu0 %vm5101_vm4, %v7278_v42  ;;  %v4271_v33 = vpop.f32.mrf.mxu1 }
 0x3b6   :  { %v517_v52 = vadd.f32 1e-05, %v500_v36  ;;  %v5719_v6 = vmul.f32 %v5626_v39, %v5713_v44  ;;  %v5726_v19 = vmul.f32 %v5623_v38, %v5713_v44  ;;  %v7276_v22 = vrot.slane %v5713_v44, 1 }
 0x3b7   :  { %v482_v41 = vpop.xlane.xlu1 %481  ;;  %v764_v3 = vpop.f32.mrf.mxu1 }
 0x3b8   :  { %4886 = vrsqrt.f32 %v517_v52  ;;  %v501_v57 = vmul.f32 0.125, %v482_v41  ;;  %v5722_v7 = vadd.f32 %v764_v3, %v5525_v2  ;;  %v7275_v37 = vrot.slane %v5719_v6, 1 }
 0x3b9   :  { %v4274_v18 = vpop.f32.mrf.mxu1 }
 0x3ba   :  { %v518_v10 = vadd.f32 1e-05, %v501_v57  ;;  %v7277_v21 = vrot.slane %v5722_v7, 1  ;;  %v2062_v63 = vmul.f32 %v5626_v39, %v5722_v7  ;;  %v1732_v0 = vmul.f32 %v5623_v38, %v5722_v7 }
 0x3bb   :  { %v485_v16 = vpop.xlane.xlu1 %484  ;;  %v769_v24 = vpop.f32.mrf.mxu1  ;;  %v7274_v57 = vrot.slane %v5726_v19, 1 }
 0x3bc   :  { %4888 = vrsqrt.f32 %v518_v10  ;;  %v502_v5 = vmul.f32 0.125, %v485_v16  ;;  %v5735_v55 = vadd.f32 %v769_v24, %v5525_v2  ;;  %v5742_v27 = vsel %vm1747_vm10, %v7276_v22, %v7277_v21 }
 0x3bd   :  { %v4883_v25 = vpop.eup %4882  ;;  %v2080_v1 = vrot.slane %v2062_v63, 1  ;;  %v4277_v36 = vpop.f32.mrf.mxu1  ;;  %v1751_v52 = vrot.slane %v1732_v0, 1 }
 0x3be   :  { %v519_v34 = vadd.f32 1e-05, %v502_v5  ;;  %v549_v40 = vmul.f32 %v4883_v25, %v5589_v17  ;;  %v5759_v17 = vmul.f32 %v5626_v39, %v5735_v55  ;;  %v5768_v5 = vmul.f32 %v5623_v38, %v5735_v55 }
 0x3bf   :  { %v4855_v33 = vpop.permute.xlu1 %4854  ;;  %v5749_v41 = vsel %vm1747_vm10, %v7275_v37, %v2080_v1  ;;  %v5764_v63 = vsel %vm1747_vm10, %v7274_v57, %v1751_v52 }
 0x3c0   :  { %4890 = vrsqrt.f32 %v519_v34  ;;  %v5752_v3 = vunpack.i.l.bf16 %v4855_v33  ;;  %v569_v10 = vmul.f32 %v5451_v35, %v549_v40  ;;  %v5755_v16 = vunpack.i.h.bf16 %v4855_v33 }
 0x3c1   :  { %v4885_v18 = vpop.eup %4884  ;;  %v7334_v26 = vrot.slane %v5759_v17, 1 }
 0x3c2   :  { %v589_v24 = vadd.f32 %v5455_v46, %v569_v10  ;;  %v1108_v0 = vmul.f32 %v5752_v3, %v5544_v54  ;;  %v1107_v25 = vmul.f32 %v5752_v3, %v5531_v51  ;;  %v550_v34 = vmul.f32 %v4885_v18, %v5593_v20 }
 0x3c3   :  { %v5784_v33 = vmul.f32 %v5755_v16, %v5558_v60  ;;  %v7281_v10 = vrot.slane %v5759_v17, 1  ;;  %v1106_v18 = vmul.f32 %v5752_v3, %v5541_v48  ;;  %v1105_v57 = vmul.f32 %v5752_v3, %v5555_v8 }
 0x3c4   :  { %4279 = vmatmul.mubr.msk.f32.gmra.mxu1 %vm288_vm3, %v589_v24  ;;  %1571 = vrot.lane.b32.xlu1 %v1108_v0, %s5104_s12  ;;  %v570_v36 = vmul.f32 %v5451_v35, %v550_v34  ;;  %v7280_v0 = vrot.slane %v5768_v5, 1  ;;  %v2322_v21 = vmul.f32 %v5755_v16, %v5722_v7 }
 0x3c5   :  { %v4887_v40 = vpop.eup %4886  ;;  %1569 = vrot.lane.b32.xlu0 %v1107_v25, %s5104_s12  ;;  %4281 = vmatprep.mubr.msk.f32.mxu1 %vm5101_vm4, %v7278_v42  ;;  %v1104_v25 = vmul.f32 %v5752_v3, %v5568_v4 }
 0x3c6   :  { %v590_v20 = vadd.f32 %v5455_v46, %v570_v36  ;;  %v551_v24 = vmul.f32 %v4887_v40, %v5599_v12  ;;  %v1109_v36 = vmul.f32 %v5752_v3, %v5558_v60  ;;  %v1371_v12 = vmul.f32 %v5755_v16, %v5544_v54 }
 0x3c7   :  { %v1370_v40 = vmul.f32 %v5755_v16, %v5531_v51  ;;  %v5819_v22 = vsel %vm1747_vm10, %v1751_v52, %v7280_v0  ;;  %v2340_v0 = vrot.slane %v2322_v21, 1  ;;  %v1103_v21 = vmul.f32 %v5752_v3, %v5573_v13 }
 0x3c8   :  { %4282 = vmatmul.mubr.msk.f32.gmra.mxu1 %vm288_vm3, %v590_v20  ;;  %1567 = vrot.lane.b32.xlu1 %v1106_v18, %s5104_s12  ;;  %v571_v34 = vmul.f32 %v5451_v35, %v551_v24  ;;  %v2337_v20 = vrot.slane %v5784_v33, 1  ;;  %v5812_v18 = vsel %vm1747_vm10, %v2080_v1, %v7281_v10  ;;  %v2321_v1 = vmul.f32 %v5755_v16, %v5713_v44 }
 0x3c9   :  { %v4889_v37 = vpop.eup %4888  ;;  %1563 = vrot.lane.b32.xlu0 %v1104_v25, %s5104_s12  ;;  %4284 = vmatprep.mubr.msk.f32.mxu1 %vm5101_vm4, %v7278_v42  ;;  %v5825_v42 = vmul.f32 %v5755_v16, %v5735_v55  ;;  %v2527_v52 = vrot.slane %v1109_v36, 1  ;;  %v2053_v10 = vmul.f32 %v5752_v3, %v5713_v44 }
 0x3ca   :  { %v591_v24 = vadd.f32 %v5455_v46, %v571_v34  ;;  %v552_v25 = vmul.f32 %v4889_v37, %v5606_v56  ;;  %v5831_v34 = vmul.f32 %v5752_v3, %v5735_v55  ;;  %v2054_v56 = vmul.f32 %v5752_v3, %v5722_v7 }
 0x3cb   :  { %v7290_v53 = vrot.slane %v5825_v42, 1  ;;  %v2338_v49 = vrot.slane %v2321_v1, 1  ;;  %v2528_v45 = vrot.slane %v2053_v10, 1 }
 0x3cc   :  { %4285 = vmatmul.mubr.msk.f32.gmra.mxu1 %vm288_vm3, %v591_v24  ;;  %1565 = vrot.lane.b32.xlu1 %v1105_v57, %s5104_s12  ;;  %v572_v37 = vmul.f32 %v5451_v35, %v552_v25  ;;  %v7289_v24 = vrot.slane %v5831_v34, 1  ;;  %v2530_v50 = vrot.slane %v2054_v56, 1 }
 0x3cd   :  { %v4891_v59 = vpop.eup %4890  ;;  %1396 = vrot.lane.b32.xlu0 %v1371_v12, %s5104_s12  ;;  %4287 = vmatprep.mubr.msk.f32.mxu1 %vm5101_vm4, %v7325_v58  ;;  %v5852_v12 = vsel %vm1747_vm10, %v2340_v0, %v7290_v53  ;;  %v5855_v43 = vsel %vm1747_vm10, %v2338_v49, %v2340_v0  ;;  %v5858_v1 = vsel %vm1747_vm10, %v2337_v20, %v2338_v49 }
 0x3ce   :  { %v592_v57 = vadd.f32 %v5455_v46, %v572_v37  ;;  %v553_v25 = vmul.f32 %v4891_v59, %v5613_v31  ;;  %7326 = vst [vmem:[#allocation23_spill] sm:$0xff] %v5852_v12  ;;  %7327 = vst [vmem:[#allocation24_spill] sm:$0xff] %v5855_v43  ;;  %v5863_v56 = vsel %vm1747_vm10, %v2530_v50, %v7289_v24 }
 0x3cf   :  { %7328 = vst [vmem:[#allocation25_spill] sm:$0xff] %v5858_v1  ;;  %7329 = vst [vmem:[#allocation26_spill] sm:$0xff] %v5863_v56  ;;  %v5869_v31 = vsel %vm1747_vm10, %v2527_v52, %v2528_v45  ;;  %v5872_v10 = vsel %vm1747_vm10, %v2528_v45, %v2530_v50  ;;  %v1102_v0 = vmul.f32 %v5752_v3, %v5578_v11 }
 0x3d0   :  { %4288 = vmatmul.mubr.msk.f32.gmra.mxu1 %vm288_vm3, %v592_v57  ;;  %1561 = vrot.lane.b32.xlu1 %v1103_v21, %s5104_s12  ;;  %v573_v59 = vmul.f32 %v5451_v35, %v553_v25  ;;  %7330 = vst [vmem:[#allocation27_spill] sm:$0xff] %v5869_v31  ;;  %7331 = vst [vmem:[#allocation28_spill] sm:$0xff] %v5872_v10  ;;  %v1115_v45 = vmul.f32 %v5626_v39, %v5583_v14 }
 0x3d1   :  { %1394 = vrot.lane.b32.xlu0 %v1370_v40, %s5104_s12  ;;  %4290 = vmatprep.mubr.msk.f32.mxu1 %vm5101_vm4, %v7325_v58  ;;  %v1101_v50 = vmul.f32 %v5752_v3, %v5583_v14  ;;  %v1116_v35 = vmul.f32 %v5626_v39, %v5578_v11  ;;  %v7332_v40 = vrot.slane %v5722_v7, 1  ;;  %v1118_v37 = vmul.f32 %v5626_v39, %v5568_v4 }
 0x3d2   :  { %v593_v49 = vadd.f32 %v5455_v46, %v573_v59  ;;  %v1369_v46 = vmul.f32 %v5755_v16, %v5541_v48  ;;  %v1119_v7 = vmul.f32 %v5626_v39, %v5555_v8  ;;  %v1120_v52 = vmul.f32 %v5626_v39, %v5541_v48 }
 0x3d3   :  { %v1121_v57 = vmul.f32 %v5626_v39, %v5531_v51  ;;  %v1122_v21 = vmul.f32 %v5626_v39, %v5544_v54  ;;  %v5942_v48 = vmul.f32 %v5626_v39, %v5558_v60 }
 0x3d4   :  { %4291 = vmatmul.mubr.msk.f32.gmra.mxu1 %vm288_vm3, %v593_v49  ;;  %1559 = vrot.lane.b32.xlu1 %v1102_v0, %s5104_s12 }
 0x3d5   :  { %1573 = vrot.lane.b32.xlu0 %v1109_v36, %s5104_s12  ;;  %4356 = vmatprep.mubr.msk.f32.mxu1 %vm5101_vm4, %v7325_v58  ;;  %v7291_v36 = vrot.slane %v5735_v55, 1 }
 0x3d7   :  { %v1779_v20 = vsel %vm1747_vm10, %v7332_v40, %v7291_v36 }
 0x3d8   :  { %4357 = vmatmul.mubr.msk.f32.vlgmr.msra.gmra.mxu1 %vm288_vm3, %v1115_v45  ;;  %1557 = vrot.lane.b32.xlu1 %v1101_v50, %s5104_s12 }
 0x3d9   :  { %1398 = vrot.lane.b32.xlu0 %v5784_v33, %s5104_s12  ;;  %4359 = vmatprep.mubr.msk.f32.mxu1 %vm5101_vm4, %v7325_v58  ;;  %v1117_v33 = vmul.f32 %v5626_v39, %v5573_v13 }
 0x3dc   :  { %4360 = vmatmul.mubr.msk.f32.gmra.mxu1 %vm288_vm3, %v1116_v35  ;;  %1392 = vrot.lane.b32.xlu1 %v1369_v46, %s5104_s12 }
 0x3dd   :  { %4362 = vmatprep.mubr.msk.f32.mxu1 %vm5101_vm4, %v7325_v58 }
 0x3e0   :  { %4363 = vmatmul.mubr.msk.f32.gmra.mxu1 %vm288_vm3, %v1117_v33  ;;  %1794 = vrot.lane.b32.xlu1 %v1779_v20, %s5099_s11 }
 0x3e1   :  { %4365 = vmatprep.mubr.msk.f32.mxu1 %vm5101_vm4, %v7325_v58 }
 0x3e4   :  { %4366 = vmatmul.mubr.msk.f32.gmra.mxu1 %vm288_vm3, %v1118_v37 }
 0x3e5   :  { %4368 = vmatprep.mubr.msk.f32.mxu1 %vm5101_vm4, %v7325_v58 }
 0x3e8   :  { %4369 = vmatmul.mubr.msk.f32.gmra.mxu1 %vm288_vm3, %v1119_v7 }
 0x3e9   :  { %4371 = vmatprep.mubr.msk.f32.mxu1 %vm5101_vm4, %v7325_v58 }
 0x3ec   :  { %4372 = vmatmul.mubr.msk.f32.gmra.mxu1 %vm288_vm3, %v1120_v52 }
 0x3ed   :  { %4374 = vmatprep.mubr.msk.f32.mxu1 %vm5101_vm4, %v7325_v58 }
 0x3f0   :  { %4375 = vmatmul.mubr.msk.f32.gmra.mxu1 %vm288_vm3, %v1121_v57 }
 0x3f1   :  { %4377 = vmatprep.mubr.msk.f32.mxu1 %vm5101_vm4, %v7325_v58 }
 0x3f4   :  { %4378 = vmatmul.mubr.msk.f32.gmra.mxu1 %vm288_vm3, %v1122_v21 }
 0x3f5   :  { %4380 = vmatprep.mubr.msk.f32.mxu1 %vm5101_vm4, %v7325_v58 }
 0x3f8   :  { %4381 = vmatmul.mubr.msk.f32.gmra.mxu1 %vm288_vm3, %v5942_v48 }
 0x3f9   :  { %4446 = vmatprep.mubr.msk.f32.mxu1 %vm5101_vm4, %v7325_v58 }
 0x436   :  { %v1572_v51 = vpop.permute.xlu1 %1571 }
 0x437   :  { %v1570_v25 = vpop.permute.xlu0 %1569 }
 0x43a   :  { %v1568_v59 = vpop.permute.xlu1 %1567 }
 0x43b   :  { %v1564_v49 = vpop.permute.xlu0 %1563 }
 0x43e   :  { %v1566_v54 = vpop.permute.xlu1 %1565 }
 0x43f   :  { %v1397_v0 = vpop.permute.xlu0 %1396 }
 0x442   :  { %v1562_v45 = vpop.permute.xlu1 %1561 }
 0x443   :  { %v1395_v50 = vpop.permute.xlu0 %1394 }
 0x446   :  { %v1560_v35 = vpop.permute.xlu1 %1559 }
 0x447   :  { %v1574_v46 = vpop.permute.xlu0 %1573 }
 0x448   :  { %4429 = vmatpush3.msk.msra.mxu1 %vm1435_vm11, %v1574_v46 }
 0x449   :  { %4430 = vmatprep.subr.mxu1 %v7325_v58 }
 0x44a   :  { %4431 = vmatpush3.msra.mxu1 %v1572_v51  ;;  %v1558_v40 = vpop.permute.xlu1 %1557 }
 0x44b   :  { %4432 = vmatprep.subr.mxu1 %v7325_v58  ;;  %v1399_v33 = vpop.permute.xlu0 %1398 }
 0x44c   :  { %4384 = vmatpush3.msk.msra.mxu0 %vm1435_vm11, %v1399_v33  ;;  %4433 = vmatpush3.msra.mxu1 %v1570_v25 }
 0x44d   :  { %4385 = vmatprep.subr.mxu0 %v7325_v58  ;;  %4434 = vmatprep.subr.mxu1 %v7325_v58 }
 0x44e   :  { %4386 = vmatpush3.msra.mxu0 %v1397_v0  ;;  %4435 = vmatpush3.msra.mxu1 %v1568_v59  ;;  %v1393_v20 = vpop.permute.xlu1 %1392 }
 0x44f   :  { %4387 = vmatprep.subr.mxu0 %v7325_v58  ;;  %4436 = vmatprep.subr.mxu1 %v7325_v58 }
 0x450   :  { %4388 = vmatpush3.msra.mxu0 %v1395_v50  ;;  %4437 = vmatpush3.msra.mxu1 %v1566_v54 }
 0x451   :  { %4389 = vmatprep.subr.mxu0 %v7325_v58  ;;  %4438 = vmatprep.subr.mxu1 %v7325_v58 }
 0x452   :  { %4390 = vmatpush3.msra.mxu0 %v1393_v20  ;;  %4439 = vmatpush3.msra.mxu1 %v1564_v49 }
 0x453   :  { %4440 = vmatprep.subr.mxu1 %v7325_v58  ;;  %4391 = vmatprep.subr.mxu0 %v7325_v58 }
 0x454   :  { %4441 = vmatpush3.msra.mxu1 %v1562_v45  ;;  %v5960_v37 = vpop.f32.mrf.mxu0 }
 0x455   :  { %4442 = vmatprep.subr.mxu1 %v7325_v58 }
 0x456   :  { %4443 = vmatpush3.msra.mxu1 %v1560_v35  ;;  %v4313_v7 = vpop.f32.mrf.mxu0 }
 0x457   :  { %4444 = vmatprep.subr.mxu1 %v7325_v58 }
 0x458   :  { %4445 = vmatpush3.msra.mxu1 %v1558_v40  ;;  %v5964_v52 = vpop.f32.mrf.mxu0 }
 0x459   :  { %4518 = vmatprep.subr.mxu1 %v7325_v58 }
 0x45a   :  { %v4316_v57 = vpop.f32.mrf.mxu0 }
 0x45c   :  { %v5967_v21 = vpop.f32.mrf.mxu0 }
 0x45e   :  { %v4319_v51 = vpop.f32.mrf.mxu0 }
 0x460   :  { %v5969_v25 = vpop.f32.mrf.mxu0 }
 0x462   :  { %v4322_v59 = vpop.f32.mrf.mxu0 }
 0x464   :  { %v5971_v49 = vpop.f32.mrf.mxu0 }
 0x466   :  { %v4325_v54 = vpop.f32.mrf.mxu0 }
 0x468   :  { %v5973_v0 = vpop.f32.mrf.mxu0 }
 0x46a   :  { %v4328_v45 = vpop.f32.mrf.mxu0 }
 0x46c   :  { %v5975_v50 = vpop.f32.mrf.mxu0 }
 0x46e   :  { %v4331_v35 = vpop.f32.mrf.mxu0 }
 0x470   :  { %v5977_v46 = vpop.f32.mrf.mxu0 }
 0x472   :  { %v4334_v33 = vpop.f32.mrf.mxu0 }
 0x473   :  { %v7333_v33 = vrot.slane %v5735_v55, 1 }
 0x474   :  { %v5979_v40 = vpop.f32.mrf.mxu0 }
 0x476   :  { %v4337_v20 = vpop.f32.mrf.mxu0 }
 0x484   :  { %v774_v7 = vpop.f32.mrf.mxu1 }
 0x485   :  { %v775_v57 = vadd.f32 %v774_v7, %v5525_v2 }
 0x486   :  { %v4280_v51 = vpop.f32.mrf.mxu1 }
 0x487   :  { %v1780_v59 = vrot.slane %v775_v57, 1  ;;  %v2064_v24 = vmul.f32 %v5626_v39, %v775_v57  ;;  %v1734_v54 = vmul.f32 %v5623_v38, %v775_v57  ;;  %v2324_v45 = vmul.f32 %v5755_v16, %v775_v57 }
 0x488   :  { %v779_v53 = vpop.f32.mrf.mxu1  ;;  %v2056_v35 = vmul.f32 %v5752_v3, %v775_v57 }
 0x489   :  { %v780_v36 = vadd.f32 %v779_v53, %v5525_v2  ;;  %v1781_v20 = vsel %vm1747_vm10, %v7333_v33, %v1780_v59  ;;  %v2084_v47 = vrot.slane %v2064_v24, 1  ;;  %v1755_v32 = vrot.slane %v1734_v54, 1 }
 0x48a   :  { %1796 = vrot.lane.b32.xlu1 %v1781_v20, %s5099_s11  ;;  %v4283_v7 = vpop.f32.mrf.mxu1  ;;  %v2344_v51 = vrot.slane %v2324_v45, 1  ;;  %v2534_v30 = vrot.slane %v2056_v35, 1  ;;  %v7335_v53 = vrot.slane %v5768_v5, 1  ;;  %v7336_v45 = vrot.slane %v5825_v42, 1 }
 0x48b   :  { %v1782_v28 = vrot.slane %v780_v36, 1  ;;  %v5994_v23 = vsel %vm1747_vm10, %v7334_v26, %v2084_v47  ;;  %v2065_v57 = vmul.f32 %v5626_v39, %v780_v36  ;;  %v1735_v54 = vmul.f32 %v5623_v38, %v780_v36 }
 0x48c   :  { %v6000_v55 = vsel %vm1747_vm10, %v7335_v53, %v1755_v32  ;;  %v784_v24 = vpop.f32.mrf.mxu1  ;;  %v2325_v33 = vmul.f32 %v5755_v16, %v780_v36  ;;  %v6007_v35 = vsel %vm1747_vm10, %v7336_v45, %v2344_v51  ;;  %v2057_v26 = vmul.f32 %v5752_v3, %v780_v36 }
 0x48d   :  { %7337 = vst [vmem:[#allocation29_spill] sm:$0xff] %v6007_v35  ;;  %v785_v17 = vadd.f32 %v784_v24, %v5525_v2  ;;  %v1783_v20 = vsel %vm1747_vm10, %v1780_v59, %v1782_v28  ;;  %v2086_v5 = vrot.slane %v2065_v57, 1  ;;  %v7338_v7 = vrot.slane %v5831_v34, 1 }
 0x48e   :  { %1798 = vrot.lane.b32.xlu0 %v1783_v20, %s5099_s11  ;;  %v4286_v15 = vpop.f32.mrf.mxu1  ;;  %v1757_v9 = vrot.slane %v1735_v54, 1  ;;  %v2346_v42 = vrot.slane %v2325_v33, 1  ;;  %v2536_v61 = vrot.slane %v2057_v26, 1 }
 0x48f   :  { %v6015_v53 = vsel %vm1747_vm10, %v7338_v7, %v2534_v30  ;;  %v1784_v45 = vrot.slane %v785_v17, 1  ;;  %v6019_v62 = vsel %vm1747_vm10, %v2084_v47, %v2086_v5  ;;  %v2066_v36 = vmul.f32 %v5626_v39, %v785_v17 }
 0x490   :  { %7339 = vst [vmem:[#allocation30_spill] sm:$0xff] %v6015_v53  ;;  %v1736_v59 = vmul.f32 %v5623_v38, %v785_v17  ;;  %v789_v57 = vpop.f32.mrf.mxu1  ;;  %v6024_v34 = vsel %vm1747_vm10, %v1755_v32, %v1757_v9  ;;  %v2326_v24 = vmul.f32 %v5755_v16, %v785_v17  ;;  %v6028_v20 = vsel %vm1747_vm10, %v2344_v51, %v2346_v42 }
 0x491   :  { %7340 = vst [vmem:[#allocation31_spill] sm:$0xff] %v6028_v20  ;;  %v2058_v15 = vmul.f32 %v5752_v3, %v785_v17  ;;  %v790_v54 = vadd.f32 %v789_v57, %v5525_v2  ;;  %v1785_v47 = vsel %vm1747_vm10, %v1782_v28, %v1784_v45  ;;  %v2088_v33 = vrot.slane %v2066_v36, 1 }
 0x492   :  { %v1759_v26 = vrot.slane %v1736_v59, 1  ;;  %1800 = vrot.lane.b32.xlu1 %v1785_v47, %s5099_s11  ;;  %v4289_v7 = vpop.f32.mrf.mxu1  ;;  %v2348_v10 = vrot.slane %v2326_v24, 1  ;;  %v6035_v32 = vsel %vm1747_vm10, %v2534_v30, %v2536_v61 }
 0x493   :  { %v2538_v31 = vrot.slane %v2058_v15, 1  ;;  %7341 = vst [vmem:[#allocation32_spill] sm:$0xff] %v6035_v32  ;;  %v1786_v56 = vrot.slane %v790_v54, 1  ;;  %v6038_v51 = vsel %vm1747_vm10, %v2086_v5, %v2088_v33  ;;  %v2067_v17 = vmul.f32 %v5626_v39, %v790_v54 }
 0x494   :  { %v6042_v57 = vsel %vm1747_vm10, %v1757_v9, %v1759_v26  ;;  %v794_v28 = vpop.f32.mrf.mxu1  ;;  %v1737_v36 = vmul.f32 %v5623_v38, %v790_v54  ;;  %v2327_v59 = vmul.f32 %v5755_v16, %v790_v54  ;;  %v6047_v24 = vsel %vm1747_vm10, %v2346_v42, %v2348_v10 }
 0x495   :  { %7342 = vst [vmem:[#allocation33_spill] sm:$0xff] %v6047_v24  ;;  %v2059_v30 = vmul.f32 %v5752_v3, %v790_v54  ;;  %v795_v15 = vadd.f32 %v794_v28, %v5525_v2  ;;  %v1787_v5 = vsel %vm1747_vm10, %v1784_v45, %v1786_v56  ;;  %v2090_v47 = vrot.slane %v2067_v17, 1 }
 0x496   :  { %v6053_v7 = vsel %vm1747_vm10, %v2536_v61, %v2538_v31  ;;  %1802 = vrot.lane.b32.xlu0 %v1787_v5, %s5099_s11  ;;  %v4292_v9 = vpop.f32.mrf.mxu1  ;;  %v1761_v32 = vrot.slane %v1737_v36, 1  ;;  %v2350_v53 = vrot.slane %v2327_v59, 1 }
 0x497   :  { %7343 = vst [vmem:[#allocation34_spill] sm:$0xff] %v6053_v7  ;;  %v2540_v1 = vrot.slane %v2059_v30, 1  ;;  %v1788_v43 = vrot.slane %v795_v15, 1  ;;  %v6057_v42 = vsel %vm1747_vm10, %v2088_v33, %v2090_v47  ;;  %v6060_v54 = vmul.f32 %v5626_v39, %v795_v15 }
 0x498   :  { %v6063_v2 = vmul.f32 %v5623_v38, %v795_v15  ;;  %v6065_v45 = vpop.f32.mrf.mxu1  ;;  %v6068_v61 = vsel %vm1747_vm10, %v1759_v26, %v1761_v32  ;;  %v6071_v17 = vmul.f32 %v5755_v16, %v795_v15  ;;  %v6074_v28 = vsel %vm1747_vm10, %v2348_v10, %v2350_v53 }
 0x499   :  { %7345 = vst [vmem:[#allocation36_spill] sm:$0xff] %v6074_v28  ;;  %v6077_v33 = vmul.f32 %v5752_v3, %v795_v15  ;;  %v1789_v39 = vsel %vm1747_vm10, %v1786_v56, %v1788_v43  ;;  %v7303_v36 = vrot.slane %v6060_v54, 1  ;;  %v6087_v10 = vsel %vm1747_vm10, %v2538_v31, %v2540_v1 }
 0x49a   :  { %7344 = vst [vmem:[#allocation35_spill] sm:$0xff] %v6071_v17  ;;  %v7302_v38 = vrot.slane %v6063_v2, 1  ;;  %1806 = vrot.lane.b32.xlu0 %v1788_v43, %s5099_s11  ;;  %1804 = vrot.lane.b32.xlu1 %v1789_v39, %s5099_s11  ;;  %v4358_v26 = vpop.f32.mrf.mxu1  ;;  %v7304_v59 = vrot.slane %v6071_v17, 1  ;;  %7347 = vst [vmem:[#allocation38_spill] sm:$0xff] %v6087_v10 }
 0x49b   :  { %7346 = vst [vmem:[#allocation37_spill] sm:$0xff] %v6077_v33  ;;  %v7305_v30 = vrot.slane %v6077_v33, 1  ;;  %v6092_v3 = vsel %vm1747_vm10, %v2090_v47, %v7303_v36 }
 0x49c   :  { %v6097_v56 = vsel %vm1747_vm10, %v1761_v32, %v7302_v38  ;;  %v6099_v43 = vpop.f32.mrf.mxu1  ;;  %v6104_v15 = vsel %vm1747_vm10, %v2350_v53, %v7304_v59 }
 0x49d   :  { %7348 = vst [vmem:[#allocation39_spill] sm:$0xff] %v6104_v15  ;;  %v6109_v31 = vsel %vm1747_vm10, %v2540_v1, %v7305_v30 }
 0x49e   :  { %7349 = vst [vmem:[#allocation40_spill] sm:$0xff] %v6109_v31  ;;  %v4361_v5 = vpop.f32.mrf.mxu1 }
 0x4a0   :  { %v6111_v47 = vpop.f32.mrf.mxu1 }
 0x4a2   :  { %v4364_v9 = vpop.f32.mrf.mxu1 }
 0x4a3   :  { %v1261_v9 = vsel %vm996_vm12, %v6065_v45, -inf }
 0x4a4   :  { %v6113_v39 = vpop.f32.mrf.mxu1 }
 0x4a6   :  { %v4367_v32 = vpop.f32.mrf.mxu1 }
 0x4a8   :  { %v6115_v26 = vpop.f32.mrf.mxu1 }
 0x4aa   :  { %v4370_v38 = vpop.f32.mrf.mxu1 }
 0x4ab   :  { %v1000_v38 = vsel %vm996_vm12, %v5964_v52, -inf }
 0x4ac   :  { %v6117_v36 = vpop.f32.mrf.mxu1 }
 0x4ae   :  { %v4373_v10 = vpop.f32.mrf.mxu1 }
 0x4af   :  { %v997_v10 = vsel %vm996_vm12, %v5960_v37, -inf }
 0x4b0   :  { %v6119_v53 = vpop.f32.mrf.mxu1 }
 0x4b2   :  { %v4376_v59 = vpop.f32.mrf.mxu1 }
 0x4b3   :  { %v1264_v59 = vsel %vm996_vm12, %v6099_v43, -inf }
 0x4b4   :  { %v6121_v7 = vpop.f32.mrf.mxu1 }
 0x4b6   :  { %v4379_v1 = vpop.f32.mrf.mxu1 }
 0x4b7   :  { %v1003_v1 = vsel %vm996_vm12, %v5967_v21, -inf }
 0x4b8   :  { %v6123_v5 = vpop.f32.mrf.mxu1 }
 0x4b9   :  { %1262 = vmax.xlane.f32.xlu0 %v1261_v9  ;;  %v1267_v9 = vsel %vm996_vm12, %v6111_v47, -inf }
 0x4ba   :  { %v4382_v32 = vpop.f32.mrf.mxu1 }
 0x4bb   :  { %v1006_v32 = vsel %vm996_vm12, %v5969_v25, -inf }
 0x4bd   :  { %1001 = vmax.xlane.f32.xlu0 %v1000_v38  ;;  %v1270_v38 = vsel %vm996_vm12, %v6113_v39, -inf }
 0x4be   :  { %998 = vmax.xlane.f32.xlu1 %v997_v10  ;;  %v1009_v10 = vsel %vm996_vm12, %v5971_v49, -inf }
 0x4c1   :  { %1265 = vmax.xlane.f32.xlu0 %v1264_v59  ;;  %v1273_v59 = vsel %vm996_vm12, %v6115_v26, -inf }
 0x4c2   :  { %1004 = vmax.xlane.f32.xlu1 %v1003_v1  ;;  %v1012_v1 = vsel %vm996_vm12, %v5973_v0, -inf }
 0x4c5   :  { %1268 = vmax.xlane.f32.xlu0 %v1267_v9  ;;  %v1279_v9 = vsel %vm996_vm12, %v6119_v53, -inf }
 0x4c6   :  { %1007 = vmax.xlane.f32.xlu1 %v1006_v32  ;;  %v1276_v32 = vsel %vm996_vm12, %v6117_v36, -inf }
 0x4c9   :  { %1271 = vmax.xlane.f32.xlu0 %v1270_v38  ;;  %v1282_v38 = vsel %vm996_vm12, %v6121_v7, -inf }
 0x4ca   :  { %1010 = vmax.xlane.f32.xlu1 %v1009_v10  ;;  %v1015_v10 = vsel %vm996_vm12, %v5975_v50, -inf }
 0x4cd   :  { %1274 = vmax.xlane.f32.xlu0 %v1273_v59  ;;  %v1018_v59 = vsel %vm996_vm12, %v5977_v46, -inf }
 0x4ce   :  { %1013 = vmax.xlane.f32.xlu1 %v1012_v1  ;;  %v1022_v1 = vsel %vm1021_vm13, %v5979_v40, -inf }
 0x4d1   :  { %1280 = vmax.xlane.f32.xlu0 %v1279_v9  ;;  %v1367_v9 = vmul.f32 %v5755_v16, %v5568_v4  ;;  %v1285_v4 = vsel %vm1021_vm13, %v6123_v5, -inf }
 0x4d2   :  { %1277 = vmax.xlane.f32.xlu1 %v1276_v32  ;;  %v1368_v32 = vmul.f32 %v5755_v16, %v5555_v8 }
 0x4d5   :  { %1283 = vmax.xlane.f32.xlu0 %v1282_v38  ;;  %v1366_v38 = vmul.f32 %v5755_v16, %v5573_v13 }
 0x4d6   :  { %1016 = vmax.xlane.f32.xlu1 %v1015_v10  ;;  %v1365_v10 = vmul.f32 %v5755_v16, %v5578_v11 }
 0x4da   :  { %1019 = vmax.xlane.f32.xlu1 %v1018_v59  ;;  %v6177_v59 = vpop.permute.xlu1 %1794 }
 0x4de   :  { %1023 = vmax.xlane.f32.xlu1 %v1022_v1 }
 0x4eb   :  { %1388 = vrot.lane.b32.xlu0 %v1367_v9, %s5104_s12 }
 0x4ef   :  { %1390 = vrot.lane.b32.xlu1 %v1368_v32, %s5104_s12  ;;  %1792 = vrot.lane.b32.xlu0 %v5742_v27, %s5099_s11 }
 0x4f3   :  { %1386 = vrot.lane.b32.xlu0 %v1366_v38, %s5104_s12 }
 0x4f7   :  { %1384 = vrot.lane.b32.xlu0 %v1365_v10, %s5104_s12 }
 0x4fc   :  { %v6181_v27 = vpop.permute.xlu1 %1796 }
 0x500   :  { %v6175_v8 = vpop.permute.xlu0 %1798 }
 0x504   :  { %v6185_v9 = vpop.permute.xlu1 %1800 }
 0x508   :  { %v6179_v1 = vpop.permute.xlu0 %1802 }
 0x50c   :  { %v6183_v13 = vpop.permute.xlu0 %1806  ;;  %v6187_v11 = vpop.permute.xlu1 %1804 }
 0x516   :  { %1286 = vmax.xlane.f32.xlu0 %v1285_v4 }
 0x542   :  { %v1263_v32 = vpop.xlane.xlu0 %1262 }
 0x543   :  { %v1288_v38 = vsub.f32 %v6065_v45, %v1263_v32 }
 0x545   :  { %v1297_v10 = vmul.f32 1.442695, %v1288_v38 }
 0x546   :  { %v1002_v30 = vpop.xlane.xlu0 %1001 }
 0x547   :  { %4892 = vpow2.f32 %v1297_v10  ;;  %v1026_v4 = vsub.f32 %v5964_v52, %v1002_v30  ;;  %v999_v31 = vpop.xlane.xlu1 %998 }
 0x548   :  { %v1025_v33 = vsub.f32 %v5960_v37, %v999_v31 }
 0x549   :  { %v1036_v35 = vmul.f32 1.442695, %v1026_v4 }
 0x54a   :  { %v1034_v12 = vmul.f32 1.442695, %v1025_v33  ;;  %v1266_v15 = vpop.xlane.xlu0 %1265 }
 0x54b   :  { %v1289_v20 = vsub.f32 %v6099_v43, %v1266_v15  ;;  %v1005_v24 = vpop.xlane.xlu1 %1004 }
 0x54c   :  { %4894 = vpow2.f32 %v1034_v12  ;;  %v1027_v17 = vsub.f32 %v5967_v21, %v1005_v24 }
 0x54d   :  { %4896 = vpow2.f32 %v1036_v35  ;;  %v1299_v28 = vmul.f32 1.442695, %v1289_v20 }
 0x54e   :  { %v1269_v45 = vpop.xlane.xlu0 %1268  ;;  %v1038_v37 = vmul.f32 1.442695, %v1027_v17 }
 0x54f   :  { %v1290_v32 = vsub.f32 %v6111_v47, %v1269_v45  ;;  %v1008_v38 = vpop.xlane.xlu1 %1007  ;;  %4898 = vpow2.f32 %v1299_v28 }
 0x550   :  { %v1028_v52 = vsub.f32 %v5969_v25, %v1008_v38 }
 0x551   :  { %v1301_v30 = vmul.f32 1.442695, %v1290_v32 }
 0x552   :  { %v1040_v31 = vmul.f32 1.442695, %v1028_v52  ;;  %v1272_v33 = vpop.xlane.xlu0 %1271 }
 0x553   :  { %4900 = vpow2.f32 %v1301_v30  ;;  %v1291_v43 = vsub.f32 %v6113_v39, %v1272_v33  ;;  %v1011_v15 = vpop.xlane.xlu1 %1010 }
 0x554   :  { %v6197_v12 = vpop.eup %4892  ;;  %v1029_v35 = vsub.f32 %v5971_v49, %v1011_v15  ;;  %4902 = vpow2.f32 %v1040_v31 }
 0x555   :  { %v1303_v21 = vmul.f32 1.442695, %v1291_v43  ;;  %v1315_v20 = vsel %vm996_vm12, %v6197_v12, 0.0  ;;  %4904 = vpow2.f32 %v1038_v37 }
 0x556   :  { %v1042_v25 = vmul.f32 1.442695, %v1029_v35  ;;  %v1275_v24 = vpop.xlane.xlu0 %1274  ;;  %1316 = vadd.xlane.f32.xlu1 %v1315_v20 }
 0x557   :  { %v1292_v17 = vsub.f32 %v6115_v26, %v1275_v24  ;;  %v1014_v28 = vpop.xlane.xlu1 %1013  ;;  %4906 = vpow2.f32 %v1303_v21 }
 0x558   :  { %v1030_v47 = vsub.f32 %v5973_v0, %v1014_v28  ;;  %4908 = vpow2.f32 %v1042_v25 }
 0x559   :  { %v6204_v39 = vpop.eup %4894  ;;  %v1305_v10 = vmul.f32 1.442695, %v1292_v17 }
 0x55a   :  { %v1044_v49 = vmul.f32 1.442695, %v1030_v47  ;;  %v1281_v4 = vpop.xlane.xlu0 %1280  ;;  %v1052_v45 = vsel %vm996_vm12, %v6204_v39, 0.0  ;;  %v6208_v32 = vpop.eup %4896 }
 0x55b   :  { %v1278_v38 = vpop.xlane.xlu1 %1277  ;;  %1053 = vadd.xlane.f32.xlu0 %v1052_v45  ;;  %v1294_v26 = vsub.f32 %v6119_v53, %v1281_v4  ;;  %v1055_v37 = vsel %vm996_vm12, %v6208_v32, 0.0 }
 0x55c   :  { %v1293_v52 = vsub.f32 %v6117_v36, %v1278_v38  ;;  %4910 = vpow2.f32 %v1044_v49  ;;  %v6216_v31 = vpop.eup %4898 }
 0x55d   :  { %4912 = vpow2.f32 %v1305_v10  ;;  %v1309_v35 = vmul.f32 1.442695, %v1294_v26  ;;  %v1318_v25 = vsel %vm996_vm12, %v6216_v31, 0.0 }
 0x55e   :  { %v1307_v0 = vmul.f32 1.442695, %v1293_v52  ;;  %v6212_v30 = vpop.xlane.xlu0 %1283 }
 0x55f   :  { %v1017_v33 = vpop.xlane.xlu1 %1016  ;;  %1056 = vadd.xlane.f32.xlu0 %v1055_v37 }
 0x560   :  { %v6218_v43 = vpop.eup %4900  ;;  %v1031_v15 = vsub.f32 %v5975_v50, %v1017_v33  ;;  %4914 = vpow2.f32 %v1307_v0 }
 0x561   :  { %v1321_v36 = vsel %vm996_vm12, %v6218_v43, 0.0  ;;  %v6223_v53 = vpop.eup %4902 }
 0x562   :  { %v1046_v21 = vmul.f32 1.442695, %v1031_v15  ;;  %1322 = vadd.xlane.f32.xlu1 %v1321_v36  ;;  %v1389_v20 = vpop.permute.xlu0 %1388  ;;  %v6227_v24 = vpop.eup %4904  ;;  %v1061_v28 = vsel %vm996_vm12, %v6223_v53, 0.0 }
 0x563   :  { %v1020_v17 = vpop.xlane.xlu1 %1019  ;;  %1319 = vadd.xlane.f32.xlu0 %v1318_v25  ;;  %v1058_v4 = vsel %vm996_vm12, %v6227_v24, 0.0 }
 0x564   :  { %4916 = vpow2.f32 %v1046_v21  ;;  %v1032_v50 = vsub.f32 %v5977_v46, %v1020_v17  ;;  %v6232_v47 = vpop.eup %4906 }
 0x565   :  { %4918 = vpow2.f32 %v1309_v35  ;;  %v6238_v45 = vpop.eup %4908  ;;  %v1324_v46 = vsel %vm996_vm12, %v6232_v47, 0.0 }
 0x566   :  { %v1048_v10 = vmul.f32 1.442695, %v1032_v50  ;;  %1062 = vadd.xlane.f32.xlu1 %v1061_v28  ;;  %v6234_v49 = vpop.permute.xlu0 %1792  ;;  %v1064_v37 = vsel %vm996_vm12, %v6238_v45, 0.0 }
 0x567   :  { %v1024_v38 = vpop.xlane.xlu1 %1023  ;;  %1059 = vadd.xlane.f32.xlu0 %v1058_v4 }
 0x568   :  { %v1033_v52 = vsub.f32 %v5979_v40, %v1024_v38  ;;  %4920 = vpow2.f32 %v1048_v10 }
 0x569   :  { %v6243_v26 = vpop.eup %4910 }
 0x56a   :  { %v1050_v0 = vmul.f32 1.442695, %v1033_v52  ;;  %1325 = vadd.xlane.f32.xlu1 %v1324_v46  ;;  %v6247_v33 = vpop.eup %4912  ;;  %v1387_v15 = vpop.permute.xlu0 %1386  ;;  %v1067_v40 = vsel %vm996_vm12, %v6243_v26, 0.0 }
 0x56b   :  { %v1391_v35 = vpop.permute.xlu1 %1390  ;;  %1065 = vadd.xlane.f32.xlu0 %v1064_v37  ;;  %v1327_v21 = vsel %vm996_vm12, %v6247_v33, 0.0  ;;  %v7350_v37 = vrot.slane %v5713_v44, 1 }
 0x56c   :  { %4922 = vpow2.f32 %v1050_v0  ;;  %4392 = vmatpush3.msra.mxu0 %v1391_v35  ;;  %v1773_v0 = vrot.slane %v5558_v60, 1  ;;  %v1364_v35 = vmul.f32 %v5755_v16, %v5583_v14 }
 0x56d   :  { %4393 = vmatprep.subr.mxu0 %v7325_v58  ;;  %v6252_v36 = vpop.eup %4914 }
 0x56e   :  { %1068 = vadd.xlane.f32.xlu1 %v1067_v40  ;;  %4394 = vmatpush3.msra.mxu0 %v1389_v20  ;;  %v1385_v17 = vpop.permute.xlu0 %1384  ;;  %v1330_v50 = vsel %vm996_vm12, %v6252_v36, 0.0  ;;  %v1295_v40 = vsub.f32 %v6121_v7, %v6212_v30 }
 0x56f   :  { %4395 = vmatprep.subr.mxu0 %v7325_v58  ;;  %1328 = vadd.xlane.f32.xlu0 %v1327_v21 }
 0x570   :  { %4396 = vmatpush3.msra.mxu0 %v1387_v15  ;;  %v1775_v15 = vsel %vm1747_vm10, %v1773_v0, %v7350_v37  ;;  %v1311_v21 = vmul.f32 1.442695, %v1295_v40 }
 0x571   :  { %v6257_v25 = vpop.eup %4916  ;;  %4397 = vmatprep.subr.mxu0 %v7325_v58 }
 0x572   :  { %v6262_v28 = vpop.eup %4918  ;;  %1331 = vadd.xlane.f32.xlu1 %v1330_v50  ;;  %4398 = vmatpush3.msra.mxu0 %v1385_v17  ;;  %v1070_v20 = vsel %vm996_vm12, %v6257_v25, 0.0  ;;  %4924 = vpow2.f32 %v1311_v21 }
 0x573   :  { %1071 = vadd.xlane.f32.xlu0 %v1070_v20  ;;  %4399 = vmatprep.subr.mxu0 %v7325_v58  ;;  %v1333_v10 = vsel %vm996_vm12, %v6262_v28, 0.0 }
 0x575   :  { %v6269_v4 = vpop.eup %4920 }
 0x576   :  { %1334 = vadd.xlane.f32.xlu1 %v1333_v10  ;;  %v1073_v52 = vsel %vm996_vm12, %v6269_v4, 0.0 }
 0x579   :  { %v6271_v38 = vpop.eup %4922 }
 0x57a   :  { %1074 = vadd.xlane.f32.xlu1 %v1073_v52  ;;  %v1076_v46 = vsel %vm1021_vm13, %v6271_v38, 0.0 }
 0x57b   :  { %1077 = vadd.xlane.f32.xlu0 %v1076_v46 }
 0x57f   :  { %v6288_v44 = vpop.eup %4924 }
 0x580   :  { %v1336_v20 = vsel %vm996_vm12, %v6288_v44, 0.0 }
 0x58b   :  { %1790 = vrot.lane.b32.xlu1 %v1775_v15, %s5099_s11 }
 0x591   :  { %1382 = vrot.lane.b32.xlu0 %v1364_v35, %s5104_s12 }
 0x59f   :  { %v1287_v17 = vpop.xlane.xlu0 %1286 }
 0x5a0   :  { %v1296_v50 = vsub.f32 %v6123_v5, %v1287_v17 }
 0x5a2   :  { %v1313_v60 = vmul.f32 1.442695, %v1296_v50 }
 0x5a4   :  { %4926 = vpow2.f32 %v1313_v60 }
 0x5b0   :  { %1337 = vadd.xlane.f32.xlu0 %v1336_v20 }
 0x5b1   :  { %v6292_v10 = vpop.eup %4926 }
 0x5b2   :  { %v1339_v14 = vsel %vm1021_vm13, %v6292_v10, 0.0 }
 0x5b3   :  { %1340 = vadd.xlane.f32.xlu1 %v1339_v14 }
 0x5df   :  { %v1317_v7 = vpop.xlane.xlu1 %1316 }
 0x5e4   :  { %v1054_v16 = vpop.xlane.xlu0 %1053 }
 0x5e5   :  { %4928 = vrcp.f32 %v1054_v16 }
 0x5e8   :  { %v1057_v30 = vpop.xlane.xlu0 %1056 }
 0x5e9   :  { %4930 = vrcp.f32 %v1057_v30 }
 0x5eb   :  { %v1323_v5 = vpop.xlane.xlu1 %1322 }
 0x5ec   :  { %v1320_v52 = vpop.xlane.xlu0 %1319 }
 0x5ef   :  { %v1063_v46 = vpop.xlane.xlu1 %1062 }
 0x5f0   :  { %v1060_v0 = vpop.xlane.xlu0 %1059 }
 0x5f1   :  { %4932 = vrcp.f32 %v1060_v0 }
 0x5f2   :  { %v4929_v37 = vpop.eup %4928  ;;  %4934 = vrcp.f32 %v1063_v46 }
 0x5f3   :  { %v1088_v15 = vmul.f32 %v4929_v37, %v6204_v39  ;;  %v1326_v35 = vpop.xlane.xlu1 %1325 }
 0x5f4   :  { %v1066_v40 = vpop.xlane.xlu0 %1065 }
 0x5f5   :  { %4447 = vmatmul.mubr.msk.f32.vlgmr.msra.gmra.mxu1 %vm996_vm12, %v1088_v15  ;;  %4936 = vrcp.f32 %v1066_v40 }
 0x5f6   :  { %v4931_v21 = vpop.eup %4930  ;;  %4519 = vmatpush3.xpose.msk.msra.mxu1 %vm288_vm3, %v6183_v13  ;;  %4449 = vmatprep.mubr.msk.f32.mxu1 %vm5101_vm4, %v7325_v58  ;;  %4938 = vrcp.f32 %v1317_v7 }
 0x5f7   :  { %v1069_v17 = vpop.xlane.xlu1 %1068  ;;  %4520 = vmatprep.subr.mxu1 %v7325_v58  ;;  %v1089_v50 = vmul.f32 %v4931_v21, %v6208_v32 }
 0x5f8   :  { %v1329_v39 = vpop.xlane.xlu0 %1328  ;;  %4940 = vrcp.f32 %v1069_v17 }
 0x5f9   :  { %4450 = vmatmul.mubr.msk.f32.gmra.mxu1 %vm996_vm12, %v1089_v50  ;;  %4942 = vrcp.f32 %v1320_v52 }
 0x5fa   :  { %4521 = vmatpush3.xpose.msk.msra.mxu1 %vm288_vm3, %v6187_v11  ;;  %4452 = vmatprep.mubr.msk.f32.mxu1 %vm5101_vm4, %v7325_v58 }
 0x5fb   :  { %v1332_v60 = vpop.xlane.xlu1 %1331  ;;  %4522 = vmatprep.subr.mxu1 %v7325_v58 }
 0x5fc   :  { %v1072_v20 = vpop.xlane.xlu0 %1071 }
 0x5fd   :  { %4944 = vrcp.f32 %v1072_v20 }
 0x5fe   :  { %v4933_v14 = vpop.eup %4932  ;;  %4523 = vmatpush3.xpose.msk.msra.mxu1 %vm288_vm3, %v6179_v1  ;;  %4946 = vrcp.f32 %v1323_v5 }
 0x5ff   :  { %v1335_v32 = vpop.xlane.xlu1 %1334  ;;  %4524 = vmatprep.subr.mxu1 %v7325_v58  ;;  %v1090_v16 = vmul.f32 %v4933_v14, %v6227_v24  ;;  %v4935_v7 = vpop.eup %4934  ;;  %4948 = vrcp.f32 %v1326_v35 }
 0x600   :  { %v1091_v52 = vmul.f32 %v4935_v7, %v6223_v53 }
 0x601   :  { %4453 = vmatmul.mubr.msk.f32.gmra.mxu1 %vm996_vm12, %v1090_v16 }
 0x602   :  { %4525 = vmatpush3.xpose.msk.msra.mxu1 %vm288_vm3, %v6185_v9  ;;  %4455 = vmatprep.mubr.msk.f32.mxu1 %vm5101_vm4, %v7325_v58  ;;  %v4937_v46 = vpop.eup %4936 }
 0x603   :  { %v1075_v30 = vpop.xlane.xlu1 %1074  ;;  %4526 = vmatprep.subr.mxu1 %v7325_v58  ;;  %v4939_v24 = vpop.eup %4938  ;;  %v1092_v5 = vmul.f32 %v4937_v46, %v6238_v45 }
 0x604   :  { %4950 = vrcp.f32 %v1075_v30  ;;  %v1078_v0 = vpop.xlane.xlu0 %1077  ;;  %v1351_v53 = vmul.f32 %v4939_v24, %v6197_v12 }
 0x605   :  { %4456 = vmatmul.mubr.msk.f32.gmra.mxu1 %vm996_vm12, %v1091_v52  ;;  %4952 = vrcp.f32 %v1078_v0  ;;  %v4941_v37 = vpop.eup %4940 }
 0x606   :  { %4527 = vmatpush3.xpose.msk.msra.mxu1 %vm288_vm3, %v6175_v8  ;;  %4458 = vmatprep.mubr.msk.f32.mxu1 %vm5101_vm4, %v7325_v58  ;;  %4954 = vrcp.f32 %v1329_v39  ;;  %v4943_v35 = vpop.eup %4942  ;;  %v1093_v45 = vmul.f32 %v4941_v37, %v6243_v26 }
 0x607   :  { %4528 = vmatprep.subr.mxu1 %v7325_v58  ;;  %4956 = vrcp.f32 %v1332_v60  ;;  %v1352_v12 = vmul.f32 %v4943_v35, %v6216_v31  ;;  %v1791_v39 = vpop.permute.xlu1 %1790  ;;  %v2077_v60 = vrot.slane %v5942_v48, 1 }
 0x608   :  { %v1383_v15 = vpop.permute.xlu0 %1382  ;;  %4958 = vrcp.f32 %v1335_v32 }
 0x609   :  { %4400 = vmatpush3.msra.mxu0 %v1383_v15  ;;  %4459 = vmatmul.mubr.msk.f32.gmra.mxu1 %vm996_vm12, %v1092_v5 }
 0x60a   :  { %4529 = vmatpush3.xpose.msk.msra.mxu1 %vm288_vm3, %v6181_v27  ;;  %4402 = vmatmul.mubr.msk.f32.vlgmr.msra.gmra.mxu0 %vm996_vm12, %v1351_v53  ;;  %v4945_v40 = vpop.eup %4944 }
 0x60b   :  { %4473 = vmatprep.subr.mxu0 %v7325_v58  ;;  %4461 = vmatprep.mubr.msk.f32.mxu1 %vm5101_vm4, %v7325_v58  ;;  %v4947_v21 = vpop.eup %4946 }
 0x60c   :  { %4474 = vmatpush3.xpose.msk.msra.mxu0 %vm288_vm3, %v6183_v13  ;;  %4530 = vmatprep.subr.mxu1 %v7325_v58  ;;  %v1094_v13 = vmul.f32 %v4945_v40, %v6257_v25  ;;  %v4949_v26 = vpop.eup %4948  ;;  %v1353_v31 = vmul.f32 %v4947_v21, %v6218_v43 }
 0x60d   :  { %4404 = vmatprep.mubr.msk.f32.mxu0 %vm5101_vm4, %v7325_v58  ;;  %4462 = vmatmul.mubr.msk.f32.gmra.mxu1 %vm996_vm12, %v1093_v45  ;;  %v1354_v43 = vmul.f32 %v4949_v26, %v6232_v47 }
 0x60e   :  { %4531 = vmatpush3.xpose.msk.msra.mxu1 %vm288_vm3, %v6177_v59  ;;  %4405 = vmatmul.mubr.msk.f32.gmra.mxu0 %vm996_vm12, %v1352_v12 }
 0x60f   :  { %4475 = vmatprep.subr.mxu0 %v7325_v58  ;;  %4464 = vmatprep.mubr.msk.f32.mxu1 %vm5101_vm4, %v7325_v58 }
 0x610   :  { %4476 = vmatpush3.xpose.msk.msra.mxu0 %vm288_vm3, %v6187_v11  ;;  %4532 = vmatprep.subr.mxu1 %v7325_v58 }
 0x611   :  { %v4951_v17 = vpop.eup %4950  ;;  %4407 = vmatprep.mubr.msk.f32.mxu0 %vm5101_vm4, %v7325_v58  ;;  %4465 = vmatmul.mubr.msk.f32.gmra.mxu1 %vm996_vm12, %v1094_v13 }
 0x612   :  { %4533 = vmatpush3.xpose.msk.msra.mxu1 %vm288_vm3, %v6234_v49  ;;  %4408 = vmatmul.mubr.msk.f32.gmra.mxu0 %vm996_vm12, %v1353_v31  ;;  %v1095_v25 = vmul.f32 %v4951_v17, %v6269_v4  ;;  %v4953_v11 = vpop.eup %4952 }
 0x613   :  { %4477 = vmatprep.subr.mxu0 %v7325_v58  ;;  %4467 = vmatprep.mubr.msk.f32.mxu1 %vm5101_vm4, %v7325_v58  ;;  %v4955_v50 = vpop.eup %4954 }
 0x614   :  { %4478 = vmatpush3.xpose.msk.msra.mxu0 %vm288_vm3, %v6179_v1  ;;  %4534 = vmatprep.subr.mxu1 %v7325_v58  ;;  %v1096_v1 = vmul.f32 %v4953_v11, %v6271_v38  ;;  %v1355_v47 = vmul.f32 %v4955_v50, %v6247_v33  ;;  %v4957_v4 = vpop.eup %4956 }
 0x615   :  { %4410 = vmatprep.mubr.msk.f32.mxu0 %vm5101_vm4, %v7325_v58  ;;  %4468 = vmatmul.mubr.msk.f32.gmra.mxu1 %vm996_vm12, %v1095_v25  ;;  %v1356_v38 = vmul.f32 %v4957_v4, %v6252_v36  ;;  %v4959_v48 = vpop.eup %4958 }
 0x616   :  { %4535 = vmatpush3.xpose.msk.msra.mxu1 %vm288_vm3, %v1791_v39  ;;  %4411 = vmatmul.mubr.msk.f32.gmra.mxu0 %vm996_vm12, %v1354_v43 }
 0x617   :  { %4479 = vmatprep.subr.mxu0 %v7325_v58  ;;  %4470 = vmatprep.mubr.msk.f32.mxu1 %vm5101_vm4, %v7325_v58 }
 0x618   :  { %4480 = vmatpush3.xpose.msk.msra.mxu0 %vm288_vm3, %v6185_v9  ;;  %4413 = vmatprep.mubr.msk.f32.mxu0 %vm5101_vm4, %v7325_v58  ;;  %v7351_v9 = vrot.slane %v5719_v6, 1  ;;  %v1357_v6 = vmul.f32 %v4959_v48, %v6262_v28 }
 0x619   :  { %4471 = vmatmul.mubr.msk.f32.gmra.mxu1 %vm996_vm12, %v1096_v1  ;;  %4481 = vmatprep.subr.mxu0 %v7325_v58 }
 0x61a   :  { %4414 = vmatmul.mubr.msk.f32.gmra.mxu0 %vm996_vm12, %v1355_v47  ;;  %4536 = vmatprep.mubr.msk.f32.mxu1 %vm5101_vm4, %v7325_v58  ;;  %v2079_v33 = vsel %vm1747_vm10, %v2077_v60, %v7351_v9 }
 0x61b   :  { %4416 = vmatprep.mubr.msk.f32.mxu0 %vm5101_vm4, %v7325_v58  ;;  %4819 = vmatprep.subr.mxu1 %v7325_v58 }
 0x61c   :  { %4482 = vmatpush3.xpose.msk.msra.mxu0 %vm288_vm3, %v6175_v8  ;;  %v7353_v8 = vrot.slane %v5726_v19, 1 }
 0x61d   :  { %4537 = vmatmul.mubr.msk.f32.vlgmr.msra.gmra.mxu1 %vm288_vm3, %v2079_v33  ;;  %4483 = vmatprep.subr.mxu0 %v7325_v58 }
 0x61e   :  { %4417 = vmatmul.mubr.msk.f32.gmra.mxu0 %vm996_vm12, %v1356_v38  ;;  %4539 = vmatprep.mubr.msk.f32.mxu1 %vm5101_vm4, %v7325_v58 }
 0x61f   :  { %4419 = vmatprep.mubr.msk.f32.mxu0 %vm5101_vm4, %v7325_v58 }
 0x620   :  { %4484 = vmatpush3.xpose.msk.msra.mxu0 %vm288_vm3, %v6181_v27 }
 0x621   :  { %4540 = vmatmul.mubr.msk.f32.gmra.mxu1 %vm288_vm3, %v5749_v41  ;;  %4485 = vmatprep.subr.mxu0 %v7325_v58  ;;  %v7352_v41 = vrot.slane %v6060_v54, 1  ;;  %v1748_v54 = vrot.slane %v5708_v29, 1  ;;  %v7354_v29 = vrot.slane %v6063_v2, 1 }
 0x622   :  { %4420 = vmatmul.mubr.msk.f32.gmra.mxu0 %vm996_vm12, %v1357_v6  ;;  %4542 = vmatprep.mubr.msk.f32.mxu1 %vm5101_vm4, %v7325_v58 }
 0x623   :  { %4422 = vmatprep.mubr.msk.f32.mxu0 %vm5101_vm4, %v7325_v58 }
 0x624   :  { %4486 = vmatpush3.xpose.msk.msra.mxu0 %vm288_vm3, %v6177_v59  ;;  %v1750_v59 = vsel %vm1747_vm10, %v1748_v54, %v7353_v8 }
 0x625   :  { %4543 = vmatmul.mubr.msk.f32.gmra.mxu1 %vm288_vm3, %v5812_v18  ;;  %4487 = vmatprep.subr.mxu0 %v7325_v58 }
 0x626   :  { %4545 = vmatprep.mubr.msk.f32.mxu1 %vm5101_vm4, %v7325_v58 }
 0x628   :  { %4488 = vmatpush3.xpose.msk.msra.mxu0 %vm288_vm3, %v6234_v49 }
 0x629   :  { %4546 = vmatmul.mubr.msk.f32.gmra.mxu1 %vm288_vm3, %v5994_v23  ;;  %4489 = vmatprep.subr.mxu0 %v7325_v58 }
 0x62a   :  { %4548 = vmatprep.mubr.msk.f32.mxu1 %vm5101_vm4, %v7325_v58 }
 0x62c   :  { %4490 = vmatpush3.xpose.msk.msra.mxu0 %vm288_vm3, %v1791_v39 }
 0x62d   :  { %4549 = vmatmul.mubr.msk.f32.gmra.mxu1 %vm288_vm3, %v6019_v62  ;;  %4563 = vmatprep.subr.mxu0 %v7325_v58 }
 0x62e   :  { %4551 = vmatprep.mubr.msk.f32.mxu1 %vm5101_vm4, %v7325_v58 }
 0x631   :  { %4552 = vmatmul.mubr.msk.f32.gmra.mxu1 %vm288_vm3, %v6038_v51 }
 0x632   :  { %4554 = vmatprep.mubr.msk.f32.mxu1 %vm5101_vm4, %v7325_v58 }
 0x635   :  { %4555 = vmatmul.mubr.msk.f32.gmra.mxu1 %vm288_vm3, %v6057_v42 }
 0x636   :  { %4557 = vmatprep.mubr.msk.f32.mxu1 %vm5101_vm4, %v7325_v58 }
 0x639   :  { %4558 = vmatmul.mubr.msk.f32.gmra.mxu1 %vm288_vm3, %v6092_v3  ;;  %v1338_v62 = vpop.xlane.xlu0 %1337 }
 0x63a   :  { %4960 = vrcp.f32 %v1338_v62  ;;  %4560 = vmatprep.mubr.msk.f32.mxu1 %vm5101_vm4, %v7325_v58 }
 0x63c   :  { %v1341_v23 = vpop.xlane.xlu1 %1340 }
 0x63d   :  { %4962 = vrcp.f32 %v1341_v23  ;;  %4561 = vmatmul.mubr.msk.f32.gmra.mxu1 %vm288_vm3, %v7352_v41 }
 0x63e   :  { %4593 = vmatprep.mubr.msk.f32.mxu1 %vm5101_vm4, %v7325_v58 }
 0x647   :  { %v4961_v18 = vpop.eup %4960 }
 0x648   :  { %v1358_v51 = vmul.f32 %v4961_v18, %v6288_v44 }
 0x64a   :  { %v4963_v42 = vpop.eup %4962  ;;  %4423 = vmatmul.mubr.msk.f32.gmra.mxu0 %vm996_vm12, %v1358_v51 }
 0x64b   :  { %4425 = vmatprep.mubr.msk.f32.mxu0 %vm5101_vm4, %v7325_v58  ;;  %v1359_v3 = vmul.f32 %v4963_v42, %v6292_v10 }
 0x64e   :  { %4426 = vmatmul.mubr.msk.f32.gmra.mxu0 %vm996_vm12, %v1359_v3 }
 0x64f   :  { %4491 = vmatprep.mubr.msk.f32.mxu0 %vm5101_vm4, %v7325_v58 }
 0x652   :  { %4492 = vmatmul.mubr.msk.f32.vlgmr.msra.gmra.mxu0 %vm288_vm3, %v1750_v59 }
 0x653   :  { %4494 = vmatprep.mubr.msk.f32.mxu0 %vm5101_vm4, %v7325_v58 }
 0x656   :  { %4495 = vmatmul.mubr.msk.f32.gmra.mxu0 %vm288_vm3, %v5764_v63 }
 0x657   :  { %4497 = vmatprep.mubr.msk.f32.mxu0 %vm5101_vm4, %v7325_v58 }
 0x65a   :  { %4498 = vmatmul.mubr.msk.f32.gmra.mxu0 %vm288_vm3, %v5819_v22 }
 0x65b   :  { %4500 = vmatprep.mubr.msk.f32.mxu0 %vm5101_vm4, %v7325_v58 }
 0x65e   :  { %4501 = vmatmul.mubr.msk.f32.gmra.mxu0 %vm288_vm3, %v6000_v55 }
 0x65f   :  { %4503 = vmatprep.mubr.msk.f32.mxu0 %vm5101_vm4, %v7325_v58 }
 0x662   :  { %4504 = vmatmul.mubr.msk.f32.gmra.mxu0 %vm288_vm3, %v6024_v34 }
 0x663   :  { %4506 = vmatprep.mubr.msk.f32.mxu0 %vm5101_vm4, %v7325_v58 }
 0x666   :  { %4507 = vmatmul.mubr.msk.f32.gmra.mxu0 %vm288_vm3, %v6042_v57 }
 0x667   :  { %4509 = vmatprep.mubr.msk.f32.mxu0 %vm5101_vm4, %v7325_v58 }
 0x66a   :  { %4510 = vmatmul.mubr.msk.f32.gmra.mxu0 %vm288_vm3, %v6068_v61 }
 0x66b   :  { %4512 = vmatprep.mubr.msk.f32.mxu0 %vm5101_vm4, %v7325_v58 }
 0x66e   :  { %4513 = vmatmul.mubr.msk.f32.gmra.mxu0 %vm288_vm3, %v6097_v56 }
 0x66f   :  { %4515 = vmatprep.mubr.msk.f32.mxu0 %vm5101_vm4, %v7325_v58 }
 0x672   :  { %4516 = vmatmul.mubr.msk.f32.gmra.mxu0 %vm288_vm3, %v7354_v29 }
 0x673   :  { %4581 = vmatprep.mubr.msk.f32.mxu0 %vm5101_vm4, %v7325_v58 }
 0x6b5   :  { %v1678_v19 = vpop.f32.mrf.mxu1 }
 0x6b7   :  { %v4448_v22 = vpop.f32.mrf.mxu1 }
 0x6b9   :  { %v1683_v63 = vpop.f32.mrf.mxu1 }
 0x6bb   :  { %v4451_v55 = vpop.f32.mrf.mxu1 }
 0x6c1   :  { %v1688_v34 = vpop.f32.mrf.mxu1 }
 0x6c3   :  { %v4454_v57 = vpop.f32.mrf.mxu1 }
 0x6c5   :  { %v1693_v61 = vpop.f32.mrf.mxu1 }
 0x6c7   :  { %v4457_v27 = vpop.f32.mrf.mxu1 }
 0x6c9   :  { %v1698_v49 = vpop.f32.mrf.mxu1 }
 0x6ca   :  { %v1504_v56 = vpop.f32.mrf.mxu0 }
 0x6cb   :  { %v1679_v36 = vadd.f32 %v1678_v19, %v1504_v56  ;;  %v4460_v28 = vpop.f32.mrf.mxu1  ;;  %v7355_v56 = vld [vmem:[#allocation35_spill] sm:$0xff] }
 0x6cc   :  { %v4403_v44 = vpop.f32.mrf.mxu0 }
 0x6cd   :  { %1722 = vst.msk [vmem:[#allocation2] sm:$0xff] %vm288_vm3, %v1679_v36  ;;  %v1703_v2 = vpop.f32.mrf.mxu1  ;;  %v7356_v36 = vrot.slane %v7355_v56, 1 }
 0x6ce   :  { %v1509_v10 = vpop.f32.mrf.mxu0 }
 0x6cf   :  { %v1684_v20 = vadd.f32 %v1683_v63, %v1509_v10  ;;  %v4463_v14 = vpop.f32.mrf.mxu1 }
 0x6d0   :  { %v4406_v32 = vpop.f32.mrf.mxu0  ;;  %v7358_v14 = vld [vmem:[#allocation33_spill] sm:$0xff] }
 0x6d1   :  { %1723 = vst.msk [vmem:[#allocation2 + $0x8] sm:$0xff] %vm288_vm3, %v1684_v20  ;;  %v1708_v16 = vpop.f32.mrf.mxu1 }
 0x6d2   :  { %v1514_v7 = vpop.f32.mrf.mxu0 }
 0x6d3   :  { %v1689_v30 = vadd.f32 %v1688_v34, %v1514_v7  ;;  %v4466_v52 = vpop.f32.mrf.mxu1  ;;  %v7359_v7 = vld [vmem:[#allocation31_spill] sm:$0xff] }
 0x6d4   :  { %v4409_v46 = vpop.f32.mrf.mxu0 }
 0x6d5   :  { %1724 = vst.msk [vmem:[#allocation2 + $0x10] sm:$0xff] %vm288_vm3, %v1689_v30  ;;  %v1713_v0 = vpop.f32.mrf.mxu1  ;;  %v7360_v46 = vld [vmem:[#allocation39_spill] sm:$0xff] }
 0x6d6   :  { %v1519_v24 = vpop.f32.mrf.mxu0 }
 0x6d7   :  { %v1694_v5 = vadd.f32 %v1693_v61, %v1519_v24  ;;  %v4469_v37 = vpop.f32.mrf.mxu1 }
 0x6d8   :  { %v4412_v53 = vpop.f32.mrf.mxu0  ;;  %v7362_v37 = vld [vmem:[#allocation29_spill] sm:$0xff] }
 0x6d9   :  { %1725 = vst.msk [vmem:[#allocation2 + $0x18] sm:$0xff] %vm288_vm3, %v1694_v5  ;;  %v1718_v15 = vpop.f32.mrf.mxu1  ;;  %v7363_v53 = vld [vmem:[#allocation37_spill] sm:$0xff] }
 0x6da   :  { %v1524_v35 = vpop.f32.mrf.mxu0 }
 0x6db   :  { %v1699_v45 = vadd.f32 %v1698_v49, %v1524_v35  ;;  %v4472_v40 = vpop.f32.mrf.mxu1 }
 0x6dc   :  { %v4415_v12 = vpop.f32.mrf.mxu0  ;;  %v7365_v40 = vld [vmem:[#allocation24_spill] sm:$0xff] }
 0x6dd   :  { %1726 = vst.msk [vmem:[#allocation2 + $0x20] sm:$0xff] %vm288_vm3, %v1699_v45  ;;  %v6506_v21 = vpop.f32.mrf.mxu1 }
 0x6de   :  { %v1529_v13 = vpop.f32.mrf.mxu0  ;;  %v2222_v26 = vsel %vm996_vm12, %v6506_v21, -inf }
 0x6df   :  { %v1704_v31 = vadd.f32 %v1703_v2, %v1529_v13  ;;  %2223 = vmax.xlane.f32.xlu0 %v2222_v26  ;;  %v4538_v17 = vpop.f32.mrf.mxu1  ;;  %v7357_v2 = vld [vmem:[#allocation36_spill] sm:$0xff]  ;;  %v7366_v26 = vld [vmem:[#allocation25_spill] sm:$0xff] }
 0x6e0   :  { %v4418_v25 = vpop.f32.mrf.mxu0 }
 0x6e1   :  { %1727 = vst.msk [vmem:[#allocation2 + $0x28] sm:$0xff] %vm288_vm3, %v1704_v31  ;;  %v6511_v11 = vpop.f32.mrf.mxu1  ;;  %v7367_v25 = vld [vmem:[#allocation40_spill] sm:$0xff] }
 0x6e2   :  { %v1534_v43 = vpop.f32.mrf.mxu0 }
 0x6e3   :  { %v1709_v50 = vadd.f32 %v1708_v16, %v1534_v43  ;;  %v4541_v39 = vpop.f32.mrf.mxu1 }
 0x6e4   :  { %v4421_v1 = vpop.f32.mrf.mxu0 }
 0x6e5   :  { %1728 = vst.msk [vmem:[#allocation2 + $0x30] sm:$0xff] %vm288_vm3, %v1709_v50  ;;  %v6514_v47 = vpop.f32.mrf.mxu1 }
 0x6e7   :  { %v4544_v4 = vpop.f32.mrf.mxu1 }
 0x6e9   :  { %v6516_v60 = vpop.f32.mrf.mxu1 }
 0x6eb   :  { %v4547_v9 = vpop.f32.mrf.mxu1 }
 0x6ed   :  { %v6518_v33 = vpop.f32.mrf.mxu1 }
 0x6ee   :  { %v2234_v38 = vsel %vm996_vm12, %v6518_v33, -inf }
 0x6ef   :  { %2235 = vmax.xlane.f32.xlu0 %v2234_v38  ;;  %v4550_v48 = vpop.f32.mrf.mxu1 }
 0x6f1   :  { %v6522_v6 = vpop.f32.mrf.mxu1 }
 0x6f2   :  { %v2237_v62 = vsel %vm996_vm12, %v6522_v6, -inf }
 0x6f3   :  { %2238 = vmax.xlane.f32.xlu0 %v2237_v62  ;;  %v4553_v23 = vpop.f32.mrf.mxu1 }
 0x6f5   :  { %v6526_v41 = vpop.f32.mrf.mxu1 }
 0x6f6   :  { %v2240_v18 = vsel %vm996_vm12, %v6526_v41, -inf }
 0x6f7   :  { %2241 = vmax.xlane.f32.xlu0 %v2240_v18  ;;  %v4556_v51 = vpop.f32.mrf.mxu1 }
 0x6f9   :  { %v6530_v42 = vpop.f32.mrf.mxu1 }
 0x6fa   :  { %v2243_v3 = vsel %vm996_vm12, %v6530_v42, -inf }
 0x6fb   :  { %2244 = vmax.xlane.f32.xlu0 %v2243_v3  ;;  %v4559_v54 = vpop.f32.mrf.mxu1 }
 0x6fd   :  { %v6534_v8 = vpop.f32.mrf.mxu1 }
 0x6fe   :  { %v2246_v59 = vsel %vm1021_vm13, %v6534_v8, -inf }
 0x6ff   :  { %2247 = vmax.xlane.f32.xlu0 %v2246_v59  ;;  %v4562_v29 = vpop.f32.mrf.mxu1 }
 0x70a   :  { %v1539_v19 = vpop.f32.mrf.mxu0 }
 0x70b   :  { %v1714_v22 = vadd.f32 %v1713_v0, %v1539_v19  ;;  %v7361_v0 = vld [vmem:[#allocation23_spill] sm:$0xff]  ;;  %v7368_v19 = vld [vmem:[#allocation34_spill] sm:$0xff] }
 0x70c   :  { %v4424_v63 = vpop.f32.mrf.mxu0 }
 0x70d   :  { %1729 = vst.msk [vmem:[#allocation2 + $0x38] sm:$0xff] %vm288_vm3, %v1714_v22 }
 0x70e   :  { %v1544_v55 = vpop.f32.mrf.mxu0 }
 0x70f   :  { %v1719_v34 = vadd.f32 %v1718_v15, %v1544_v55  ;;  %v7364_v15 = vrot.slane %v7363_v53, 1 }
 0x710   :  { %v4427_v57 = vpop.f32.mrf.mxu0 }
 0x711   :  { %1730 = vst.msk [vmem:[#allocation2 + $0x40] sm:$0x1] %vm278_vm2, %v1719_v34 }
 0x712   :  { %v1910_v61 = vpop.f32.mrf.mxu0 }
 0x713   :  { %v1954_v27 = vsel %vm996_vm12, %v1910_v61, -inf }
 0x714   :  { %1955 = vmax.xlane.f32.xlu1 %v1954_v27  ;;  %v4493_v49 = vpop.f32.mrf.mxu0  ;;  %v7369_v27 = vld [vmem:[#allocation30_spill] sm:$0xff] }
 0x715   :  { %2370 = vrot.lane.b32.xlu0 %v7356_v36, %s5104_s12 }
 0x716   :  { %v6544_v28 = vpop.f32.mrf.mxu0 }
 0x718   :  { %v4496_v44 = vpop.f32.mrf.mxu0 }
 0x719   :  { %2366 = vrot.lane.b32.xlu0 %v7357_v2, %s5104_s12 }
 0x71a   :  { %v6548_v10 = vpop.f32.mrf.mxu0 }
 0x71c   :  { %v4499_v20 = vpop.f32.mrf.mxu0 }
 0x71d   :  { %2364 = vrot.lane.b32.xlu0 %v7358_v14, %s5104_s12 }
 0x71e   :  { %v6552_v32 = vpop.f32.mrf.mxu0 }
 0x720   :  { %v4502_v16 = vpop.f32.mrf.mxu0 }
 0x721   :  { %2362 = vrot.lane.b32.xlu0 %v7359_v7, %s5104_s12 }
 0x722   :  { %v6556_v30 = vpop.f32.mrf.mxu0 }
 0x724   :  { %v4505_v52 = vpop.f32.mrf.mxu0 }
 0x725   :  { %2368 = vrot.lane.b32.xlu1 %v7360_v46, %s5104_s12  ;;  %2358 = vrot.lane.b32.xlu0 %v7361_v0, %s5104_s12 }
 0x726   :  { %v6562_v24 = vpop.f32.mrf.mxu0 }
 0x728   :  { %v4508_v5 = vpop.f32.mrf.mxu0 }
 0x729   :  { %2360 = vrot.lane.b32.xlu1 %v7362_v37, %s5104_s12  ;;  %2560 = vrot.lane.b32.xlu0 %v7364_v15, %s5104_s12 }
 0x72a   :  { %v6569_v35 = vpop.f32.mrf.mxu0 }
 0x72c   :  { %v4511_v45 = vpop.f32.mrf.mxu0 }
 0x72d   :  { %2356 = vrot.lane.b32.xlu1 %v7365_v40, %s5104_s12  ;;  %v7371_v40 = vld [vmem:[#allocation32_spill] sm:$0xff] }
 0x72e   :  { %v6573_v12 = vpop.f32.mrf.mxu0 }
 0x730   :  { %v4514_v13 = vpop.f32.mrf.mxu0 }
 0x731   :  { %2354 = vrot.lane.b32.xlu1 %v7366_v26, %s5104_s12  ;;  %v7372_v13 = vld [vmem:[#allocation26_spill] sm:$0xff]  ;;  %v7373_v26 = vld [vmem:[#allocation27_spill] sm:$0xff] }
 0x732   :  { %v6577_v31 = vpop.f32.mrf.mxu0 }
 0x734   :  { %v4517_v17 = vpop.f32.mrf.mxu0 }
 0x735   :  { %2558 = vrot.lane.b32.xlu1 %v7367_v25, %s5104_s12  ;;  %v7374_v17 = vld [vmem:[#allocation28_spill] sm:$0xff]  ;;  %v2228_v25 = vsel %vm996_vm12, %v6514_v47, -inf }
 0x768   :  { %v2224_v43 = vpop.xlane.xlu0 %2223 }
 0x769   :  { %v2249_v50 = vsub.f32 %v6506_v21, %v2224_v43  ;;  %v2231_v43 = vsel %vm996_vm12, %v6516_v60, -inf }
 0x76b   :  { %v2258_v39 = vmul.f32 1.442695, %v2249_v50 }
 0x76d   :  { %4964 = vpow2.f32 %v2258_v39  ;;  %v2225_v39 = vsel %vm996_vm12, %v6511_v11, -inf }
 0x778   :  { %v2236_v1 = vpop.xlane.xlu0 %2235 }
 0x779   :  { %v2253_v4 = vsub.f32 %v6518_v33, %v2236_v1 }
 0x77a   :  { %v6583_v9 = vpop.eup %4964 }
 0x77b   :  { %v2266_v38 = vmul.f32 1.442695, %v2253_v4  ;;  %v2276_v48 = vsel %vm996_vm12, %v6583_v9, 0.0 }
 0x77c   :  { %2277 = vadd.xlane.f32.xlu1 %v2276_v48  ;;  %v2239_v62 = vpop.xlane.xlu0 %2238 }
 0x77d   :  { %4966 = vpow2.f32 %v2266_v38  ;;  %v2254_v59 = vsub.f32 %v6522_v6, %v2239_v62 }
 0x77f   :  { %v2268_v55 = vmul.f32 1.442695, %v2254_v59 }
 0x780   :  { %v2242_v23 = vpop.xlane.xlu0 %2241 }
 0x781   :  { %v2255_v36 = vsub.f32 %v6526_v41, %v2242_v23 }
 0x783   :  { %v2270_v20 = vmul.f32 1.442695, %v2255_v36 }
 0x784   :  { %v6587_v18 = vpop.xlane.xlu0 %2244 }
 0x785   :  { %v2256_v14 = vsub.f32 %v6530_v42, %v6587_v18 }
 0x787   :  { %v2272_v7 = vmul.f32 1.442695, %v2256_v14 }
 0x788   :  { %v6589_v51 = vpop.xlane.xlu0 %2247 }
 0x789   :  { %v2257_v52 = vsub.f32 %v6534_v8, %v6589_v51  ;;  %v7370_v8 = vld [vmem:[#allocation38_spill] sm:$0xff] }
 0x78a   :  { %v6591_v21 = vpop.eup %4966 }
 0x78b   :  { %v2288_v3 = vsel %vm996_vm12, %v6591_v21, 0.0  ;;  %v2274_v46 = vmul.f32 1.442695, %v2257_v52 }
 0x78c   :  { %2289 = vadd.xlane.f32.xlu1 %v2288_v3  ;;  %v2371_v33 = vpop.permute.xlu0 %2370 }
 0x78d   :  { %4564 = vmatpush3.msk.msra.mxu0 %vm1435_vm11, %v2371_v33  ;;  %4828 = vmatpush3.msk.msra.mxu1 %vm1435_vm11, %v2371_v33 }
 0x78e   :  { %4565 = vmatprep.subr.mxu0 %v7325_v58  ;;  %4820 = vmatprep.subr.mxu1 %v7325_v58 }
 0x790   :  { %v2367_v54 = vpop.permute.xlu0 %2366 }
 0x794   :  { %v2365_v63 = vpop.permute.xlu0 %2364 }
 0x798   :  { %v2363_v6 = vpop.permute.xlu0 %2362 }
 0x79c   :  { %v2359_v56 = vpop.permute.xlu0 %2358 }
 0x79d   :  { %v1956_v29 = vpop.xlane.xlu1 %1955  ;;  %2554 = vrot.lane.b32.xlu1 %v7368_v19, %s5104_s12 }
 0x79e   :  { %v1981_v22 = vsub.f32 %v1910_v61, %v1956_v29 }
 0x7a0   :  { %v1990_v34 = vmul.f32 1.442695, %v1981_v22  ;;  %v2561_v18 = vpop.permute.xlu0 %2560 }
 0x7a1   :  { %v2369_v57 = vpop.permute.xlu1 %2368  ;;  %2550 = vrot.lane.b32.xlu1 %v7369_v27, %s5104_s12 }
 0x7a2   :  { %4968 = vpow2.f32 %v1990_v34  ;;  %4566 = vmatpush3.msra.mxu0 %v2369_v57  ;;  %4829 = vmatpush3.msra.mxu1 %v2369_v57 }
 0x7a3   :  { %4567 = vmatprep.subr.mxu0 %v7325_v58  ;;  %4821 = vmatprep.subr.mxu1 %v7325_v58  ;;  %4970 = vpow2.f32 %v2268_v55 }
 0x7a4   :  { %4568 = vmatpush3.msra.mxu0 %v2367_v54  ;;  %4830 = vmatpush3.msra.mxu1 %v2367_v54  ;;  %4972 = vpow2.f32 %v2270_v20 }
 0x7a5   :  { %v2361_v49 = vpop.permute.xlu1 %2360  ;;  %4569 = vmatprep.subr.mxu0 %v7325_v58  ;;  %4822 = vmatprep.subr.mxu1 %v7325_v58  ;;  %4974 = vpow2.f32 %v2272_v7 }
 0x7a6   :  { %4570 = vmatpush3.msra.mxu0 %v2365_v63  ;;  %4831 = vmatpush3.msra.mxu1 %v2365_v63  ;;  %4976 = vpow2.f32 %v2274_v46 }
 0x7a7   :  { %4571 = vmatprep.subr.mxu0 %v7325_v58  ;;  %4823 = vmatprep.subr.mxu1 %v7325_v58 }
 0x7a8   :  { %4572 = vmatpush3.msra.mxu0 %v2363_v6  ;;  %4832 = vmatpush3.msra.mxu1 %v2363_v6 }
 0x7a9   :  { %v2357_v61 = vpop.permute.xlu1 %2356  ;;  %4573 = vmatprep.subr.mxu0 %v7325_v58  ;;  %4824 = vmatprep.subr.mxu1 %v7325_v58 }
 0x7aa   :  { %4574 = vmatpush3.msra.mxu0 %v2361_v49  ;;  %4833 = vmatpush3.msra.mxu1 %v2361_v49 }
 0x7ab   :  { %4575 = vmatprep.subr.mxu0 %v7325_v58  ;;  %4825 = vmatprep.subr.mxu1 %v7325_v58 }
 0x7ac   :  { %4576 = vmatpush3.msra.mxu0 %v2359_v56  ;;  %4834 = vmatpush3.msra.mxu1 %v2359_v56 }
 0x7ad   :  { %4577 = vmatprep.subr.mxu0 %v7325_v58  ;;  %4826 = vmatprep.subr.mxu1 %v7325_v58  ;;  %v2355_v2 = vpop.permute.xlu1 %2354 }
 0x7ae   :  { %4578 = vmatpush3.msra.mxu0 %v2357_v61  ;;  %4835 = vmatpush3.msra.mxu1 %v2357_v61 }
 0x7af   :  { %v6617_v44 = vpop.eup %4968  ;;  %4579 = vmatprep.subr.mxu0 %v7325_v58  ;;  %4827 = vmatprep.subr.mxu1 %v7325_v58 }
 0x7b0   :  { %4580 = vmatpush3.msra.mxu0 %v2355_v2  ;;  %4836 = vmatpush3.msra.mxu1 %v2355_v2  ;;  %v2008_v41 = vsel %vm996_vm12, %v6617_v44, 0.0  ;;  %v6625_v16 = vpop.eup %4970 }
 0x7b1   :  { %2009 = vadd.xlane.f32.xlu0 %v2008_v41  ;;  %4608 = vmatprep.subr.mxu1 %v7325_v58  ;;  %v2291_v42 = vsel %vm996_vm12, %v6625_v16, 0.0  ;;  %v6633_v0 = vpop.eup %4972  ;;  %v2559_v50 = vpop.permute.xlu1 %2558 }
 0x7b2   :  { %4653 = vmatprep.subr.mxu0 %v7325_v58  ;;  %v2294_v5 = vsel %vm996_vm12, %v6633_v0, 0.0  ;;  %v6637_v37 = vpop.eup %4974 }
 0x7b3   :  { %v2297_v53 = vsel %vm996_vm12, %v6637_v37, 0.0  ;;  %v6641_v15 = vpop.eup %4976 }
 0x7b4   :  { %v2300_v45 = vsel %vm1021_vm13, %v6641_v15, 0.0 }
 0x7b5   :  { %2292 = vadd.xlane.f32.xlu0 %v2291_v42 }
 0x7c5   :  { %2295 = vadd.xlane.f32.xlu1 %v2294_v5 }
 0x7c9   :  { %2298 = vadd.xlane.f32.xlu1 %v2297_v53 }
 0x7cb   :  { %2556 = vrot.lane.b32.xlu0 %v7370_v8, %s5104_s12  ;;  %v6716_v8 = vld [vmem:[%s7269_s2] sm:$0xff] }
 0x7cd   :  { %2301 = vadd.xlane.f32.xlu1 %v2300_v45  ;;  %v1960_v45 = vsel %vm996_vm12, %v6548_v10, -inf }
 0x7cf   :  { %2552 = vrot.lane.b32.xlu0 %v7371_v40, %s5104_s12  ;;  %v1963_v40 = vsel %vm996_vm12, %v6552_v32, -inf }
 0x7d3   :  { %2548 = vrot.lane.b32.xlu0 %v7372_v13, %s5104_s12  ;;  %v1966_v13 = vsel %vm996_vm12, %v6556_v30, -inf }
 0x7d7   :  { %2544 = vrot.lane.b32.xlu0 %v7373_v26, %s5104_s12  ;;  %v1969_v26 = vsel %vm996_vm12, %v6562_v24, -inf }
 0x7de   :  { %2546 = vrot.lane.b32.xlu1 %v7374_v17, %s5104_s12  ;;  %v1972_v17 = vsel %vm996_vm12, %v6569_v35, -inf }
 0x7f6   :  { %2229 = vmax.xlane.f32.xlu0 %v2228_v25  ;;  %v1978_v25 = vsel %vm1021_vm13, %v6577_v31, -inf }
 0x7fa   :  { %2232 = vmax.xlane.f32.xlu0 %v2231_v43  ;;  %v1975_v43 = vsel %vm996_vm12, %v6573_v12, -inf }
 0x802   :  { %2226 = vmax.xlane.f32.xlu1 %v2225_v39 }
 0x805   :  { %v2278_v1 = vpop.xlane.xlu1 %2277 }
 0x806   :  { %4978 = vrcp.f32 %v2278_v1 }
 0x813   :  { %v4979_v4 = vpop.eup %4978 }
 0x814   :  { %v2312_v38 = vmul.f32 %v4979_v4, %v6583_v9 }
 0x815   :  { %v2290_v48 = vpop.xlane.xlu1 %2289 }
 0x816   :  { %4980 = vrcp.f32 %v2290_v48  ;;  %4582 = vmatmul.mubr.msk.f32.vlgmr.msra.gmra.mxu0 %vm996_vm12, %v2312_v38 }
 0x817   :  { %4584 = vmatprep.mubr.msk.f32.mxu0 %vm5101_vm4, %v7325_v58 }
 0x819   :  { %v2555_v3 = vpop.permute.xlu1 %2554 }
 0x81d   :  { %v2551_v54 = vpop.permute.xlu1 %2550 }
 0x823   :  { %v4981_v62 = vpop.eup %4980 }
 0x824   :  { %v2316_v23 = vmul.f32 %v4981_v62, %v6591_v21 }
 0x826   :  { %4594 = vmatmul.mubr.msk.f32.vlgmr.msra.gmra.mxu1 %vm996_vm12, %v2316_v23 }
 0x827   :  { %4609 = vmatpush3.msk.msra.mxu1 %vm1435_vm11, %v2561_v18  ;;  %4596 = vmatprep.mubr.msk.f32.mxu1 %vm5101_vm4, %v7325_v58 }
 0x828   :  { %4610 = vmatprep.subr.mxu1 %v7325_v58 }
 0x829   :  { %4611 = vmatpush3.msra.mxu1 %v2559_v50 }
 0x82a   :  { %4612 = vmatprep.subr.mxu1 %v7325_v58 }
 0x83a   :  { %v2010_v9 = vpop.xlane.xlu0 %2009 }
 0x83e   :  { %v2293_v51 = vpop.xlane.xlu0 %2292 }
 0x83f   :  { %4982 = vrcp.f32 %v2293_v51 }
 0x842   :  { %v2557_v33 = vpop.permute.xlu0 %2556 }
 0x843   :  { %4613 = vmatpush3.msra.mxu1 %v2557_v33 }
 0x844   :  { %4614 = vmatprep.subr.mxu1 %v7325_v58 }
 0x845   :  { %4615 = vmatpush3.msra.mxu1 %v2555_v3 }
 0x846   :  { %4616 = vmatprep.subr.mxu1 %v7325_v58  ;;  %v2553_v21 = vpop.permute.xlu0 %2552 }
 0x847   :  { %4617 = vmatpush3.msra.mxu1 %v2553_v21 }
 0x848   :  { %4618 = vmatprep.subr.mxu1 %v7325_v58 }
 0x849   :  { %4619 = vmatpush3.msra.mxu1 %v2551_v54 }
 0x84a   :  { %4620 = vmatprep.subr.mxu1 %v7325_v58  ;;  %v2549_v59 = vpop.permute.xlu0 %2548 }
 0x84b   :  { %4621 = vmatpush3.msra.mxu1 %v2549_v59 }
 0x84c   :  { %v4983_v29 = vpop.eup %4982  ;;  %4622 = vmatprep.subr.mxu1 %v7325_v58 }
 0x84d   :  { %v2317_v19 = vmul.f32 %v4983_v29, %v6625_v16 }
 0x84e   :  { %v2296_v22 = vpop.xlane.xlu1 %2295  ;;  %v2545_v27 = vpop.permute.xlu0 %2544 }
 0x84f   :  { %4984 = vrcp.f32 %v2296_v22  ;;  %4597 = vmatmul.mubr.msk.f32.gmra.mxu1 %vm996_vm12, %v2317_v19 }
 0x850   :  { %4599 = vmatprep.mubr.msk.f32.mxu1 %vm5101_vm4, %v7325_v58 }
 0x852   :  { %v2299_v63 = vpop.xlane.xlu1 %2298 }
 0x853   :  { %4986 = vrcp.f32 %v2299_v63 }
 0x856   :  { %v2302_v55 = vpop.xlane.xlu1 %2301 }
 0x857   :  { %4988 = vrcp.f32 %v2302_v55 }
 0x858   :  { %4990 = vrcp.f32 %v2010_v9 }
 0x85a   :  { %v2547_v34 = vpop.permute.xlu1 %2546 }
 0x85b   :  { %4623 = vmatpush3.msra.mxu1 %v2547_v34 }
 0x85c   :  { %v4985_v57 = vpop.eup %4984  ;;  %4624 = vmatprep.subr.mxu1 %v7325_v58 }
 0x85d   :  { %4625 = vmatpush3.msra.mxu1 %v2545_v27  ;;  %v2318_v6 = vmul.f32 %v4985_v57, %v6633_v0 }
 0x85e   :  { %4706 = vmatprep.subr.mxu1 %v7325_v58 }
 0x85f   :  { %4600 = vmatmul.mubr.msk.f32.gmra.mxu1 %vm996_vm12, %v2318_v6 }
 0x860   :  { %v4987_v49 = vpop.eup %4986  ;;  %4602 = vmatprep.mubr.msk.f32.mxu1 %vm5101_vm4, %v7325_v58 }
 0x861   :  { %v2319_v61 = vmul.f32 %v4987_v49, %v6637_v37 }
 0x863   :  { %4603 = vmatmul.mubr.msk.f32.gmra.mxu1 %vm996_vm12, %v2319_v61 }
 0x864   :  { %v4989_v56 = vpop.eup %4988  ;;  %4605 = vmatprep.mubr.msk.f32.mxu1 %vm5101_vm4, %v7325_v58 }
 0x865   :  { %v2320_v36 = vmul.f32 %v4989_v56, %v6641_v15  ;;  %v4991_v2 = vpop.eup %4990 }
 0x866   :  { %v2044_v20 = vmul.f32 %v4991_v2, %v6617_v44 }
 0x867   :  { %4606 = vmatmul.mubr.msk.f32.gmra.mxu1 %vm996_vm12, %v2320_v36 }
 0x868   :  { %4626 = vmatprep.mubr.msk.f32.mxu1 %vm5101_vm4, %v7325_v58 }
 0x86b   :  { %4627 = vmatmul.mubr.msk.f32.vlgmr.msra.gmra.mxu1 %vm996_vm12, %v2044_v20 }
 0x86c   :  { %4629 = vmatprep.mubr.msk.f32.mxu1 %vm5101_vm4, %v7325_v58 }
 0x87f   :  { %v2230_v14 = vpop.xlane.xlu0 %2229 }
 0x880   :  { %v2251_v41 = vsub.f32 %v6514_v47, %v2230_v14 }
 0x882   :  { %v2262_v16 = vmul.f32 1.442695, %v2251_v41 }
 0x883   :  { %v2233_v7 = vpop.xlane.xlu0 %2232 }
 0x884   :  { %4992 = vpow2.f32 %v2262_v16  ;;  %v2252_v52 = vsub.f32 %v6516_v60, %v2233_v7 }
 0x886   :  { %v2264_v0 = vmul.f32 1.442695, %v2252_v52 }
 0x88b   :  { %v2227_v42 = vpop.xlane.xlu1 %2226 }
 0x88c   :  { %v2250_v46 = vsub.f32 %v6511_v11, %v2227_v42  ;;  %v1957_v11 = vsel %vm996_vm12, %v6544_v28, -inf }
 0x88e   :  { %v2260_v5 = vmul.f32 1.442695, %v2250_v46 }
 0x890   :  { %4994 = vpow2.f32 %v2260_v5  ;;  %v2718_v5 = vld [vmem:[#allocation2] sm:$0xff] }
 0x891   :  { %v6702_v44 = vpop.eup %4992  ;;  %4996 = vpow2.f32 %v2264_v0 }
 0x892   :  { %v2282_v37 = vsel %vm996_vm12, %v6702_v44, 0.0 }
 0x893   :  { %2283 = vadd.xlane.f32.xlu0 %v2282_v37 }
 0x89d   :  { %v4995_v53 = vpop.eup %4994 }
 0x89e   :  { %v2279_v47 = vsel %vm996_vm12, %v4995_v53, 0.0  ;;  %v6707_v15 = vpop.eup %4996 }
 0x89f   :  { %2280 = vadd.xlane.f32.xlu1 %v2279_v47  ;;  %v2285_v60 = vsel %vm996_vm12, %v6707_v15, 0.0 }
 0x8a3   :  { %2286 = vadd.xlane.f32.xlu1 %v2285_v60 }
 0x8a7   :  { %1958 = vmax.xlane.f32.xlu1 %v1957_v11 }
 0x8a9   :  { %2736 = vrot.lane.b32.xlu0 %v6716_v8, %s5106_s15 }
 0x8ab   :  { %1961 = vmax.xlane.f32.xlu1 %v1960_v45 }
 0x8af   :  { %1964 = vmax.xlane.f32.xlu1 %v1963_v40  ;;  %v2720_v40 = vld [vmem:[#allocation2 + $0x10] sm:$0xff] }
 0x8b3   :  { %1967 = vmax.xlane.f32.xlu1 %v1966_v13 }
 0x8b7   :  { %1970 = vmax.xlane.f32.xlu1 %v1969_v26  ;;  %v2721_v26 = vld [vmem:[#allocation2 + $0x18] sm:$0xff] }
 0x8bb   :  { %1973 = vmax.xlane.f32.xlu1 %v1972_v17 }
 0x8bf   :  { %1979 = vmax.xlane.f32.xlu1 %v1978_v25 }
 0x8c8   :  { %1976 = vmax.xlane.f32.xlu0 %v1975_v43 }
 0x8d6   :  { %v2475_v50 = vpop.f32.mrf.mxu0 }
 0x8d8   :  { %v4583_v39 = vpop.f32.mrf.mxu0 }
 0x8e6   :  { %v6733_v1 = vpop.f32.mrf.mxu1 }
 0x8e8   :  { %v4595_v4 = vpop.f32.mrf.mxu1 }
 0x8e9   :  { %v2722_v4 = vld [vmem:[#allocation2 + $0x20] sm:$0xff] }
 0x90f   :  { %v6735_v38 = vpop.f32.mrf.mxu1 }
 0x911   :  { %v4598_v48 = vpop.f32.mrf.mxu1 }
 0x91c   :  { %v2284_v62 = vpop.xlane.xlu0 %2283 }
 0x91f   :  { %v6737_v23 = vpop.f32.mrf.mxu1 }
 0x920   :  { %v2737_v18 = vpop.permute.xlu0 %2736 }
 0x921   :  { %v4601_v9 = vpop.f32.mrf.mxu1  ;;  %4654 = vmatpush3.msra.mxu0 %v2737_v18 }
 0x922   :  { %4759 = vmatprep.subr.mxu0 %v7325_v58 }
 0x923   :  { %v6740_v51 = vpop.f32.mrf.mxu1 }
 0x925   :  { %v4604_v3 = vpop.f32.mrf.mxu1 }
 0x926   :  { %v2724_v3 = vld [vmem:[#allocation2 + $0x30] sm:$0xff] }
 0x927   :  { %v6742_v33 = vpop.f32.mrf.mxu1 }
 0x928   :  { %v2281_v21 = vpop.xlane.xlu1 %2280 }
 0x929   :  { %4998 = vrcp.f32 %v2281_v21  ;;  %v4607_v54 = vpop.f32.mrf.mxu1  ;;  %v2725_v21 = vld [vmem:[#allocation2 + $0x38] sm:$0xff] }
 0x92a   :  { %5000 = vrcp.f32 %v2284_v62 }
 0x92b   :  { %v2665_v59 = vpop.f32.mrf.mxu1 }
 0x92c   :  { %v2666_v29 = vadd.f32 %v2665_v59, %v2475_v50  ;;  %v2287_v19 = vpop.xlane.xlu1 %2286 }
 0x92d   :  { %v4628_v22 = vpop.f32.mrf.mxu1  ;;  %5002 = vrcp.f32 %v2287_v19  ;;  %v6820_v19 = vld [vmem:[%s7271_s4] ss:$0 sm:$0xff]  ;;  %s5108_s4 = smov 64  }
 0x92e   :  { %2709 = vst.msk [vmem:[#allocation2 + $0x41] sm:$0xff] %vm288_vm3, %v2666_v29 }
 0x930   :  { %v1959_v63 = vpop.xlane.xlu1 %1958 }
 0x931   :  { %v1982_v55 = vsub.f32 %v6544_v28, %v1959_v63 }
 0x933   :  { %v1992_v34 = vmul.f32 1.442695, %v1982_v55 }
 0x934   :  { %v1962_v57 = vpop.xlane.xlu1 %1961 }
 0x935   :  { %5004 = vpow2.f32 %v1992_v34  ;;  %v1983_v27 = vsub.f32 %v6548_v10, %v1962_v57  ;;  %v2726_v29 = vld [vmem:[#allocation2 + $0x40] sm:$0xff] }
 0x936   :  { %v4999_v6 = vpop.eup %4998 }
 0x937   :  { %v1994_v49 = vmul.f32 1.442695, %v1983_v27  ;;  %v2313_v61 = vmul.f32 %v4999_v6, %v4995_v53  ;;  %v5001_v56 = vpop.eup %5000 }
 0x938   :  { %v1965_v36 = vpop.xlane.xlu1 %1964  ;;  %v2314_v28 = vmul.f32 %v5001_v56, %v6702_v44 }
 0x939   :  { %5006 = vpow2.f32 %v1994_v49  ;;  %v1984_v2 = vsub.f32 %v6552_v32, %v1965_v36  ;;  %4585 = vmatmul.mubr.msk.f32.gmra.mxu0 %vm996_vm12, %v2313_v61 }
 0x93a   :  { %4587 = vmatprep.mubr.msk.f32.mxu0 %vm5101_vm4, %v7325_v58  ;;  %v5003_v14 = vpop.eup %5002 }
 0x93b   :  { %v1996_v20 = vmul.f32 1.442695, %v1984_v2  ;;  %v2315_v32 = vmul.f32 %v5003_v14, %v6707_v15  ;;  %v2719_v15 = vld [vmem:[#allocation2 + $0x8] sm:$0xff] }
 0x93c   :  { %v1968_v41 = vpop.xlane.xlu1 %1967 }
 0x93d   :  { %5008 = vpow2.f32 %v1996_v20  ;;  %v1985_v10 = vsub.f32 %v6556_v30, %v1968_v41  ;;  %4588 = vmatmul.mubr.msk.f32.gmra.mxu0 %vm996_vm12, %v2314_v28 }
 0x93e   :  { %4590 = vmatprep.mubr.msk.f32.mxu0 %vm5101_vm4, %v7325_v58 }
 0x93f   :  { %v1998_v16 = vmul.f32 1.442695, %v1985_v10 }
 0x940   :  { %v1971_v7 = vpop.xlane.xlu1 %1970 }
 0x941   :  { %5010 = vpow2.f32 %v1998_v16  ;;  %v1986_v52 = vsub.f32 %v6562_v24, %v1971_v7  ;;  %4591 = vmatmul.mubr.msk.f32.gmra.mxu0 %vm996_vm12, %v2315_v32 }
 0x942   :  { %v6759_v42 = vpop.eup %5004  ;;  %4655 = vmatprep.mubr.msk.f32.mxu0 %vm5101_vm4, %v7325_v58 }
 0x943   :  { %v2000_v30 = vmul.f32 1.442695, %v1986_v52  ;;  %v2011_v46 = vsel %vm996_vm12, %v6759_v42, 0.0 }
 0x944   :  { %2012 = vadd.xlane.f32.xlu1 %v2011_v46  ;;  %v1974_v0 = vpop.xlane.xlu1 %1973 }
 0x945   :  { %5012 = vpow2.f32 %v2000_v30  ;;  %v1987_v44 = vsub.f32 %v6569_v35, %v1974_v0  ;;  %4656 = vmatmul.mubr.msk.f32.vlgmr.msra.gmra.mxu0 %vm288_vm3, %v2718_v5 }
 0x946   :  { %v6767_v24 = vpop.eup %5006  ;;  %4658 = vmatprep.mubr.msk.f32.mxu0 %vm5101_vm4, %v7325_v58 }
 0x947   :  { %v2002_v37 = vmul.f32 1.442695, %v1987_v44  ;;  %v2014_v53 = vsel %vm996_vm12, %v6767_v24, 0.0 }
 0x948   :  { %2015 = vadd.xlane.f32.xlu1 %v2014_v53  ;;  %v1980_v47 = vpop.xlane.xlu1 %1979 }
 0x949   :  { %5014 = vpow2.f32 %v2002_v37  ;;  %v1989_v60 = vsub.f32 %v6577_v31, %v1980_v47  ;;  %4659 = vmatmul.mubr.msk.f32.gmra.mxu0 %vm288_vm3, %v2719_v15 }
 0x94a   :  { %v6775_v35 = vpop.eup %5008  ;;  %4661 = vmatprep.mubr.msk.f32.mxu0 %vm5101_vm4, %v7325_v58 }
 0x94b   :  { %v2006_v11 = vmul.f32 1.442695, %v1989_v60  ;;  %v2017_v45 = vsel %vm996_vm12, %v6775_v35, 0.0  ;;  %v7375_v60 = vld [vmem:[#allocation7_spill] sm:$0xff] }
 0x94c   :  { %2018 = vadd.xlane.f32.xlu1 %v2017_v45 }
 0x94d   :  { %5016 = vpow2.f32 %v2006_v11  ;;  %4662 = vmatmul.mubr.msk.f32.gmra.mxu0 %vm288_vm3, %v2720_v40 }
 0x94e   :  { %v6782_v13 = vpop.eup %5010  ;;  %4664 = vmatprep.mubr.msk.f32.mxu0 %vm5101_vm4, %v7325_v58 }
 0x94f   :  { %v2020_v31 = vsel %vm996_vm12, %v6782_v13, 0.0 }
 0x950   :  { %2021 = vadd.xlane.f32.xlu1 %v2020_v31 }
 0x951   :  { %4665 = vmatmul.mubr.msk.f32.gmra.mxu0 %vm288_vm3, %v2721_v26  ;;  %v1977_v17 = vpop.xlane.xlu0 %1976 }
 0x952   :  { %v6789_v25 = vpop.eup %5012  ;;  %v1988_v43 = vsub.f32 %v6573_v12, %v1977_v17  ;;  %4667 = vmatprep.mubr.msk.f32.mxu0 %vm5101_vm4, %v7325_v58  ;;  %v2723_v12 = vld [vmem:[#allocation2 + $0x28] sm:$0xff] }
 0x953   :  { %v2023_v50 = vsel %vm996_vm12, %v6789_v25, 0.0 }
 0x954   :  { %v2004_v39 = vmul.f32 1.442695, %v1988_v43  ;;  %2024 = vadd.xlane.f32.xlu1 %v2023_v50  ;;  %v7377_v50 = vld [vmem:[#allocation8_spill] sm:$0xff] }
 0x955   :  { %4668 = vmatmul.mubr.msk.f32.gmra.mxu0 %vm288_vm3, %v2722_v4 }
 0x956   :  { %v5015_v48 = vpop.eup %5014  ;;  %5018 = vpow2.f32 %v2004_v39  ;;  %4670 = vmatprep.mubr.msk.f32.mxu0 %vm5101_vm4, %v7325_v58 }
 0x957   :  { %v2026_v62 = vsel %vm996_vm12, %v5015_v48, 0.0 }
 0x958   :  { %2027 = vadd.xlane.f32.xlu1 %v2026_v62 }
 0x959   :  { %4671 = vmatmul.mubr.msk.f32.gmra.mxu0 %vm288_vm3, %v2723_v12 }
 0x95a   :  { %v6801_v18 = vpop.eup %5016  ;;  %4673 = vmatprep.mubr.msk.f32.mxu0 %vm5101_vm4, %v7325_v58 }
 0x95b   :  { %v2032_v9 = vsel %vm1021_vm13, %v6801_v18, 0.0 }
 0x95c   :  { %2033 = vadd.xlane.f32.xlu1 %v2032_v9 }
 0x95d   :  { %4674 = vmatmul.mubr.msk.f32.gmra.mxu0 %vm288_vm3, %v2724_v3 }
 0x95e   :  { %4676 = vmatprep.mubr.msk.f32.mxu0 %vm5101_vm4, %v7325_v58 }
 0x961   :  { %4677 = vmatmul.mubr.msk.f32.gmra.mxu0 %vm288_vm3, %v2725_v21 }
 0x962   :  { %4679 = vmatprep.mubr.msk.f32.mxu0 %vm5101_vm4, %v7325_v58 }
 0x963   :  { %v5019_v54 = vpop.eup %5018 }
 0x964   :  { %v2029_v59 = vsel %vm996_vm12, %v5019_v54, 0.0 }
 0x965   :  { %2030 = vadd.xlane.f32.xlu0 %v2029_v59  ;;  %4680 = vmatmul.mubr.msk.f32.gmra.mxu0 %vm288_vm3, %v2726_v29  ;;  %v7379_v29 = vld [vmem:[#allocation10_spill] sm:$0xff] }
 0x966   :  { %4682 = vmatprep.mubr.msk.f32.mxu0 %vm5101_vm4, %v7325_v58 }
 0x97b   :  { %2957 = vrot.lane.b32.xlu0 %v6820_v19, %s5107_s17 }
 0x9cd   :  { %v2013_v22 = vpop.xlane.xlu1 %2012 }
 0x9ce   :  { %5020 = vrcp.f32 %v2013_v22 }
 0x9d1   :  { %v2016_v63 = vpop.xlane.xlu1 %2015 }
 0x9d2   :  { %5022 = vrcp.f32 %v2016_v63 }
 0x9d5   :  { %v2019_v55 = vpop.xlane.xlu1 %2018 }
 0x9d6   :  { %5024 = vrcp.f32 %v2019_v55 }
 0x9d9   :  { %v2022_v34 = vpop.xlane.xlu1 %2021 }
 0x9da   :  { %5026 = vrcp.f32 %v2022_v34 }
 0x9db   :  { %v5021_v57 = vpop.eup %5020 }
 0x9dc   :  { %v2045_v27 = vmul.f32 %v5021_v57, %v6759_v42 }
 0x9dd   :  { %v2025_v6 = vpop.xlane.xlu1 %2024 }
 0x9de   :  { %5028 = vrcp.f32 %v2025_v6  ;;  %4630 = vmatmul.mubr.msk.f32.gmra.mxu1 %vm996_vm12, %v2045_v27  ;;  %v7380_v27 = vld [vmem:[#allocation11_spill] sm:$0xff] }
 0x9df   :  { %v5023_v49 = vpop.eup %5022  ;;  %4632 = vmatprep.mubr.msk.f32.mxu1 %vm5101_vm4, %v7325_v58 }
 0x9e0   :  { %v2046_v61 = vmul.f32 %v5023_v49, %v6767_v24 }
 0x9e1   :  { %v2028_v56 = vpop.xlane.xlu1 %2027 }
 0x9e2   :  { %5030 = vrcp.f32 %v2028_v56  ;;  %4633 = vmatmul.mubr.msk.f32.gmra.mxu1 %vm996_vm12, %v2046_v61 }
 0x9e3   :  { %v5025_v36 = vpop.eup %5024  ;;  %4635 = vmatprep.mubr.msk.f32.mxu1 %vm5101_vm4, %v7325_v58 }
 0x9e4   :  { %v2047_v2 = vmul.f32 %v5025_v36, %v6775_v35 }
 0x9e5   :  { %v2034_v10 = vpop.xlane.xlu1 %2033 }
 0x9e6   :  { %4636 = vmatmul.mubr.msk.f32.gmra.mxu1 %vm996_vm12, %v2047_v2  ;;  %v7381_v2 = vld [vmem:[#allocation12_spill] sm:$0xff] }
 0x9e7   :  { %v5027_v20 = vpop.eup %5026  ;;  %4638 = vmatprep.mubr.msk.f32.mxu1 %vm5101_vm4, %v7325_v58 }
 0x9e8   :  { %v2048_v28 = vmul.f32 %v5027_v20, %v6782_v13  ;;  %v7376_v13 = vld [vmem:[#allocation6_spill] sm:$0xff] }
 0x9ea   :  { %4639 = vmatmul.mubr.msk.f32.gmra.mxu1 %vm996_vm12, %v2048_v28 }
 0x9eb   :  { %v5029_v14 = vpop.eup %5028  ;;  %4641 = vmatprep.mubr.msk.f32.mxu1 %vm5101_vm4, %v7325_v58 }
 0x9ec   :  { %v2049_v41 = vmul.f32 %v5029_v14, %v6789_v25 }
 0x9ee   :  { %4642 = vmatmul.mubr.msk.f32.gmra.mxu1 %vm996_vm12, %v2049_v41  ;;  %v2031_v16 = vpop.xlane.xlu0 %2030 }
 0x9ef   :  { %v5031_v32 = vpop.eup %5030  ;;  %5032 = vrcp.f32 %v2031_v16  ;;  %4644 = vmatprep.mubr.msk.f32.mxu1 %vm5101_vm4, %v7325_v58  ;;  %v7382_v16 = vld [vmem:[#allocation13_spill] sm:$0xff] }
 0x9f0   :  { %v2050_v7 = vmul.f32 %v5031_v32, %v5015_v48  ;;  %5034 = vrcp.f32 %v2034_v10 }
 0x9f2   :  { %4645 = vmatmul.mubr.msk.f32.gmra.mxu1 %vm996_vm12, %v2050_v7  ;;  %v6859_v15 = vpop.permute.xlu0 %2957 }
 0x9f3   :  { %4647 = vmatprep.mubr.msk.f32.mxu1 %vm5101_vm4, %v7325_v58 }
 0x9f9   :  { %v6846_v52 = vpop.f32.mrf.mxu0 }
 0x9fb   :  { %v4586_v42 = vpop.f32.mrf.mxu0 }
 0x9fc   :  { %v5033_v30 = vpop.eup %5032 }
 0x9fd   :  { %v6848_v46 = vpop.f32.mrf.mxu0  ;;  %v2051_v0 = vmul.f32 %v5033_v30, %v5019_v54  ;;  %v5035_v5 = vpop.eup %5034 }
 0x9fe   :  { %v2052_v37 = vmul.f32 %v5035_v5, %v6801_v18  ;;  %v7378_v18 = vld [vmem:[#allocation9_spill] sm:$0xff]  ;;  %v7383_v5 = vld [vmem:[#allocation14_spill] sm:$0xff] }
 0x9ff   :  { %v4589_v44 = vpop.f32.mrf.mxu0  ;;  %4648 = vmatmul.mubr.msk.f32.gmra.mxu1 %vm996_vm12, %v2051_v0 }
 0xa00   :  { %4650 = vmatprep.mubr.msk.f32.mxu1 %vm5101_vm4, %v7325_v58 }
 0xa01   :  { %v6853_v24 = vpop.f32.mrf.mxu0 }
 0xa03   :  { %v4592_v53 = vpop.f32.mrf.mxu0  ;;  %4651 = vmatmul.mubr.msk.f32.gmra.mxu1 %vm996_vm12, %v2052_v37 }
 0xa04   :  { %4708 = vmatprep.mubr.msk.f32.mxu1 %vm5101_vm4, %v7325_v58 }
 0xa05   :  { %v2856_v47 = vpop.f32.mrf.mxu0 }
 0xa06   :  { %v2940_v35 = vadd.f32 %v2856_v47, %v7375_v60 }
 0xa07   :  { %v4657_v11 = vpop.f32.mrf.mxu0 }
 0xa08   :  { %v6863_v45 = vadd.f32 %v6859_v15, %v2940_v35 }
 0xa09   :  { %v2861_v40 = vpop.f32.mrf.mxu0 }
 0xa0a   :  { %v2941_v31 = vadd.f32 %v2861_v40, %v7376_v13  ;;  %v2977_v26 = vsel %vm288_vm3, %v6863_v45, 0.0 }
 0xa0b   :  { %v4660_v17 = vpop.f32.mrf.mxu0  ;;  %2978 = vadd.xlane.f32.xlu1 %v2977_v26 }
 0xa0c   :  { %v2961_v25 = vadd.f32 %v6859_v15, %v2941_v31 }
 0xa0d   :  { %v2866_v43 = vpop.f32.mrf.mxu0 }
 0xa0e   :  { %v2942_v39 = vadd.f32 %v2866_v43, %v7377_v50  ;;  %v2980_v4 = vsel %vm288_vm3, %v2961_v25, 0.0 }
 0xa0f   :  { %v4663_v48 = vpop.f32.mrf.mxu0  ;;  %2981 = vadd.xlane.f32.xlu1 %v2980_v4 }
 0xa10   :  { %v2962_v62 = vadd.f32 %v6859_v15, %v2942_v39 }
 0xa11   :  { %v2871_v12 = vpop.f32.mrf.mxu0 }
 0xa12   :  { %v2943_v9 = vadd.f32 %v2871_v12, %v7378_v18  ;;  %v2983_v3 = vsel %vm288_vm3, %v2962_v62, 0.0 }
 0xa13   :  { %v4666_v21 = vpop.f32.mrf.mxu0  ;;  %2984 = vadd.xlane.f32.xlu1 %v2983_v3 }
 0xa14   :  { %v2963_v54 = vadd.f32 %v6859_v15, %v2943_v9 }
 0xa15   :  { %v2876_v59 = vpop.f32.mrf.mxu0 }
 0xa16   :  { %v2944_v22 = vadd.f32 %v2876_v59, %v7379_v29  ;;  %v2986_v63 = vsel %vm288_vm3, %v2963_v54, 0.0 }
 0xa17   :  { %v4669_v55 = vpop.f32.mrf.mxu0  ;;  %2987 = vadd.xlane.f32.xlu1 %v2986_v63 }
 0xa18   :  { %v2964_v34 = vadd.f32 %v6859_v15, %v2944_v22 }
 0xa19   :  { %v2881_v57 = vpop.f32.mrf.mxu0 }
 0xa1a   :  { %v2945_v6 = vadd.f32 %v2881_v57, %v7380_v27  ;;  %v2989_v49 = vsel %vm288_vm3, %v2964_v34, 0.0 }
 0xa1b   :  { %v4672_v61 = vpop.f32.mrf.mxu0  ;;  %2990 = vadd.xlane.f32.xlu1 %v2989_v49 }
 0xa1c   :  { %v6881_v56 = vadd.f32 %v6859_v15, %v2945_v6 }
 0xa1d   :  { %v2886_v36 = vpop.f32.mrf.mxu0 }
 0xa1e   :  { %v2946_v20 = vadd.f32 %v2886_v36, %v7381_v2  ;;  %v2992_v28 = vsel %vm288_vm3, %v6881_v56, 0.0 }
 0xa1f   :  { %v4675_v14 = vpop.f32.mrf.mxu0  ;;  %2993 = vadd.xlane.f32.xlu1 %v2992_v28 }
 0xa20   :  { %v6887_v41 = vadd.f32 %v6859_v15, %v2946_v20 }
 0xa21   :  { %v2891_v10 = vpop.f32.mrf.mxu0 }
 0xa22   :  { %v2947_v32 = vadd.f32 %v2891_v10, %v7382_v16  ;;  %v2995_v7 = vsel %vm288_vm3, %v6887_v41, 0.0 }
 0xa23   :  { %v4678_v42 = vpop.f32.mrf.mxu0  ;;  %2996 = vadd.xlane.f32.xlu0 %v2995_v7 }
 0xa24   :  { %v6893_v30 = vadd.f32 %v6859_v15, %v2947_v32 }
 0xa25   :  { %v2896_v0 = vpop.f32.mrf.mxu0 }
 0xa26   :  { %v2948_v44 = vadd.f32 %v2896_v0, %v7383_v5  ;;  %v2998_v37 = vsel %vm288_vm3, %v6893_v30, 0.0 }
 0xa27   :  { %2999 = vadd.xlane.f32.xlu1 %v2998_v37  ;;  %v4681_v53 = vpop.f32.mrf.mxu0 }
 0xa28   :  { %v6899_v47 = vadd.f32 %v6859_v15, %v2948_v44 }
 0xa2a   :  { %v3001_v60 = vsel %vm288_vm3, %v6899_v47, 0.0 }
 0xa2b   :  { %3002 = vadd.xlane.f32.xlu1 %v3001_v60 }
 0xa94   :  { %v2979_v35 = vpop.xlane.xlu1 %2978 }
 0xa95   :  { %v3028_v11 = vmul.f32 0.125, %v2979_v35 }
 0xa97   :  { %v6904_v40 = vsub.f32 %v6863_v45, %v3028_v11 }
 0xa98   :  { %v2982_v13 = vpop.xlane.xlu1 %2981 }
 0xa99   :  { %v3029_v31 = vmul.f32 0.125, %v2982_v13  ;;  %v3062_v26 = vmul.f32 %v6904_v40, %v6904_v40 }
 0xa9b   :  { %v6908_v17 = vsub.f32 %v2961_v25, %v3029_v31  ;;  %v3079_v43 = vsel %vm288_vm3, %v3062_v26, 0.0 }
 0xa9c   :  { %v2985_v50 = vpop.xlane.xlu1 %2984  ;;  %3080 = vadd.xlane.f32.xlu1 %v3079_v43 }
 0xa9d   :  { %v3030_v39 = vmul.f32 0.125, %v2985_v50  ;;  %v3063_v4 = vmul.f32 %v6908_v17, %v6908_v17 }
 0xa9e   :  { %v2670_v48 = vpop.f32.mrf.mxu1 }
 0xa9f   :  { %v6913_v12 = vsub.f32 %v2962_v62, %v3030_v39  ;;  %v2671_v18 = vadd.f32 %v2670_v48, %v6846_v52  ;;  %v3082_v9 = vsel %vm288_vm3, %v3063_v4, 0.0 }
 0xaa0   :  { %v2988_v3 = vpop.xlane.xlu1 %2987  ;;  %3083 = vadd.xlane.f32.xlu1 %v3082_v9  ;;  %v4631_v21 = vpop.f32.mrf.mxu1 }
 0xaa1   :  { %2710 = vst.msk [vmem:[#allocation2 + $0x49] sm:$0xff] %vm288_vm3, %v2671_v18  ;;  %v3031_v25 = vmul.f32 0.125, %v2988_v3  ;;  %v3064_v59 = vmul.f32 %v6913_v12, %v6913_v12 }
 0xaa2   :  { %v2675_v29 = vpop.f32.mrf.mxu1 }
 0xaa3   :  { %v6920_v22 = vsub.f32 %v2963_v54, %v3031_v25  ;;  %v2676_v63 = vadd.f32 %v2675_v29, %v6848_v46  ;;  %v3085_v62 = vsel %vm288_vm3, %v3064_v59, 0.0 }
 0xaa4   :  { %v2991_v55 = vpop.xlane.xlu1 %2990  ;;  %3086 = vadd.xlane.f32.xlu1 %v3085_v62  ;;  %v4634_v52 = vpop.f32.mrf.mxu1 }
 0xaa5   :  { %2711 = vst.msk [vmem:[#allocation2 + $0x51] sm:$0xff] %vm288_vm3, %v2676_v63  ;;  %v3032_v57 = vmul.f32 0.125, %v2991_v55  ;;  %v3065_v27 = vmul.f32 %v6920_v22, %v6920_v22 }
 0xaa6   :  { %v2680_v6 = vpop.f32.mrf.mxu1 }
 0xaa7   :  { %v6927_v49 = vsub.f32 %v2964_v34, %v3032_v57  ;;  %v2681_v61 = vadd.f32 %v2680_v6, %v6853_v24  ;;  %v3088_v54 = vsel %vm288_vm3, %v3065_v27, 0.0 }
 0xaa8   :  { %v2994_v36 = vpop.xlane.xlu1 %2993  ;;  %3089 = vadd.xlane.f32.xlu1 %v3088_v54  ;;  %v4637_v46 = vpop.f32.mrf.mxu1  ;;  %v2727_v2 = vld [vmem:[#allocation2 + $0x48] sm:$0xff] }
 0xaa9   :  { %2712 = vst.msk [vmem:[#allocation2 + $0x59] sm:$0xff] %vm288_vm3, %v2681_v61  ;;  %v3033_v20 = vmul.f32 0.125, %v2994_v36  ;;  %4683 = vmatmul.mubr.msk.f32.gmra.mxu0 %vm288_vm3, %v2727_v2  ;;  %v3066_v28 = vmul.f32 %v6927_v49, %v6927_v49 }
 0xaaa   :  { %v2685_v14 = vpop.f32.mrf.mxu1  ;;  %4685 = vmatprep.mubr.msk.f32.mxu0 %vm5101_vm4, %v7325_v58 }
 0xaab   :  { %v6938_v24 = vsub.f32 %v6881_v56, %v3033_v20  ;;  %v2686_v34 = vadd.f32 %v2685_v14, %v6733_v1  ;;  %v3091_v10 = vsel %vm288_vm3, %v3066_v28, 0.0 }
 0xaac   :  { %v2997_v16 = vpop.xlane.xlu0 %2996  ;;  %3092 = vadd.xlane.f32.xlu1 %v3091_v10  ;;  %v4640_v32 = vpop.f32.mrf.mxu1  ;;  %v2728_v7 = vld [vmem:[#allocation2 + $0x50] sm:$0xff] }
 0xaad   :  { %2713 = vst.msk [vmem:[#allocation2 + $0x61] sm:$0xff] %vm288_vm3, %v2686_v34  ;;  %v3034_v42 = vmul.f32 0.125, %v2997_v16  ;;  %4686 = vmatmul.mubr.msk.f32.gmra.mxu0 %vm288_vm3, %v2728_v7  ;;  %v3067_v0 = vmul.f32 %v6938_v24, %v6938_v24 }
 0xaae   :  { %v2690_v5 = vpop.f32.mrf.mxu1  ;;  %4688 = vmatprep.mubr.msk.f32.mxu0 %vm5101_vm4, %v7325_v58 }
 0xaaf   :  { %v6949_v1 = vsub.f32 %v6887_v41, %v3034_v42  ;;  %v2691_v56 = vadd.f32 %v2690_v5, %v6735_v38  ;;  %v3094_v44 = vsel %vm288_vm3, %v3067_v0, 0.0 }
 0xab0   :  { %v3000_v37 = vpop.xlane.xlu1 %2999  ;;  %3095 = vadd.xlane.f32.xlu1 %v3094_v44  ;;  %v4643_v53 = vpop.f32.mrf.mxu1  ;;  %v2729_v60 = vld [vmem:[#allocation2 + $0x58] sm:$0xff] }
 0xab1   :  { %2714 = vst.msk [vmem:[#allocation2 + $0x69] sm:$0xff] %vm288_vm3, %v2691_v56  ;;  %v3035_v35 = vmul.f32 0.125, %v3000_v37  ;;  %4689 = vmatmul.mubr.msk.f32.gmra.mxu0 %vm288_vm3, %v2729_v60  ;;  %v3068_v11 = vmul.f32 %v6949_v1, %v6949_v1 }
 0xab2   :  { %v2695_v13 = vpop.f32.mrf.mxu1  ;;  %4691 = vmatprep.mubr.msk.f32.mxu0 %vm5101_vm4, %v7325_v58 }
 0xab3   :  { %v6960_v38 = vsub.f32 %v6893_v30, %v3035_v35  ;;  %v2696_v41 = vadd.f32 %v2695_v13, %v6737_v23  ;;  %v3097_v31 = vsel %vm288_vm3, %v3068_v11, 0.0 }
 0xab4   :  { %3098 = vadd.xlane.f32.xlu0 %v3097_v31  ;;  %v3003_v26 = vpop.xlane.xlu1 %3002  ;;  %v4646_v43 = vpop.f32.mrf.mxu1  ;;  %v2730_v50 = vld [vmem:[#allocation2 + $0x60] sm:$0xff] }
 0xab5   :  { %2715 = vst.msk [vmem:[#allocation2 + $0x71] sm:$0xff] %vm288_vm3, %v2696_v41  ;;  %v3036_v39 = vmul.f32 0.125, %v3003_v26  ;;  %4692 = vmatmul.mubr.msk.f32.gmra.mxu0 %vm288_vm3, %v2730_v50  ;;  %v3069_v4 = vmul.f32 %v6960_v38, %v6960_v38 }
 0xab6   :  { %4694 = vmatprep.mubr.msk.f32.mxu0 %vm5101_vm4, %v7325_v58 }
 0xab7   :  { %v6971_v30 = vsub.f32 %v6899_v47, %v3036_v39  ;;  %v3100_v23 = vsel %vm288_vm3, %v3069_v4, 0.0 }
 0xab8   :  { %3101 = vadd.xlane.f32.xlu1 %v3100_v23  ;;  %v2731_v48 = vld [vmem:[#allocation2 + $0x68] sm:$0xff] }
 0xab9   :  { %4695 = vmatmul.mubr.msk.f32.gmra.mxu0 %vm288_vm3, %v2731_v48  ;;  %v3070_v18 = vmul.f32 %v6971_v30, %v6971_v30 }
 0xaba   :  { %4697 = vmatprep.mubr.msk.f32.mxu0 %vm5101_vm4, %v7325_v58 }
 0xabb   :  { %v3103_v9 = vsel %vm288_vm3, %v3070_v18, 0.0 }
 0xabc   :  { %3104 = vadd.xlane.f32.xlu0 %v3103_v9  ;;  %v2732_v3 = vld [vmem:[#allocation2 + $0x70] sm:$0xff] }
 0xabd   :  { %4698 = vmatmul.mubr.msk.f32.gmra.mxu0 %vm288_vm3, %v2732_v3 }
 0xabe   :  { %4700 = vmatprep.mubr.msk.f32.mxu0 %vm5101_vm4, %v7325_v58 }
 0xabf   :  { %v2700_v21 = vpop.f32.mrf.mxu1 }
 0xac0   :  { %v2701_v25 = vadd.f32 %v2700_v21, %v6740_v51  ;;  %v3463_v51 = vld [vmem:[%s7270_s3 + $0x8] sm:$0xff] }
 0xac1   :  { %v4649_v59 = vpop.f32.mrf.mxu1  ;;  %4760 = vmatpush3.msra.mxu0 %v3463_v51 }
 0xac2   :  { %2716 = vst.msk [vmem:[#allocation2 + $0x79] sm:$0xff] %vm288_vm3, %v2701_v25  ;;  %4761 = vmatprep.subr.mxu0 %v7325_v58 }
 0xac3   :  { %v2705_v29 = vpop.f32.mrf.mxu1 }
 0xac4   :  { %v2706_v63 = vadd.f32 %v2705_v29, %v6742_v33 }
 0xac5   :  { %v4652_v62 = vpop.f32.mrf.mxu1 }
 0xac6   :  { %2717 = vst.msk [vmem:[#allocation2 + $0x81] sm:$0x1] %vm278_vm2, %v2706_v63 }
 0xac9   :  { %v2733_v55 = vld [vmem:[#allocation2 + $0x78] sm:$0xff]  ;;  %3198 = vrot.lane.b32.xlu1 %v6820_v19, %s5108_s4 }
 0xaca   :  { %4701 = vmatmul.mubr.msk.f32.gmra.mxu0 %vm288_vm3, %v2733_v55 }
 0xacb   :  { %4703 = vmatprep.mubr.msk.f32.mxu0 %vm5101_vm4, %v7325_v58 }
 0xacd   :  { %v2734_v52 = vld [vmem:[#allocation2 + $0x80] sm:$0x3]  ;;  %3238 = vrot.lane.b32.xlu1 %v6716_v8, %s5109_s18 }
 0xace   :  { %4704 = vmatmul.mubr.msk.f32.gmra.mxu0 %vm288_vm3, %v2734_v52 }
 0xacf   :  { %4763 = vmatprep.mubr.msk.f32.mxu0 %vm5101_vm4, %v7325_v58 }
 0xad1   :  { %3241 = vrot.lane.b32.xlu1 %v6820_v19, %s5111_s20 }
 0xad2   :  { %3218 = vrot.lane.b32.xlu0 %v6820_v19, %s5110_s19 }
 0xb25   :  { %v3081_v33 = vpop.xlane.xlu1 %3080 }
 0xb26   :  { %v3130_v27 = vmul.f32 0.125, %v3081_v33 }
 0xb28   :  { %v3147_v54 = vadd.f32 1e-05, %v3130_v27 }
 0xb29   :  { %v3084_v8 = vpop.xlane.xlu1 %3083 }
 0xb2a   :  { %v3131_v6 = vmul.f32 0.125, %v3084_v8  ;;  %5036 = vrsqrt.f32 %v3147_v54 }
 0xb2c   :  { %v3148_v36 = vadd.f32 1e-05, %v3131_v6 }
 0xb2d   :  { %v3087_v57 = vpop.xlane.xlu1 %3086 }
 0xb2e   :  { %v3132_v2 = vmul.f32 0.125, %v3087_v57  ;;  %5038 = vrsqrt.f32 %v3148_v36 }
 0xb30   :  { %v3149_v28 = vadd.f32 1e-05, %v3132_v2 }
 0xb31   :  { %v3090_v61 = vpop.xlane.xlu1 %3089 }
 0xb32   :  { %v3133_v20 = vmul.f32 0.125, %v3090_v61  ;;  %5040 = vrsqrt.f32 %v3149_v28 }
 0xb34   :  { %v3150_v10 = vadd.f32 1e-05, %v3133_v20 }
 0xb35   :  { %v3093_v46 = vpop.xlane.xlu1 %3092 }
 0xb36   :  { %v3134_v14 = vmul.f32 0.125, %v3093_v46  ;;  %5042 = vrsqrt.f32 %v3150_v10 }
 0xb37   :  { %v5037_v56 = vpop.eup %5036 }
 0xb38   :  { %v3151_v16 = vadd.f32 1e-05, %v3134_v14  ;;  %v3181_v60 = vmul.f32 %v5037_v56, %v6904_v40 }
 0xb39   :  { %v3096_v34 = vpop.xlane.xlu1 %3095 }
 0xb3a   :  { %v3135_v32 = vmul.f32 0.125, %v3096_v34  ;;  %5044 = vrsqrt.f32 %v3151_v16  ;;  %v7385_v34 = vld [vmem:[#allocation15_spill] sm:$0xff] }
 0xb3b   :  { %v5039_v53 = vpop.eup %5038 }
 0xb3c   :  { %v3152_v0 = vadd.f32 1e-05, %v3135_v32  ;;  %v3182_v41 = vmul.f32 %v5039_v53, %v6908_v17 }
 0xb3d   :  { %v3099_v7 = vpop.xlane.xlu0 %3098 }
 0xb3e   :  { %v3136_v5 = vmul.f32 0.125, %v3099_v7  ;;  %5046 = vrsqrt.f32 %v3152_v0  ;;  %v7386_v0 = vld [vmem:[#allocation16_spill] sm:$0xff] }
 0xb3f   :  { %v5041_v4 = vpop.eup %5040 }
 0xb40   :  { %v3153_v35 = vadd.f32 1e-05, %v3136_v5  ;;  %v3183_v17 = vmul.f32 %v5041_v4, %v6913_v12 }
 0xb41   :  { %v3102_v42 = vpop.xlane.xlu1 %3101 }
 0xb42   :  { %v3137_v11 = vmul.f32 0.125, %v3102_v42  ;;  %5048 = vrsqrt.f32 %v3153_v35  ;;  %v7387_v35 = vld [vmem:[#allocation18_spill] sm:$0xff] }
 0xb43   :  { %v5043_v23 = vpop.eup %5042 }
 0xb44   :  { %v3154_v43 = vadd.f32 1e-05, %v3137_v11  ;;  %v3184_v3 = vmul.f32 %v5043_v23, %v6920_v22 }
 0xb45   :  { %v3105_v44 = vpop.xlane.xlu0 %3104  ;;  %v7001_v37 = vpop.permute.xlu1 %3198 }
 0xb46   :  { %v3201_v13 = vmul.f32 %v7001_v37, %v3181_v60  ;;  %v3138_v50 = vmul.f32 0.125, %v3105_v44  ;;  %v3202_v40 = vmul.f32 %v7001_v37, %v3182_v41  ;;  %5050 = vrsqrt.f32 %v3154_v43 }
 0xb47   :  { %v5045_v9 = vpop.eup %5044  ;;  %v3203_v21 = vmul.f32 %v7001_v37, %v3183_v17  ;;  %v3204_v29 = vmul.f32 %v7001_v37, %v3184_v3 }
 0xb48   :  { %v3155_v48 = vadd.f32 1e-05, %v3138_v50  ;;  %v3185_v25 = vmul.f32 %v5045_v9, %v6927_v49  ;;  %v7388_v50 = vld [vmem:[#allocation19_spill] sm:$0xff] }
 0xb49   :  { %v7006_v31 = vpop.permute.xlu0 %3218  ;;  %v3239_v26 = vpop.permute.xlu1 %3238 }
 0xb4a   :  { %4707 = vmatpush3.msra.mxu1 %v3239_v26  ;;  %v3221_v39 = vadd.f32 %v7006_v31, %v3201_v13  ;;  %v3222_v18 = vadd.f32 %v7006_v31, %v3202_v40  ;;  %5052 = vrsqrt.f32 %v3155_v48  ;;  %v3223_v59 = vadd.f32 %v7006_v31, %v3203_v21  ;;  %v7389_v48 = vld [vmem:[#allocation20_spill] sm:$0xff] }
 0xb4b   :  { %4814 = vmatprep.subr.mxu1 %v7325_v58  ;;  %v5047_v12 = vpop.eup %5046  ;;  %v3224_v63 = vadd.f32 %v7006_v31, %v3204_v29  ;;  %v3205_v62 = vmul.f32 %v7001_v37, %v3185_v25 }
 0xb4c   :  { %4709 = vmatmul.mubr.msk.f32.vlgmr.msra.gmra.mxu1 %vm288_vm3, %v3221_v39  ;;  %v3186_v22 = vmul.f32 %v5047_v12, %v6938_v24  ;;  %v7390_v12 = vld [vmem:[#allocation21_spill] sm:$0xff] }
 0xb4d   :  { %4711 = vmatprep.mubr.msk.f32.mxu1 %vm5101_vm4, %v7325_v58  ;;  %v3225_v52 = vadd.f32 %v7006_v31, %v3205_v62 }
 0xb4e   :  { %v3206_v51 = vmul.f32 %v7001_v37, %v3186_v22 }
 0xb4f   :  { %v5049_v55 = vpop.eup %5048 }
 0xb50   :  { %4712 = vmatmul.mubr.msk.f32.gmra.mxu1 %vm288_vm3, %v3222_v18  ;;  %v3187_v49 = vmul.f32 %v5049_v55, %v6949_v1  ;;  %v3226_v8 = vadd.f32 %v7006_v31, %v3206_v51  ;;  %v7391_v55 = vld [vmem:[#allocation22_spill] sm:$0xff]  ;;  %v3462_v51 = vld [vmem:[%s7270_s3] sm:$0xff]  ;;  %s5112_s3 = smov 32  }
 0xb51   :  { %4714 = vmatprep.mubr.msk.f32.mxu1 %vm5101_vm4, %v7325_v58  ;;  %4762 = vmatpush3.msra.mxu0 %v3462_v51 }
 0xb52   :  { %v3207_v57 = vmul.f32 %v7001_v37, %v3187_v49 }
 0xb53   :  { %v5051_v33 = vpop.eup %5050 }
 0xb54   :  { %4715 = vmatmul.mubr.msk.f32.gmra.mxu1 %vm288_vm3, %v3223_v59  ;;  %v3188_v24 = vmul.f32 %v5051_v33, %v6960_v38  ;;  %v3227_v6 = vadd.f32 %v7006_v31, %v3207_v57  ;;  %v7093_v57 = vpop.permute.xlu1 %3241 }
 0xb55   :  { %4717 = vmatprep.mubr.msk.f32.mxu1 %vm5101_vm4, %v7325_v58 }
 0xb56   :  { %v3208_v61 = vmul.f32 %v7001_v37, %v3188_v24 }
 0xb57   :  { %v5053_v27 = vpop.eup %5052 }
 0xb58   :  { %4718 = vmatmul.mubr.msk.f32.gmra.mxu1 %vm288_vm3, %v3224_v63  ;;  %v3189_v1 = vmul.f32 %v5053_v27, %v6971_v30  ;;  %v3228_v38 = vadd.f32 %v7006_v31, %v3208_v61  ;;  %v7384_v30 = vld [vmem:[#allocation17_spill] sm:$0xff] }
 0xb59   :  { %4720 = vmatprep.mubr.msk.f32.mxu1 %vm5101_vm4, %v7325_v58 }
 0xb5a   :  { %v3209_v54 = vmul.f32 %v7001_v37, %v3189_v1 }
 0xb5c   :  { %4721 = vmatmul.mubr.msk.f32.gmra.mxu1 %vm288_vm3, %v3225_v52  ;;  %v3229_v2 = vadd.f32 %v7006_v31, %v3209_v54 }
 0xb5d   :  { %4723 = vmatprep.mubr.msk.f32.mxu1 %vm5101_vm4, %v7325_v58 }
 0xb60   :  { %4724 = vmatmul.mubr.msk.f32.gmra.mxu1 %vm288_vm3, %v3226_v8 }
 0xb61   :  { %4726 = vmatprep.mubr.msk.f32.mxu1 %vm5101_vm4, %v7325_v58 }
 0xb64   :  { %4727 = vmatmul.mubr.msk.f32.gmra.mxu1 %vm288_vm3, %v3227_v6 }
 0xb65   :  { %4729 = vmatprep.mubr.msk.f32.mxu1 %vm5101_vm4, %v7325_v58 }
 0xb68   :  { %4730 = vmatmul.mubr.msk.f32.gmra.mxu1 %vm288_vm3, %v3228_v38 }
 0xb69   :  { %v2901_v36 = vpop.f32.mrf.mxu0  ;;  %4732 = vmatprep.mubr.msk.f32.mxu1 %vm5101_vm4, %v7325_v58 }
 0xb6a   :  { %v2949_v46 = vadd.f32 %v2901_v36, %v7384_v30 }
 0xb6b   :  { %v4684_v20 = vpop.f32.mrf.mxu0 }
 0xb6c   :  { %v2969_v28 = vadd.f32 %v6859_v15, %v2949_v46  ;;  %4733 = vmatmul.mubr.msk.f32.gmra.mxu1 %vm288_vm3, %v3229_v2 }
 0xb6d   :  { %v2906_v14 = vpop.f32.mrf.mxu0  ;;  %4735 = vmatprep.mubr.msk.f32.mxu1 %vm5101_vm4, %v7325_v58 }
 0xb6e   :  { %v2950_v10 = vadd.f32 %v2906_v14, %v7385_v34  ;;  %v3004_v16 = vsel %vm288_vm3, %v2969_v28, 0.0 }
 0xb6f   :  { %3005 = vadd.xlane.f32.xlu0 %v3004_v16  ;;  %v4687_v32 = vpop.f32.mrf.mxu0 }
 0xb70   :  { %v2970_v7 = vadd.f32 %v6859_v15, %v2950_v10 }
 0xb71   :  { %v2911_v42 = vpop.f32.mrf.mxu0 }
 0xb72   :  { %v2951_v5 = vadd.f32 %v2911_v42, %v7386_v0  ;;  %v3007_v56 = vsel %vm288_vm3, %v2970_v7, 0.0 }
 0xb73   :  { %3008 = vadd.xlane.f32.xlu1 %v3007_v56  ;;  %v4690_v44 = vpop.f32.mrf.mxu0 }
 0xb74   :  { %v2971_v53 = vadd.f32 %v6859_v15, %v2951_v5 }
 0xb75   :  { %v2916_v60 = vpop.f32.mrf.mxu0 }
 0xb76   :  { %v2952_v11 = vadd.f32 %v2916_v60, %v7387_v35  ;;  %v3010_v13 = vsel %vm288_vm3, %v2971_v53, 0.0 }
 0xb77   :  { %3011 = vadd.xlane.f32.xlu0 %v3010_v13  ;;  %v4693_v41 = vpop.f32.mrf.mxu0 }
 0xb78   :  { %v2972_v26 = vadd.f32 %v6859_v15, %v2952_v11 }
 0xb79   :  { %v2921_v43 = vpop.f32.mrf.mxu0 }
 0xb7a   :  { %v2953_v39 = vadd.f32 %v2921_v43, %v7388_v50  ;;  %v3013_v4 = vsel %vm288_vm3, %v2972_v26, 0.0 }
 0xb7b   :  { %3014 = vadd.xlane.f32.xlu0 %v3013_v4  ;;  %v4696_v40 = vpop.f32.mrf.mxu0 }
 0xb7c   :  { %v2973_v23 = vadd.f32 %v6859_v15, %v2953_v39 }
 0xb7d   :  { %v2926_v17 = vpop.f32.mrf.mxu0 }
 0xb7e   :  { %v2954_v18 = vadd.f32 %v2926_v17, %v7389_v48  ;;  %v3016_v9 = vsel %vm288_vm3, %v2973_v23, 0.0 }
 0xb7f   :  { %3017 = vadd.xlane.f32.xlu1 %v3016_v9  ;;  %v4699_v3 = vpop.f32.mrf.mxu0 }
 0xb80   :  { %v2974_v21 = vadd.f32 %v6859_v15, %v2954_v18 }
 0xb82   :  { %v3019_v25 = vsel %vm288_vm3, %v2974_v21, 0.0 }
 0xb83   :  { %3020 = vadd.xlane.f32.xlu0 %v3019_v25 }
 0xb8a   :  { %v2931_v59 = vpop.f32.mrf.mxu0 }
 0xb8b   :  { %v2955_v29 = vadd.f32 %v2931_v59, %v7390_v12 }
 0xb8c   :  { %v4702_v22 = vpop.f32.mrf.mxu0 }
 0xb8d   :  { %v7080_v63 = vadd.f32 %v6859_v15, %v2955_v29 }
 0xb8e   :  { %v2936_v62 = vpop.f32.mrf.mxu0 }
 0xb8f   :  { %v2956_v49 = vadd.f32 %v2936_v62, %v7391_v55  ;;  %v3022_v52 = vsel %vm288_vm3, %v7080_v63, 0.0 }
 0xb90   :  { %3023 = vadd.xlane.f32.xlu1 %v3022_v52  ;;  %v4705_v33 = vpop.f32.mrf.mxu0 }
 0xb91   :  { %v7089_v24 = vadd.f32 %v6859_v15, %v2956_v49 }
 0xb93   :  { %v3025_v8 = vsel %vm379_vm5, %v7089_v24, 0.0 }
 0xb94   :  { %3026 = vadd.xlane.f32.xlu0 %v3025_v8 }
 0xbf8   :  { %v3006_v27 = vpop.xlane.xlu0 %3005 }
 0xbf9   :  { %v3037_v1 = vmul.f32 0.125, %v3006_v27 }
 0xbfb   :  { %v7095_v6 = vsub.f32 %v2969_v28, %v3037_v1 }
 0xbfc   :  { %v3009_v61 = vpop.xlane.xlu1 %3008 }
 0xbfd   :  { %v3038_v38 = vmul.f32 0.125, %v3009_v61  ;;  %v3071_v54 = vmul.f32 %v7095_v6, %v7095_v6 }
 0xbff   :  { %v7099_v36 = vsub.f32 %v2970_v7, %v3038_v38  ;;  %v3106_v15 = vsel %vm288_vm3, %v3071_v54, 0.0 }
 0xc00   :  { %v3012_v30 = vpop.xlane.xlu0 %3011  ;;  %3107 = vadd.xlane.f32.xlu1 %v3106_v15 }
 0xc01   :  { %v3039_v46 = vmul.f32 0.125, %v3012_v30  ;;  %v3072_v2 = vmul.f32 %v7099_v36, %v7099_v36 }
 0xc03   :  { %v7104_v20 = vsub.f32 %v2971_v53, %v3039_v46  ;;  %v3109_v28 = vsel %vm288_vm3, %v3072_v2, 0.0 }
 0xc04   :  { %v3015_v14 = vpop.xlane.xlu0 %3014  ;;  %3110 = vadd.xlane.f32.xlu0 %v3109_v28 }
 0xc05   :  { %v3040_v34 = vmul.f32 0.125, %v3015_v14  ;;  %v3073_v10 = vmul.f32 %v7104_v20, %v7104_v20 }
 0xc07   :  { %v7109_v16 = vsub.f32 %v2972_v26, %v3040_v34  ;;  %v3112_v32 = vsel %vm288_vm3, %v3073_v10, 0.0 }
 0xc08   :  { %v3018_v7 = vpop.xlane.xlu1 %3017  ;;  %3113 = vadd.xlane.f32.xlu1 %v3112_v32 }
 0xc09   :  { %v3041_v42 = vmul.f32 0.125, %v3018_v7  ;;  %v3074_v0 = vmul.f32 %v7109_v16, %v7109_v16 }
 0xc0b   :  { %v7114_v5 = vsub.f32 %v2973_v23, %v3041_v42  ;;  %v3115_v56 = vsel %vm288_vm3, %v3074_v0, 0.0 }
 0xc0c   :  { %v3021_v44 = vpop.xlane.xlu0 %3020  ;;  %3116 = vadd.xlane.f32.xlu0 %v3115_v56  ;;  %v3361_v53 = vpop.f32.mrf.mxu1 }
 0xc0d   :  { %v3042_v60 = vmul.f32 0.125, %v3021_v44  ;;  %v3362_v35 = vadd.f32 %v3361_v53, %v7093_v57  ;;  %v3075_v11 = vmul.f32 %v7114_v5, %v7114_v5  ;;  %v5076_v53 = vld [vmem:[%s7269_s2] sm:$0xff]  ;;  %s5114_s2 = smov [#allocation3]  }
 0xc0e   :  { %v4710_v13 = vpop.f32.mrf.mxu1  ;;  %s3757_s27 = sshll.u32 %s5114_s2, 4  ;;  %s3758_s27 = int_to_ptr.vmem [resolvable:$true] %s3757_s27 }
 0xc0f   :  { %v7120_v41 = vsub.f32 %v2974_v21, %v3042_v60  ;;  %v3445_v26 = vmax.f32 %v3362_v35, 0.0  ;;  %v3118_v43 = vsel %vm288_vm3, %v3075_v11, 0.0  ;;  %s5077_s28 = scalar_lea.vmem %s3758_s27, 32  ;;  %p5082_p1 = scmp.lt.s32.totalorder %s3758_s27, %s3758_s27 }
 0xc10   :  { %3119 = vadd.xlane.f32.xlu1 %v3118_v43  ;;  %v3366_v50 = vpop.f32.mrf.mxu1  ;;  %p5078_p0 = scmp.ne.s32.totalorder %s3758_s27, %s5077_s28  ;;  %p5083_p2 = scmp.lt.s32.totalorder %s5077_s28, %s5077_s28 }
 0xc11   :  { %v3367_v39 = vadd.f32 %v3366_v50, %v7093_v57  ;;  %4764 = vmatmul.mubr.msk.f32.vlgmr.msra.gmra.mxu0 %vm3464_vm14, %v3445_v26  ;;  %v3076_v4 = vmul.f32 %v7120_v41, %v7120_v41 }
 0xc12   :  { %v4713_v40 = vpop.f32.mrf.mxu1  ;;  %4766 = vmatprep.mubr.msk.f32.mxu0 %vm5101_vm4, %v7325_v58  ;;  %p5084_p3 = por %p5083_p2, %p5082_p1 }
 0xc13   :  { %v3446_v23 = vmax.f32 %v3367_v39, 0.0  ;;  %v3121_v17 = vsel %vm288_vm3, %v3076_v4, 0.0 }
 0xc14   :  { %3122 = vadd.xlane.f32.xlu0 %v3121_v17  ;;  %v3371_v48 = vpop.f32.mrf.mxu1  ;;  %p5085_p4 = pnand %p5084_p3, %p5078_p0 }
 0xc15   :  { %v3372_v18 = vadd.f32 %v3371_v48, %v7093_v57  ;;  %4767 = vmatmul.mubr.msk.f32.gmra.mxu0 %vm3464_vm14, %v3446_v23 }
 0xc16   :  { %v4716_v9 = vpop.f32.mrf.mxu1  ;;  %4769 = vmatprep.mubr.msk.f32.mxu0 %vm5101_vm4, %v7325_v58 }
 0xc17   :  { %v3447_v3 = vmax.f32 %v3372_v18, 0.0 }
 0xc18   :  { %v3376_v21 = vpop.f32.mrf.mxu1 }
 0xc19   :  { %v3377_v25 = vadd.f32 %v3376_v21, %v7093_v57  ;;  %v3024_v59 = vpop.xlane.xlu1 %3023  ;;  %4770 = vmatmul.mubr.msk.f32.gmra.mxu0 %vm3464_vm14, %v3447_v3 }
 0xc1a   :  { %v3043_v12 = vmul.f32 0.125, %v3024_v59  ;;  %v4719_v29 = vpop.f32.mrf.mxu1  ;;  %4772 = vmatprep.mubr.msk.f32.mxu0 %vm5101_vm4, %v7325_v58 }
 0xc1b   :  { %v3448_v22 = vmax.f32 %v3377_v25, 0.0 }
 0xc1c   :  { %v7139_v62 = vsub.f32 %v7080_v63, %v3043_v12  ;;  %v3381_v55 = vpop.f32.mrf.mxu1 }
 0xc1d   :  { %v3382_v49 = vadd.f32 %v3381_v55, %v7093_v57  ;;  %v3027_v52 = vpop.xlane.xlu0 %3026  ;;  %4773 = vmatmul.mubr.msk.f32.gmra.mxu0 %vm3464_vm14, %v3448_v22 }
 0xc1e   :  { %v3044_v51 = vmul.f32 0.125, %v3027_v52  ;;  %v4722_v33 = vpop.f32.mrf.mxu1  ;;  %4775 = vmatprep.mubr.msk.f32.mxu0 %vm5101_vm4, %v7325_v58  ;;  %v3077_v8 = vmul.f32 %v7139_v62, %v7139_v62 }
 0xc1f   :  { %v3449_v27 = vmax.f32 %v3382_v49, 0.0 }
 0xc20   :  { %v7148_v1 = vsub.f32 %v7089_v24, %v3044_v51  ;;  %v3386_v63 = vpop.f32.mrf.mxu1  ;;  %v3124_v61 = vsel %vm288_vm3, %v3077_v8, 0.0 }
 0xc21   :  { %v3387_v38 = vadd.f32 %v3386_v63, %v7093_v57  ;;  %3125 = vadd.xlane.f32.xlu1 %v3124_v61  ;;  %4776 = vmatmul.mubr.msk.f32.gmra.mxu0 %vm3464_vm14, %v3449_v27 }
 0xc22   :  { %v4725_v54 = vpop.f32.mrf.mxu1  ;;  %4778 = vmatprep.mubr.msk.f32.mxu0 %vm5101_vm4, %v7325_v58  ;;  %v3078_v15 = vmul.f32 %v7148_v1, %v7148_v1 }
 0xc23   :  { %v3450_v30 = vmax.f32 %v3387_v38, 0.0 }
 0xc24   :  { %v3391_v46 = vpop.f32.mrf.mxu1  ;;  %v3127_v24 = vsel %vm379_vm5, %v3078_v15, 0.0 }
 0xc25   :  { %v3392_v2 = vadd.f32 %v3391_v46, %v7093_v57  ;;  %3128 = vadd.xlane.f32.xlu0 %v3127_v24  ;;  %4779 = vmatmul.mubr.msk.f32.gmra.mxu0 %vm3464_vm14, %v3450_v30 }
 0xc26   :  { %v4728_v28 = vpop.f32.mrf.mxu1  ;;  %4781 = vmatprep.mubr.msk.f32.mxu0 %vm5101_vm4, %v7325_v58 }
 0xc27   :  { %v3451_v14 = vmax.f32 %v3392_v2, 0.0 }
 0xc28   :  { %v3396_v34 = vpop.f32.mrf.mxu1 }
 0xc29   :  { %v3397_v10 = vadd.f32 %v3396_v34, %v7093_v57  ;;  %4782 = vmatmul.mubr.msk.f32.gmra.mxu0 %vm3464_vm14, %v3451_v14 }
 0xc2a   :  { %v4731_v32 = vpop.f32.mrf.mxu1  ;;  %4784 = vmatprep.mubr.msk.f32.mxu0 %vm5101_vm4, %v7325_v58 }
 0xc2b   :  { %v3452_v7 = vmax.f32 %v3397_v10, 0.0 }
 0xc2c   :  { %v3401_v42 = vpop.f32.mrf.mxu1 }
 0xc2d   :  { %v3402_v0 = vadd.f32 %v3401_v42, %v7093_v57  ;;  %4785 = vmatmul.mubr.msk.f32.gmra.mxu0 %vm3464_vm14, %v3452_v7 }
 0xc2e   :  { %v4734_v56 = vpop.f32.mrf.mxu1  ;;  %4787 = vmatprep.mubr.msk.f32.mxu0 %vm5101_vm4, %v7325_v58 }
 0xc2f   :  { %v3453_v44 = vmax.f32 %v3402_v0, 0.0 }
 0xc31   :  { %4788 = vmatmul.mubr.msk.f32.gmra.mxu0 %vm3464_vm14, %v3453_v44 }
 0xc32   :  { %3653 = vrot.lane.b32.xlu1 %v6820_v19, %s5112_s3  ;;  %4790 = vmatprep.mubr.msk.f32.mxu0 %vm5101_vm4, %v7325_v58 }
 0xc36   :  { %3662 = vrot.lane.b32.xlu1 %v6820_v19, %s5113_s26 }
 0xc3b   :  { %3659 = vrot.lane.b32.xlu0 %v5076_v53, %s5103_s10 }
 0xc89   :  { %v3108_v60 = vpop.xlane.xlu1 %3107 }
 0xc8a   :  { %v3139_v35 = vmul.f32 0.125, %v3108_v60 }
 0xc8c   :  { %v3156_v11 = vadd.f32 1e-05, %v3139_v35 }
 0xc8d   :  { %v3111_v13 = vpop.xlane.xlu0 %3110 }
 0xc8e   :  { %5054 = vrsqrt.f32 %v3156_v11  ;;  %v3140_v26 = vmul.f32 0.125, %v3111_v13 }
 0xc90   :  { %v3157_v43 = vadd.f32 1e-05, %v3140_v26 }
 0xc91   :  { %v3114_v50 = vpop.xlane.xlu1 %3113 }
 0xc92   :  { %5056 = vrsqrt.f32 %v3157_v43  ;;  %v3141_v39 = vmul.f32 0.125, %v3114_v50 }
 0xc94   :  { %v3158_v4 = vadd.f32 1e-05, %v3141_v39 }
 0xc95   :  { %v3117_v40 = vpop.xlane.xlu0 %3116 }
 0xc96   :  { %5058 = vrsqrt.f32 %v3158_v4  ;;  %v3142_v23 = vmul.f32 0.125, %v3117_v40 }
 0xc98   :  { %v3159_v17 = vadd.f32 1e-05, %v3142_v23 }
 0xc99   :  { %v3120_v48 = vpop.xlane.xlu1 %3119 }
 0xc9a   :  { %5060 = vrsqrt.f32 %v3159_v17  ;;  %v3143_v18 = vmul.f32 0.125, %v3120_v48 }
 0xc9b   :  { %v5055_v9 = vpop.eup %5054 }
 0xc9c   :  { %v3190_v19 = vmul.f32 %v5055_v9, %v7095_v6  ;;  %v3160_v3 = vadd.f32 1e-05, %v3143_v18 }
 0xc9d   :  { %v3123_v21 = vpop.xlane.xlu0 %3122 }
 0xc9e   :  { %5062 = vrsqrt.f32 %v3160_v3  ;;  %v3144_v25 = vmul.f32 0.125, %v3123_v21  ;;  %v3210_v59 = vmul.f32 %v7001_v37, %v3190_v19 }
 0xc9f   :  { %v5057_v12 = vpop.eup %5056 }
 0xca0   :  { %v3191_v29 = vmul.f32 %v5057_v12, %v7099_v36  ;;  %v3161_v22 = vadd.f32 1e-05, %v3144_v25  ;;  %v3230_v55 = vadd.f32 %v7006_v31, %v3210_v59 }
 0xca2   :  { %5064 = vrsqrt.f32 %v3161_v22  ;;  %4736 = vmatmul.mubr.msk.f32.gmra.mxu1 %vm288_vm3, %v3230_v55  ;;  %v3211_v49 = vmul.f32 %v7001_v37, %v3191_v29 }
 0xca3   :  { %v5059_v52 = vpop.eup %5058  ;;  %4738 = vmatprep.mubr.msk.f32.mxu1 %vm5101_vm4, %v7325_v58 }
 0xca4   :  { %v3192_v6 = vmul.f32 %v5059_v52, %v7104_v20  ;;  %v3231_v51 = vadd.f32 %v7006_v31, %v3211_v49 }
 0xca6   :  { %4739 = vmatmul.mubr.msk.f32.gmra.mxu1 %vm288_vm3, %v3231_v51  ;;  %v3212_v36 = vmul.f32 %v7001_v37, %v3192_v6 }
 0xca7   :  { %v5061_v33 = vpop.eup %5060  ;;  %4741 = vmatprep.mubr.msk.f32.mxu1 %vm5101_vm4, %v7325_v58 }
 0xca8   :  { %v3193_v8 = vmul.f32 %v5061_v33, %v7109_v16  ;;  %v3232_v27 = vadd.f32 %v7006_v31, %v3212_v36 }
 0xcaa   :  { %v3126_v63 = vpop.xlane.xlu1 %3125  ;;  %4742 = vmatmul.mubr.msk.f32.gmra.mxu1 %vm288_vm3, %v3232_v27  ;;  %v3213_v61 = vmul.f32 %v7001_v37, %v3193_v8 }
 0xcab   :  { %v5063_v20 = vpop.eup %5062  ;;  %v3145_v38 = vmul.f32 0.125, %v3126_v63  ;;  %4744 = vmatprep.mubr.msk.f32.mxu1 %vm5101_vm4, %v7325_v58 }
 0xcac   :  { %v3194_v54 = vmul.f32 %v5063_v20, %v7114_v5  ;;  %v3233_v15 = vadd.f32 %v7006_v31, %v3213_v61 }
 0xcad   :  { %v3162_v30 = vadd.f32 1e-05, %v3145_v38 }
 0xcae   :  { %4745 = vmatmul.mubr.msk.f32.gmra.mxu1 %vm288_vm3, %v3233_v15  ;;  %v3129_v16 = vpop.xlane.xlu0 %3128  ;;  %v3214_v46 = vmul.f32 %v7001_v37, %v3194_v54  ;;  %v3654_v9 = vpop.permute.xlu1 %3653 }
 0xcaf   :  { %v5065_v24 = vpop.eup %5064  ;;  %5066 = vrsqrt.f32 %v3162_v30  ;;  %v3146_v2 = vmul.f32 0.125, %v3129_v16  ;;  %4747 = vmatprep.mubr.msk.f32.mxu1 %vm5101_vm4, %v7325_v58 }
 0xcb0   :  { %v3195_v28 = vmul.f32 %v5065_v24, %v7120_v41  ;;  %v3234_v14 = vadd.f32 %v7006_v31, %v3214_v46 }
 0xcb1   :  { %v3163_v34 = vadd.f32 1e-05, %v3146_v2 }
 0xcb2   :  { %4748 = vmatmul.mubr.msk.f32.gmra.mxu1 %vm288_vm3, %v3234_v14  ;;  %v3215_v5 = vmul.f32 %v7001_v37, %v3195_v28  ;;  %v3660_v10 = vpop.permute.xlu0 %3659 }
 0xcb3   :  { %5068 = vrsqrt.f32 %v3163_v34  ;;  %4750 = vmatprep.mubr.msk.f32.mxu1 %vm5101_vm4, %v7325_v58  ;;  %4815 = vmatpush3.msra.mxu1 %v3660_v10 }
 0xcb4   :  { %v3235_v32 = vadd.f32 %v7006_v31, %v3215_v5 }
 0xcb6   :  { %4751 = vmatmul.mubr.msk.f32.gmra.mxu1 %vm288_vm3, %v3235_v32 }
 0xcb7   :  { %4753 = vmatprep.mubr.msk.f32.mxu1 %vm5101_vm4, %v7325_v58 }
 0xcbc   :  { %v5067_v41 = vpop.eup %5066 }
 0xcbd   :  { %v3196_v7 = vmul.f32 %v5067_v41, %v7139_v62 }
 0xcbf   :  { %v3216_v42 = vmul.f32 %v7001_v37, %v3196_v7 }
 0xcc0   :  { %v5069_v0 = vpop.eup %5068 }
 0xcc1   :  { %v3197_v56 = vmul.f32 %v5069_v0, %v7148_v1  ;;  %v3236_v44 = vadd.f32 %v7006_v31, %v3216_v42  ;;  %v3663_v42 = vpop.permute.xlu1 %3662 }
 0xcc3   :  { %4754 = vmatmul.mubr.msk.f32.gmra.mxu1 %vm288_vm3, %v3236_v44  ;;  %v3217_v53 = vmul.f32 %v7001_v37, %v3197_v56 }
 0xcc4   :  { %4756 = vmatprep.mubr.msk.f32.mxu1 %vm5101_vm4, %v7325_v58 }
 0xcc5   :  { %v3237_v60 = vadd.f32 %v7006_v31, %v3217_v53 }
 0xcc7   :  { %4757 = vmatmul.mubr.msk.f32.gmra.mxu1 %vm288_vm3, %v3237_v60 }
 0xcc8   :  { %4816 = vmatprep.mubr.msk.f32.mxu1 %vm5101_vm4, %v7325_v58 }
 0xcd1   :  { %v3582_v62 = vpop.f32.mrf.mxu0 }
 0xcd2   :  { %v3651_v18 = vadd.f32 %v3582_v62, %v6863_v45 }
 0xcd3   :  { %v4765_v35 = vpop.f32.mrf.mxu0 }
 0xcd4   :  { %v3656_v25 = vadd.f32 %v3654_v9, %v3651_v18 }
 0xcd5   :  { %v3587_v11 = vpop.f32.mrf.mxu0 }
 0xcd7   :  { %v4768_v1 = vpop.f32.mrf.mxu0 }
 0xcd9   :  { %v3591_v13 = vpop.f32.mrf.mxu0 }
 0xcdb   :  { %v4771_v26 = vpop.f32.mrf.mxu0 }
 0xcdd   :  { %v3595_v43 = vpop.f32.mrf.mxu0 }
 0xcdf   :  { %v4774_v50 = vpop.f32.mrf.mxu0 }
 0xce1   :  { %v3599_v39 = vpop.f32.mrf.mxu0 }
 0xce3   :  { %v4777_v37 = vpop.f32.mrf.mxu0 }
 0xce5   :  { %v3603_v4 = vpop.f32.mrf.mxu0 }
 0xce7   :  { %v4780_v40 = vpop.f32.mrf.mxu0 }
 0xce9   :  { %v3607_v23 = vpop.f32.mrf.mxu0 }
 0xceb   :  { %v4783_v17 = vpop.f32.mrf.mxu0 }
 0xced   :  { %v3611_v31 = vpop.f32.mrf.mxu0 }
 0xcef   :  { %v4786_v48 = vpop.f32.mrf.mxu0 }
 0xcf1   :  { %v3615_v19 = vpop.f32.mrf.mxu0 }
 0xcf2   :  { %v3652_v3 = vadd.f32 %v3615_v19, %v6899_v47 }
 0xcf3   :  { %v4789_v21 = vpop.f32.mrf.mxu0 }
 0xcf4   :  { %v3657_v59 = vadd.f32 %v3654_v9, %v3652_v3 }
 0xcf6   :  { %v3658_v12 = vsel %vm1435_vm11, %v3656_v25, %v3657_v59 }
 0xcf7   :  { %4817 = vmatmul.mubr.msk.f32.vlgmr.msra.gmra.mxu1 %vm288_vm3, %v3658_v12 }
 0xd62   :  { %v3406_v29 = vpop.f32.mrf.mxu1 }
 0xd63   :  { %v3407_v22 = vadd.f32 %v3406_v29, %v7093_v57 }
 0xd64   :  { %v4737_v55 = vpop.f32.mrf.mxu1 }
 0xd65   :  { %v3454_v49 = vmax.f32 %v3407_v22, 0.0 }
 0xd66   :  { %v3411_v52 = vpop.f32.mrf.mxu1 }
 0xd67   :  { %v3412_v6 = vadd.f32 %v3411_v52, %v7093_v57  ;;  %4791 = vmatmul.mubr.msk.f32.gmra.mxu0 %vm3464_vm14, %v3454_v49 }
 0xd68   :  { %v4740_v45 = vpop.f32.mrf.mxu1  ;;  %4793 = vmatprep.mubr.msk.f32.mxu0 %vm5101_vm4, %v7325_v58 }
 0xd69   :  { %v3455_v47 = vmax.f32 %v3412_v6, 0.0 }
 0xd6a   :  { %v3416_v51 = vpop.f32.mrf.mxu1 }
 0xd6b   :  { %v3417_v36 = vadd.f32 %v3416_v51, %v7093_v57  ;;  %4794 = vmatmul.mubr.msk.f32.gmra.mxu0 %vm3464_vm14, %v3455_v47 }
 0xd6c   :  { %v4743_v33 = vpop.f32.mrf.mxu1  ;;  %4796 = vmatprep.mubr.msk.f32.mxu0 %vm5101_vm4, %v7325_v58 }
 0xd6d   :  { %v3456_v8 = vmax.f32 %v3417_v36, 0.0 }
 0xd6e   :  { %v3421_v27 = vpop.f32.mrf.mxu1 }
 0xd6f   :  { %v3422_v63 = vadd.f32 %v3421_v27, %v7093_v57  ;;  %4797 = vmatmul.mubr.msk.f32.gmra.mxu0 %vm3464_vm14, %v3456_v8 }
 0xd70   :  { %v4746_v61 = vpop.f32.mrf.mxu1  ;;  %4799 = vmatprep.mubr.msk.f32.mxu0 %vm5101_vm4, %v7325_v58 }
 0xd71   :  { %v3457_v20 = vmax.f32 %v3422_v63, 0.0 }
 0xd72   :  { %v3426_v38 = vpop.f32.mrf.mxu1 }
 0xd73   :  { %v3427_v54 = vadd.f32 %v3426_v38, %v7093_v57  ;;  %4800 = vmatmul.mubr.msk.f32.gmra.mxu0 %vm3464_vm14, %v3457_v20 }
 0xd74   :  { %v4749_v15 = vpop.f32.mrf.mxu1  ;;  %4802 = vmatprep.mubr.msk.f32.mxu0 %vm5101_vm4, %v7325_v58 }
 0xd75   :  { %v3458_v30 = vmax.f32 %v3427_v54, 0.0 }
 0xd76   :  { %v3431_v16 = vpop.f32.mrf.mxu1 }
 0xd77   :  { %v3432_v46 = vadd.f32 %v3431_v16, %v7093_v57  ;;  %4803 = vmatmul.mubr.msk.f32.gmra.mxu0 %vm3464_vm14, %v3458_v30 }
 0xd78   :  { %v4752_v24 = vpop.f32.mrf.mxu1  ;;  %4805 = vmatprep.mubr.msk.f32.mxu0 %vm5101_vm4, %v7325_v58 }
 0xd79   :  { %v3459_v2 = vmax.f32 %v3432_v46, 0.0 }
 0xd7b   :  { %4806 = vmatmul.mubr.msk.f32.gmra.mxu0 %vm3464_vm14, %v3459_v2 }
 0xd7c   :  { %4808 = vmatprep.mubr.msk.f32.mxu0 %vm5101_vm4, %v7325_v58 }
 0xd83   :  { %v3436_v28 = vpop.f32.mrf.mxu1 }
 0xd84   :  { %v3437_v14 = vadd.f32 %v3436_v28, %v7093_v57 }
 0xd85   :  { %v4755_v34 = vpop.f32.mrf.mxu1 }
 0xd86   :  { %v3460_v5 = vmax.f32 %v3437_v14, 0.0 }
 0xd87   :  { %v3441_v10 = vpop.f32.mrf.mxu1 }
 0xd88   :  { %v3442_v32 = vadd.f32 %v3441_v10, %v7093_v57  ;;  %4809 = vmatmul.mubr.msk.f32.gmra.mxu0 %vm3464_vm14, %v3460_v5 }
 0xd89   :  { %v4758_v41 = vpop.f32.mrf.mxu1  ;;  %4811 = vmatprep.mubr.msk.f32.mxu0 %vm5101_vm4, %v7325_v58 }
 0xd8a   :  { %v3461_v7 = vmax.f32 %v3442_v32, 0.0 }
 0xd8c   :  { %4812 = vmatmul.mubr.msk.f32.gmra.mxu0 %vm3464_vm14, %v3461_v7 }
 0xdb7   :  { %v3734_v0 = vpop.f32.mrf.mxu1 }
 0xdb8   :  { %v3735_v56 = vadd.f32 %v3734_v0, %v3663_v42 }
 0xdb9   :  { %v4818_v44 = vpop.f32.mrf.mxu1 }
 0xdba   :  { %v3739_v53 = vsel %vm3738_vm15, %v3735_v56, -inf }
 0xdbb   :  { %3740 = vmax.xlane.f32.xlu1 %v3739_v53 }
 0xe27   :  { %v3620_v60 = vpop.f32.mrf.mxu0 }
 0xe29   :  { %v4792_v62 = vpop.f32.mrf.mxu0 }
 0xe2b   :  { %v3624_v57 = vpop.f32.mrf.mxu0 }
 0xe2d   :  { %v4795_v35 = vpop.f32.mrf.mxu0 }
 0xe2f   :  { %v3628_v11 = vpop.f32.mrf.mxu0 }
 0xe31   :  { %v4798_v1 = vpop.f32.mrf.mxu0 }
 0xe33   :  { %v3632_v13 = vpop.f32.mrf.mxu0 }
 0xe35   :  { %v4801_v26 = vpop.f32.mrf.mxu0 }
 0xe37   :  { %v3636_v58 = vpop.f32.mrf.mxu0 }
 0xe39   :  { %v4804_v43 = vpop.f32.mrf.mxu0 }
 0xe3b   :  { %v3640_v50 = vpop.f32.mrf.mxu0 }
 0xe3d   :  { %v4807_v39 = vpop.f32.mrf.mxu0 }
 0xe44   :  { %v3741_v37 = vpop.xlane.xlu1 %3740 }
 0xe45   :  { %v3742_v4 = vsub.f32 %v3735_v56, %v3741_v37 }
 0xe47   :  { %v3743_v40 = vmul.f32 1.442695, %v3742_v4 }
 0xe48   :  { %v3644_v23 = vpop.f32.mrf.mxu0 }
 0xe49   :  { %5070 = vpow2.f32 %v3743_v40 }
 0xe4a   :  { %v4810_v17 = vpop.f32.mrf.mxu0 }
 0xe4c   :  { %v3648_v31 = vpop.f32.mrf.mxu0 }
 0xe4e   :  { %v4813_v48 = vpop.f32.mrf.mxu0 }
 0xe56   :  { %v5071_v18 = vpop.eup %5070 }
 0xe57   :  { %v3745_v9 = vsel %vm3738_vm15, %v5071_v18, 0.0 }
 0xe58   :  { %3746 = vadd.xlane.f32.xlu0 %v3745_v9 }
 0xee1   :  { %v3747_v19 = vpop.xlane.xlu0 %3746 }
 0xee2   :  { %5072 = vrcp.f32 %v3747_v19 }
 0xeef   :  { %v5073_v3 = vpop.eup %5072 }
 0xef0   :  { %v3749_v21 = vmul.f32 %v5073_v3, %v5071_v18 }
 0xef2   :  { %3750 = vst.msk [vmem:[#allocation3] sm:$0x3] %vm3738_vm15, %v3749_v21 }
 0xef3   :  { %5088 = shalt.err (!%p5085_p4)
}
 0xef4   :  { %3760 = dma.vmem_to_hbm [thread:$0]  %s3758_s27, 32, %s7273_s6, [#allocation4]  }
 0xef5   :  { %5097 = dma.done.wait [#allocation4], 32  }
 0xef6   :  { %5098 = vsyncadd [#allocation4], 4294967264 }
 0xef7   :  { %3764 = vsyncpa [#allocation4], 1 }

</bundles_post_ra>
